<compile_context>
chip_gen: v7x
topology: tpu7x:2x2x1
jax: 0.10.0
libtpu: 0.0.40
codegen_flags: <defaults>
</compile_context>

<pallas_src>
import functools

import jax
import jax.numpy as jnp
from jax.experimental import pallas as pl
from jax.experimental.pallas import tpu as pltpu

_HI = jax.lax.Precision.HIGHEST  # used only by the pure-JAX reference


def _round_up(x, m):
    return ((x + m - 1) // m) * m


def _sigmoid(x):
    # sigmoid(x) == 0.5 * tanh(0.5 * x) + 0.5 : one EUP op instead of exp + reciprocal,
    # mathematically exact, so it is free to use on the serial recurrent chain.
    return 0.5 * jnp.tanh(0.5 * x) + 0.5


def _vmem_capacity_bytes():
    try:
        return int(pltpu.get_tpu_info().vmem_capacity_bytes)
    except Exception:
        return 64 * 1024 * 1024  # conservative: v7x per-TensorCore VMEM


def _plan_layer(*, T, Bp, Hp, GHp, din_max, act_bytes, time_chunk=None, max_chunk=64):
    """Derive time chunk, unroll factor and vmem_limit from the device's VMEM capacity."""
    cap = _vmem_capacity_bytes()
    budget = cap // 2  # planning headroom
    # worst case weights double buffered (fallback path) + biases + h/c scratch
    fixed = 2 * (din_max + Hp) * GHp * act_bytes + 4 * GHp * 4 + 3 * Bp * Hp * 4
    per_t = Bp * (2 * din_max * act_bytes   # x chunk, double buffered
                  + 2 * Hp * act_bytes      # out chunk, double buffered
                  + GHp * 4)                # gx scratch (f32, single buffer)
    if time_chunk is None:
        tc = max(1, min(T, max_chunk, (budget - fixed) // max(per_t, 1)))
    else:
        tc = max(1, int(time_chunk))
    # bound the unrolled live set as Hp grows (64 x 4 KiB vregs on v5e/v6e/v7x alike)
    if Hp <= 256:
        unroll = tc
    elif Hp <= 512:
        unroll = min(tc, 8)
    else:
        unroll = min(tc, 4)
    est = fixed + tc * per_t
    vmem_limit = int(min(int(0.9 * cap), max(2 * est, 16 * 1024 * 1024)))
    return int(tc), int(max(1, unroll)), vmem_limit


# -----------------------------------------------------------------------------
# Recurrent kernels.  grid = (num_dir, num_chunks).  Each grid step:
#   1) projects its x chunk through W_ih on the MXU into a VMEM gx scratch,
#   2) runs an unrolled fori_loop over the chunk's timesteps with h (and c) carried as
#      loop-carry VALUES (registers); scratch only carries state across chunk boundaries.
# Direction 1 traverses time in reverse purely via index arithmetic (BlockSpec index_map for
# chunks, reversed in-chunk row offset here) and writes its output at the original time
# position, matching PyTorch's reverse-direction layout.
# -----------------------------------------------------------------------------
def _lstm_layer_kernel(x_ref, wih_ref, whh_ref, bgx_ref, out_ref,
                       gx_scr, h_scr, c_scr, *, t_valid, need_mask, unroll):
    rev = pl.program_id(0)            # 0 = forward traversal, 1 = reverse traversal
    chunk = pl.program_id(1)
    n_chunks = pl.num_programs(1)
    bp, hp = h_scr.shape
    tcbp = gx_scr.shape[0]
    tc = tcbp // bp

    @pl.when(chunk == 0)
    def _():
        h_scr[...] = jnp.zeros_like(h_scr)
        c_scr[...] = jnp.zeros_like(c_scr)

    # Chunk-level input projection on the MXU; gx never round-trips HBM.
    gx_scr[...] = (
        jnp.dot(x_ref[...], wih_ref[...], preferred_element_type=jnp.float32) + bgx_ref[...]
    )

    # index of this chunk in array (time) order; reverse walks chunks back-to-front
    arr_chunk = chunk + rev * (n_chunks - 1 - 2 * chunk)

    def step(j, carry):
        h, c = carry
        t = j + rev * (tc - 1 - 2 * j)          # in-chunk array time index
        off = pl.multiple_of(t * bp, bp)
        gates = gx_scr[pl.ds(off, bp), :] + jnp.dot(
            h.astype(whh_ref.dtype), whh_ref[...], preferred_element_type=jnp.float32)
        i = _sigmoid(gates[:, 0 * hp:1 * hp])
        f = _sigmoid(gates[:, 1 * hp:2 * hp])
        g = jnp.tanh(gates[:, 2 * hp:3 * hp])
        o = _sigmoid(gates[:, 3 * hp:4 * hp])
        c_new = f * c + i * g
        h_new = o * jnp.tanh(c_new)
        if need_mask:  # static: only compiled when T does not divide into the chunks
            keep = ((arr_chunk * tc + t) < t_valid).astype(jnp.float32)
            h_new = keep * h_new + (1.0 - keep) * h
            c_new = keep * c_new + (1.0 - keep) * c
        out_ref[pl.ds(off, bp), :] = h_new.astype(out_ref.dtype)
        return (h_new, c_new)

    h, c = jax.lax.fori_loop(0, tc, step, (h_scr[...], c_scr[...]), unroll=unroll)
    h_scr[...] = h
    c_scr[...] = c


def _gru_layer_kernel(x_ref, wih_ref, whh_ref, bgx_ref, bhn_ref, out_ref,
                      gx_scr, h_scr, *, t_valid, need_mask, unroll):
    rev = pl.program_id(0)
    chunk = pl.program_id(1)
    n_chunks = pl.num_programs(1)
    bp, hp = h_scr.shape
    tcbp = gx_scr.shape[0]
    tc = tcbp // bp

    @pl.when(chunk == 0)
    def _():
        h_scr[...] = jnp.zeros_like(h_scr)

    gx_scr[...] = (
        jnp.dot(x_ref[...], wih_ref[...], preferred_element_type=jnp.float32) + bgx_ref[...]
    )

    # hidden-side bias: only the n-gate slice survives (r/z folded into bgx in the wrapper);
    # broadcast hoisted out of the serial step loop.
    bhn = jnp.broadcast_to(bhn_ref[...], (bp, hp))

    arr_chunk = chunk + rev * (n_chunks - 1 - 2 * chunk)

    def step(j, h):
        t = j + rev * (tc - 1 - 2 * j)
        off = pl.multiple_of(t * bp, bp)
        gxt = gx_scr[pl.ds(off, bp), :]
        gh = jnp.dot(h.astype(whh_ref.dtype), whh_ref[...],
                     preferred_element_type=jnp.float32)
        r = _sigmoid(gxt[:, 0:hp] + gh[:, 0:hp])
        z = _sigmoid(gxt[:, hp:2 * hp] + gh[:, hp:2 * hp])
        n = jnp.tanh(gxt[:, 2 * hp:3 * hp] + r * (gh[:, 2 * hp:3 * hp] + bhn))
        h_new = (1.0 - z) * n + z * h
        if need_mask:
            keep = ((arr_chunk * tc + t) < t_valid).astype(jnp.float32)
            h_new = keep * h_new + (1.0 - keep) * h
        out_ref[pl.ds(off, bp), :] = h_new.astype(out_ref.dtype)
        return h_new

    h = jax.lax.fori_loop(0, tc, step, h_scr[...], unroll=unroll)
    h_scr[...] = h


def _rnn_layer_call(x2d, wih_s, whh_s, bgx_s, bhn_s, *, rnn_type, t_valid, time_chunk,
                    unroll, vmem_limit, bp, single_buffer_weights):
    """One (bi)directional RNN layer.

    x2d   : (T_pad*Bp, Din)             time-major activation slab (bf16 by default)
    wih_s : (num_dir, Din, G*Hp)        input weights (padded, MXU dtype)
    whh_s : (num_dir, Hp, G*Hp)         hidden weights (padded, MXU dtype)
    bgx_s : (num_dir, 1, G*Hp)  f32     bias folded into gx (LSTM: b_ih+b_hh; GRU: b_ih+b_h{r,z})
    bhn_s : (num_dir, 1, Hp)    f32     GRU n-gate hidden bias (None for LSTM)
    returns (T_pad*Bp, num_dir*Hp): forward dir in columns [0:Hp], reverse in [Hp:2Hp].
    """
    TBp, Din = x2d.shape
    num_dir, Hp, GHp = whh_s.shape
    Tc = time_chunk
    C = TBp // (Tc * bp)
    need_mask = (t_valid != C * Tc)

    def x_map(d, c):
        # reverse direction reads chunks back-to-front; pure index arithmetic, no HBM copy
        return (c + d * (C - 1 - 2 * c), 0)

    def w_map(d, c):
        return (d, 0, 0)

    def out_map(d, c):
        # both directions write into one (T_pad*Bp, num_dir*Hp) buffer (no concat afterwards)
        return (c + d * (C - 1 - 2 * c), d)

    # Chunk-invariant weight blocks: single-buffer them to halve their VMEM footprint.
    wkw = dict(pipeline_mode=pl.Buffered(1)) if single_buffer_weights else {}

    in_specs = [
        pl.BlockSpec((Tc * bp, Din), x_map),
        pl.BlockSpec((None, Din, GHp), w_map, **wkw),
        pl.BlockSpec((None, Hp, GHp), w_map, **wkw),
        pl.BlockSpec((None, 1, GHp), w_map, **wkw),
    ]
    operands = [x2d, wih_s, whh_s, bgx_s]
    scratch = [pltpu.VMEM((Tc * bp, GHp), jnp.float32),   # gx for the current chunk
               pltpu.VMEM((bp, Hp), jnp.float32)]         # h carried across chunks
    if rnn_type == "lstm":
        kernel = functools.partial(_lstm_layer_kernel, t_valid=t_valid,
                                   need_mask=need_mask, unroll=unroll)
        scratch.append(pltpu.VMEM((bp, Hp), jnp.float32))  # c carried across chunks
    else:
        kernel = functools.partial(_gru_layer_kernel, t_valid=t_valid,
                                   need_mask=need_mask, unroll=unroll)
        in_specs.append(pl.BlockSpec((None, 1, Hp), w_map, **wkw))
        operands.append(bhn_s)

    return pl.pallas_call(
        kernel,
        out_shape=jax.ShapeDtypeStruct((TBp, num_dir * Hp), x2d.dtype),
        grid_spec=pltpu.PrefetchScalarGridSpec(
            num_scalar_prefetch=0,
            grid=(num_dir, C),
            in_specs=in_specs,
            out_specs=pl.BlockSpec((Tc * bp, Hp), out_map),
            scratch_shapes=scratch,
        ),
        compiler_params=pltpu.CompilerParams(
            # directions are independent (scratch re-init at chunk==0) -> "parallel" lets
            # v7x's two TensorCores run fwd/rev concurrently; chunk axis stays "arbitrary"
            # and innermost (the standard accumulator pattern).
            dimension_semantics=("parallel", "arbitrary"),
            vmem_limit_bytes=vmem_limit,
        ),
    )(*operands)


def rnn_layer(x2d, wih_s, whh_s, bgx_s, bhn_s, **kw):
    try:
        return _rnn_layer_call(x2d, wih_s, whh_s, bgx_s, bhn_s,
                               single_buffer_weights=True, **kw)
    except Exception:
        # pl.Buffered(1) / pipeline_mode unsupported on this JAX: fall back to the default
        # double-buffered weight pipeline (costs VMEM only, semantics identical).
        return _rnn_layer_call(x2d, wih_s, whh_s, bgx_s, bhn_s,
                               single_buffer_weights=False, **kw)


# -----------------------------------------------------------------------------
# Final fully-connected head: (Bp, num_dir*Hp) @ (num_dir*Hp, 1) + b -> (Bp, 1)
# (tiny; its 1-lane masked store is negligible next to the recurrent layers)
# -----------------------------------------------------------------------------
def _fc_kernel(x_ref, w_ref, b_ref, o_ref):
    o_ref[...] = (
        jnp.dot(x_ref[...], w_ref[...], preferred_element_type=jnp.float32) + b_ref[...]
    ).astype(o_ref.dtype)


def fc_pallas(x, w, b):
    B, F = x.shape
    return pl.pallas_call(
        _fc_kernel,
        out_shape=jax.ShapeDtypeStruct((B, 1), jnp.float32),
        in_specs=[
            pl.BlockSpec((B, F), lambda: (0, 0)),
            pl.BlockSpec((F, 1), lambda: (0, 0)),
            pl.BlockSpec((1, 1), lambda: (0, 0)),
        ],
        out_specs=pl.BlockSpec((B, 1), lambda: (0, 0)),
    )(x, w, b)


# -----------------------------------------------------------------------------
# Parameter init (deterministic, mimics PyTorch uniform(-1/sqrt(H), 1/sqrt(H)))
# Logical (unpadded) layout: wih (Din, G*H), whh (H, G*H), bih/bhh (1, G*H).
# -----------------------------------------------------------------------------
def init_params(key, input_size, hidden_size, num_layers, bidirectional, rnn_type):
    num_dir = 2 if bidirectional else 1
    G = 4 if rnn_type == "lstm" else 3
    k = 1.0 / jnp.sqrt(hidden_size)
    params = {"rnn": {}}
    for l in range(num_layers):
        d_in = input_size if l == 0 else num_dir * hidden_size
        for d in range(num_dir):
            key, k1, k2, k3, k4 = jax.random.split(key, 5)
            params["rnn"][(l, d)] = {
                "wih": jax.random.uniform(k1, (d_in, G * hidden_size), jnp.float32, -k, k),
                "whh": jax.random.uniform(k2, (hidden_size, G * hidden_size), jnp.float32, -k, k),
                "bih": jax.random.uniform(k3, (1, G * hidden_size), jnp.float32, -k, k),
                "bhh": jax.random.uniform(k4, (1, G * hidden_size), jnp.float32, -k, k),
            }
    key, k1, k2 = jax.random.split(key, 3)
    kf = 1.0 / jnp.sqrt(num_dir * hidden_size)
    params["fc_w"] = jax.random.uniform(k1, (num_dir * hidden_size, 1), jnp.float32, -kf, kf)
    params["fc_b"] = jax.random.uniform(k2, (1, 1), jnp.float32, -kf, kf)
    return params


# -----------------------------------------------------------------------------
# Padded / stacked "device" parameters.  Gate blocks padded H -> Hp (multiple of 128) with
# zeros; zero gate columns + zero padded biases keep padded hidden lanes exactly 0 through
# the recurrence.  MXU operands (wih/whh) are stored in bf16 by default (f32 accumulation).
# -----------------------------------------------------------------------------
def _pad_gate_cols(a, H, Hp, G):
    lead = a.shape[:-1]
    a = a.reshape(lead + (G, H))
    pad = [(0, 0)] * (a.ndim - 1) + [(0, Hp - H)]
    return jnp.pad(a, pad).reshape(lead + (G * Hp,))


def _pad_dir_rows(w, H, Hp, num_dir):
    # (num_dir*H, N) -> (num_dir*Hp, N): zero rows at padded hidden slots per direction
    N = w.shape[-1]
    w = w.reshape(num_dir, H, N)
    w = jnp.pad(w, ((0, 0), (0, Hp - H), (0, 0)))
    return w.reshape(num_dir * Hp, N)


def build_device_params(params, *, rnn_type, num_layers, bidirectional, hidden_size,
                        mxu_dtype=jnp.bfloat16):
    num_dir = 2 if bidirectional else 1
    G = 4 if rnn_type == "lstm" else 3
    H = hidden_size
    Hp = _round_up(H, 128)
    din0 = params["rnn"][(0, 0)]["wih"].shape[0]
    din0_pad = _round_up(din0, 128)         # aligned MXU contraction dim for layer 0
    dev = {"layers": [], "Hp": Hp, "din0_pad": din0_pad}
    for l in range(num_layers):
        wih_l, whh_l, bgx_l, bhn_l = [], [], [], []
        for d in range(num_dir):
            p = params["rnn"][(l, d)]
            wih = p["wih"]
            if l == 0:
                wih = jnp.pad(wih, ((0, din0_pad - din0), (0, 0)))
            else:       # deeper layers consume the padded (fwd|rev) hidden concat
                wih = _pad_dir_rows(wih, H, Hp, num_dir)
            wih = _pad_gate_cols(wih, H, Hp, G)
            whh = _pad_gate_cols(jnp.pad(p["whh"], ((0, Hp - H), (0, 0))), H, Hp, G)
            if rnn_type == "lstm":
                bgx = _pad_gate_cols(p["bih"] + p["bhh"], H, Hp, G)
            else:
                # GRU: fold the r/z hidden biases into the precomputed gate term; only b_hn
                # must stay on the hidden side (it is gated by r each step).
                bhh = p["bhh"]
                bhh_rz = jnp.concatenate([bhh[:, :2 * H], jnp.zeros((1, H), bhh.dtype)], -1)
                bgx = _pad_gate_cols(p["bih"] + bhh_rz, H, Hp, G)
                bhn_l.append(jnp.pad(bhh[:, 2 * H:], ((0, 0), (0, Hp - H))))
            wih_l.append(wih.astype(mxu_dtype))
            whh_l.append(whh.astype(mxu_dtype))
            bgx_l.append(bgx.astype(jnp.float32))
        layer = {"wih": jnp.stack(wih_l), "whh": jnp.stack(whh_l), "bgx": jnp.stack(bgx_l)}
        if rnn_type == "gru":
            layer["bhn"] = jnp.stack(bhn_l).astype(jnp.float32)
        dev["layers"].append(layer)
    dev["fc_w"] = _pad_dir_rows(params["fc_w"], H, Hp, num_dir).astype(jnp.float32)
    dev["fc_b"] = params["fc_b"].astype(jnp.float32)
    return dev


# -----------------------------------------------------------------------------
# Full forward pass (glue in plain JAX, per-layer recurrence + FC head in Pallas)
# -----------------------------------------------------------------------------
def rnn_model_forward(x_bdt, params, *, rnn_type, num_layers, bidirectional, hidden_size,
                      mxu_dtype=jnp.bfloat16, time_chunk=None):
    # x_bdt: (B, input_size, T) -- matches the PyTorch module's expected input
    B, Din0, T = x_bdt.shape
    num_dir = 2 if bidirectional else 1
    G = 4 if rnn_type == "lstm" else 3
    dev = build_device_params(params, rnn_type=rnn_type, num_layers=num_layers,
                              bidirectional=bidirectional, hidden_size=hidden_size,
                              mxu_dtype=mxu_dtype)
    Hp = dev["Hp"]
    din0_pad = dev["din0_pad"]
    Bp = _round_up(max(B, 8), 8)
    act_bytes = jnp.dtype(mxu_dtype).itemsize

    din_max = max(din0_pad, num_dir * Hp) if num_layers > 1 else din0_pad
    Tc, unroll, vmem_limit = _plan_layer(T=T, Bp=Bp, Hp=Hp, GHp=G * Hp, din_max=din_max,
                                         act_bytes=act_bytes, time_chunk=time_chunk)
    T_pad = _round_up(T, Tc)

    # (B, Din, T) -> time-major, pad time / batch / features, flatten to a lane-dense 2D slab
    x = jnp.transpose(x_bdt, (2, 0, 1)).astype(jnp.float32)
    x = jnp.pad(x, ((0, T_pad - T), (0, Bp - B), (0, din0_pad - Din0)))
    x = x.reshape(T_pad * Bp, din0_pad).astype(mxu_dtype)

    layer_in = x
    for l in range(num_layers):
        pw = dev["layers"][l]
        layer_in = rnn_layer(layer_in, pw["wih"], pw["whh"], pw["bgx"], pw.get("bhn"),
                             rnn_type=rnn_type, t_valid=T, time_chunk=Tc, unroll=unroll,
                             vmem_limit=vmem_limit, bp=Bp)

    # out[:, -1, :] -> rows of the real last timestep T-1
    last = layer_in[(T - 1) * Bp:(T - 1) * Bp + Bp].astype(jnp.float32)
    out = fc_pallas(last, dev["fc_w"], dev["fc_b"])          # (Bp, 1)
    return out[:B]


# -----------------------------------------------------------------------------
# Pure-JAX reference (lax.scan, unpadded logical params, HIGHEST precision) for checking
# -----------------------------------------------------------------------------
def _lstm_ref(x_tbd, wih, whh, bih, bhh):
    H = whh.shape[0]
    b = bih + bhh

    def step(carry, x_t):
        h, c = carry
        g = jnp.dot(x_t, wih, precision=_HI) + jnp.dot(h, whh, precision=_HI) + b
        i = jax.nn.sigmoid(g[:, :H])
        f = jax.nn.sigmoid(g[:, H:2 * H])
        gg = jnp.tanh(g[:, 2 * H:3 * H])
        o = jax.nn.sigmoid(g[:, 3 * H:])
        c = f * c + i * gg
        h = o * jnp.tanh(c)
        return (h, c), h

    B = x_tbd.shape[1]
    init = (jnp.zeros((B, H), jnp.float32), jnp.zeros((B, H), jnp.float32))
    _, hs = jax.lax.scan(step, init, x_tbd)
    return hs


def _gru_ref(x_tbd, wih, whh, bih, bhh):
    H = whh.shape[0]

    def step(h, x_t):
        gx = jnp.dot(x_t, wih, precision=_HI) + bih
        gh = jnp.dot(h, whh, precision=_HI) + bhh
        r = jax.nn.sigmoid(gx[:, :H] + gh[:, :H])
        z = jax.nn.sigmoid(gx[:, H:2 * H] + gh[:, H:2 * H])
        n = jnp.tanh(gx[:, 2 * H:] + r * gh[:, 2 * H:])
        h = (1.0 - z) * n + z * h
        return h, h

    B = x_tbd.shape[1]
    _, hs = jax.lax.scan(step, jnp.zeros((B, H), jnp.float32), x_tbd)
    return hs


def rnn_model_ref(x_bdt, params, *, rnn_type, num_layers, bidirectional, hidden_size):
    x_btd = jnp.transpose(x_bdt, (0, 2, 1))
    layer_in = jnp.transpose(x_btd, (1, 0, 2))
    num_dir = 2 if bidirectional else 1
    cell_ref = _lstm_ref if rnn_type == "lstm" else _gru_ref
    for l in range(num_layers):
        outs = []
        for d in range(num_dir):
            p = params["rnn"][(l, d)]
            inp = layer_in if d == 0 else layer_in[::-1]
            out = cell_ref(inp, p["wih"], p["whh"], p["bih"], p["bhh"])
            if d == 1:
                out = out[::-1]
            outs.append(out)
        layer_in = jnp.concatenate(outs, axis=-1)
    return jnp.dot(layer_in[-1], params["fc_w"], precision=_HI) + params["fc_b"]


if __name__ == "__main__":
    INPUT_SIZE, H = 4, 32
    key = jax.random.PRNGKey(0)
    kx1, kx2, kp1, kp2, kp3 = jax.random.split(key, 5)
    # module input: (batch, input_size, seq_len)
    x_t8 = jax.random.normal(kx1, (2, INPUT_SIZE, 8), jnp.float32)
    x_t11 = jax.random.normal(kx2, (2, INPUT_SIZE, 11), jnp.float32)

    configs = [
        # (rnn_type, num_layers, bidirectional, x, time_chunk override, key)
        ("lstm", 2, True, x_t8, None, kp1),
        ("gru", 1, False, x_t8, None, kp2),
        ("gru", 1, True, x_t11, 4, kp3),   # T not a chunk multiple -> exercises the masked tail
    ]
    ok = True
    for rnn_type, num_layers, bidirectional, x, tc, pkey in configs:
        params = init_params(pkey, INPUT_SIZE, H, num_layers, bidirectional, rnn_type)
        out = jax.block_until_ready(rnn_model_forward(
            x, params, rnn_type=rnn_type, num_layers=num_layers,
            bidirectional=bidirectional, hidden_size=H, time_chunk=tc))
        ref = jax.block_until_ready(rnn_model_ref(
            x, params, rnn_type=rnn_type, num_layers=num_layers,
            bidirectional=bidirectional, hidden_size=H))
        ok &= (out.shape == (x.shape[0], 1))
        # bf16 MXU operands with f32 accumulation vs. a Precision.HIGHEST f32 reference
        ok &= bool(jnp.allclose(out, ref, atol=3e-2, rtol=3e-2))

    if ok:
        print("KERNEL_OK")
    else:
        print("KERNEL_MISMATCH")
</pallas_src>

<mosaic_0001>
module attributes {stable_mosaic.version = 11 : i64} {
  func.func @_lstm_layer_kernel(%arg0: i32, %arg1: i32, %arg2: memref<64x128xbf16, #tpu.memory_space<vmem>>, %arg3: memref<1x128x512xbf16, #tpu.memory_space<vmem>>, %arg4: memref<1x128x512xbf16, #tpu.memory_space<vmem>>, %arg5: memref<1x1x512xf32, #tpu.memory_space<vmem>>, %arg6: memref<64x128xbf16, #tpu.memory_space<vmem>>, %arg7: memref<64x512xf32, #tpu.memory_space<vmem>>, %arg8: memref<8x128xf32, #tpu.memory_space<vmem>>, %arg9: memref<8x128xf32, #tpu.memory_space<vmem>>) attributes {dimension_semantics = [#tpu.dimension_semantics<parallel>, #tpu.dimension_semantics<arbitrary>], iteration_bounds = array<i64: 2, 1>, scalar_prefetch = 0 : i64, scratch_operands = 3 : i64, tpu.core_type = #tpu.core_type<tc>, window_params = [{transform_indices = @transform_0, window_bounds = array<i64: 64, 128>}, {pipeline_mode = #tpu.pipeline_mode<synchronous>, transform_indices = @transform_1, window_bounds = array<i64: 1, 128, 512>}, {pipeline_mode = #tpu.pipeline_mode<synchronous>, transform_indices = @transform_2, window_bounds = array<i64: 1, 128, 512>}, {pipeline_mode = #tpu.pipeline_mode<synchronous>, transform_indices = @transform_3, window_bounds = array<i64: 1, 1, 512>}, {transform_indices = @transform_4, window_bounds = array<i64: 64, 128>}]} {
    %c0_i32 = arith.constant 0 : i32
    %0 = arith.cmpi eq, %arg1, %c0_i32 : i32
    %1 = arith.extui %0 : i1 to i32
    %c0_i32_0 = arith.constant 0 : i32
    %2 = arith.cmpi ne, %1, %c0_i32_0 : i32
    scf.if %2 {
      %cst_163 = arith.constant 0.000000e+00 : f32
      %392 = vector.broadcast %cst_163 : f32 to vector<8x128xf32>
      %c0_164 = arith.constant 0 : index
      %c0_165 = arith.constant 0 : index
      %393 = vector.load %arg8[%c0_164, %c0_165] : memref<8x128xf32, #tpu.memory_space<vmem>>, vector<8x128xf32>
      tpu.vector_store %arg8[%c0_164, %c0_165], %392 {strides = array<i32>} : memref<8x128xf32, #tpu.memory_space<vmem>>, vector<8x128xf32>,
      %cst_166 = arith.constant 0.000000e+00 : f32
      %394 = vector.broadcast %cst_166 : f32 to vector<8x128xf32>
      %c0_167 = arith.constant 0 : index
      %c0_168 = arith.constant 0 : index
      %395 = vector.load %arg9[%c0_167, %c0_168] : memref<8x128xf32, #tpu.memory_space<vmem>>, vector<8x128xf32>
      tpu.vector_store %arg9[%c0_167, %c0_168], %394 {strides = array<i32>} : memref<8x128xf32, #tpu.memory_space<vmem>>, vector<8x128xf32>,
    } else {
    }
    %c0 = arith.constant 0 : index
    %c0_1 = arith.constant 0 : index
    %3 = vector.load %arg2[%c0, %c0_1] : memref<64x128xbf16, #tpu.memory_space<vmem>>, vector<64x128xbf16>
    %c0_2 = arith.constant 0 : index
    %c0_3 = arith.constant 0 : index
    %c0_4 = arith.constant 0 : index
    %4 = vector.load %arg3[%c0_2, %c0_3, %c0_4] : memref<1x128x512xbf16, #tpu.memory_space<vmem>>, vector<1x128x512xbf16>
    %5 = vector.shape_cast %4 : vector<1x128x512xbf16> to vector<128x512xbf16>
    %cst = arith.constant dense<0.000000e+00> : vector<64x512xf32>
    %6 = tpu.matmul %3, %5, %cst {dimension_numbers = #tpu.dot_dimension_numbers<[1], [0], [0], [1], [0, 0, 1, 1], [], []>} : vector<64x128xbf16>, vector<128x512xbf16>, vector<64x512xf32> -> vector<64x512xf32>
    %c0_5 = arith.constant 0 : index
    %c0_6 = arith.constant 0 : index
    %c0_7 = arith.constant 0 : index
    %7 = vector.load %arg5[%c0_5, %c0_6, %c0_7] : memref<1x1x512xf32, #tpu.memory_space<vmem>>, vector<1x1x512xf32>
    %8 = vector.shape_cast %7 : vector<1x1x512xf32> to vector<1x512xf32>
    %9 = vector.broadcast %8 : vector<1x512xf32> to vector<64x512xf32>
    %10 = arith.addf %6, %9 : vector<64x512xf32>
    %c0_8 = arith.constant 0 : index
    %c0_9 = arith.constant 0 : index
    %11 = vector.load %arg7[%c0_8, %c0_9] : memref<64x512xf32, #tpu.memory_space<vmem>>, vector<64x512xf32>
    tpu.vector_store %arg7[%c0_8, %c0_9], %10 {strides = array<i32>} : memref<64x512xf32, #tpu.memory_space<vmem>>, vector<64x512xf32>,
    %c0_10 = arith.constant 0 : index
    %c0_11 = arith.constant 0 : index
    %12 = vector.load %arg8[%c0_10, %c0_11] : memref<8x128xf32, #tpu.memory_space<vmem>>, vector<8x128xf32>
    %c0_12 = arith.constant 0 : index
    %c0_13 = arith.constant 0 : index
    %13 = vector.load %arg9[%c0_12, %c0_13] : memref<8x128xf32, #tpu.memory_space<vmem>>, vector<8x128xf32>
    %c0_i32_14 = arith.constant 0 : i32
    %c2_i32 = arith.constant 2 : i32
    %14 = arith.muli %c2_i32, %c0_i32_14 : i32
    %c7_i32 = arith.constant 7 : i32
    %15 = arith.subi %c7_i32, %14 : i32
    %16 = arith.muli %arg0, %15 : i32
    %17 = arith.addi %c0_i32_14, %16 : i32
    %c8_i32 = arith.constant 8 : i32
    %18 = arith.muli %17, %c8_i32 : i32
    %19 = tpu.assume_multiple %18, 8 : i32
    %20 = arith.index_cast %19 : i32 to index
    %c0_15 = arith.constant 0 : index
    %21 = vector.load %arg7[%20, %c0_15] : memref<64x512xf32, #tpu.memory_space<vmem>>, vector<8x512xf32>
    %22 = arith.truncf %12 : vector<8x128xf32> to vector<8x128xbf16>
    %c0_16 = arith.constant 0 : index
    %c0_17 = arith.constant 0 : index
    %c0_18 = arith.constant 0 : index
    %23 = vector.load %arg4[%c0_16, %c0_17, %c0_18] : memref<1x128x512xbf16, #tpu.memory_space<vmem>>, vector<1x128x512xbf16>
    %24 = vector.shape_cast %23 : vector<1x128x512xbf16> to vector<128x512xbf16>
    %cst_19 = arith.constant dense<0.000000e+00> : vector<8x512xf32>
    %25 = tpu.matmul %22, %24, %cst_19 {dimension_numbers = #tpu.dot_dimension_numbers<[1], [0], [0], [1], [0, 0, 1, 1], [], []>} : vector<8x128xbf16>, vector<128x512xbf16>, vector<8x512xf32> -> vector<8x512xf32>
    %26 = arith.addf %21, %25 : vector<8x512xf32>
    %27 = vector.extract_strided_slice %26 {offsets = [0, 0], sizes = [8, 128], strides = [1, 1]} : vector<8x512xf32> to vector<8x128xf32>
    %cst_20 = arith.constant 5.000000e-01 : f32
    %28 = vector.broadcast %cst_20 : f32 to vector<8x128xf32>
    %29 = arith.mulf %28, %27 : vector<8x128xf32>
    %30 = math.tanh %29 : vector<8x128xf32>
    %cst_21 = arith.constant 5.000000e-01 : f32
    %31 = vector.broadcast %cst_21 : f32 to vector<8x128xf32>
    %32 = arith.mulf %31, %30 : vector<8x128xf32>
    %cst_22 = arith.constant 5.000000e-01 : f32
    %33 = vector.broadcast %cst_22 : f32 to vector<8x128xf32>
    %34 = arith.addf %32, %33 : vector<8x128xf32>
    %35 = vector.extract_strided_slice %26 {offsets = [0, 128], sizes = [8, 128], strides = [1, 1]} : vector<8x512xf32> to vector<8x128xf32>
    %cst_23 = arith.constant 5.000000e-01 : f32
    %36 = vector.broadcast %cst_23 : f32 to vector<8x128xf32>
    %37 = arith.mulf %36, %35 : vector<8x128xf32>
    %38 = math.tanh %37 : vector<8x128xf32>
    %cst_24 = arith.constant 5.000000e-01 : f32
    %39 = vector.broadcast %cst_24 : f32 to vector<8x128xf32>
    %40 = arith.mulf %39, %38 : vector<8x128xf32>
    %cst_25 = arith.constant 5.000000e-01 : f32
    %41 = vector.broadcast %cst_25 : f32 to vector<8x128xf32>
    %42 = arith.addf %40, %41 : vector<8x128xf32>
    %43 = vector.extract_strided_slice %26 {offsets = [0, 256], sizes = [8, 128], strides = [1, 1]} : vector<8x512xf32> to vector<8x128xf32>
    %44 = math.tanh %43 : vector<8x128xf32>
    %45 = vector.extract_strided_slice %26 {offsets = [0, 384], sizes = [8, 128], strides = [1, 1]} : vector<8x512xf32> to vector<8x128xf32>
    %cst_26 = arith.constant 5.000000e-01 : f32
    %46 = vector.broadcast %cst_26 : f32 to vector<8x128xf32>
    %47 = arith.mulf %46, %45 : vector<8x128xf32>
    %48 = math.tanh %47 : vector<8x128xf32>
    %cst_27 = arith.constant 5.000000e-01 : f32
    %49 = vector.broadcast %cst_27 : f32 to vector<8x128xf32>
    %50 = arith.mulf %49, %48 : vector<8x128xf32>
    %cst_28 = arith.constant 5.000000e-01 : f32
    %51 = vector.broadcast %cst_28 : f32 to vector<8x128xf32>
    %52 = arith.addf %50, %51 : vector<8x128xf32>
    %53 = arith.mulf %42, %13 : vector<8x128xf32>
    %54 = arith.mulf %34, %44 : vector<8x128xf32>
    %55 = arith.addf %53, %54 : vector<8x128xf32>
    %56 = math.tanh %55 : vector<8x128xf32>
    %57 = arith.mulf %52, %56 : vector<8x128xf32>
    %58 = arith.truncf %57 : vector<8x128xf32> to vector<8x128xbf16>
    %59 = arith.index_cast %19 : i32 to index
    %c0_29 = arith.constant 0 : index
    %60 = vector.load %arg6[%59, %c0_29] : memref<64x128xbf16, #tpu.memory_space<vmem>>, vector<8x128xbf16>
    tpu.vector_store %arg6[%59, %c0_29], %58 {strides = array<i32>} : memref<64x128xbf16, #tpu.memory_space<vmem>>, vector<8x128xbf16>,
    %c1_i32 = arith.constant 1 : i32
    %c2_i32_30 = arith.constant 2 : i32
    %61 = arith.muli %c2_i32_30, %c1_i32 : i32
    %c7_i32_31 = arith.constant 7 : i32
    %62 = arith.subi %c7_i32_31, %61 : i32
    %63 = arith.muli %arg0, %62 : i32
    %64 = arith.addi %c1_i32, %63 : i32
    %c8_i32_32 = arith.constant 8 : i32
    %65 = arith.muli %64, %c8_i32_32 : i32
    %66 = tpu.assume_multiple %65, 8 : i32
    %67 = arith.index_cast %66 : i32 to index
    %c0_33 = arith.constant 0 : index
    %68 = vector.load %arg7[%67, %c0_33] : memref<64x512xf32, #tpu.memory_space<vmem>>, vector<8x512xf32>
    %69 = arith.truncf %57 : vector<8x128xf32> to vector<8x128xbf16>
    %c0_34 = arith.constant 0 : index
    %c0_35 = arith.constant 0 : index
    %c0_36 = arith.constant 0 : index
    %70 = vector.load %arg4[%c0_34, %c0_35, %c0_36] : memref<1x128x512xbf16, #tpu.memory_space<vmem>>, vector<1x128x512xbf16>
    %71 = vector.shape_cast %70 : vector<1x128x512xbf16> to vector<128x512xbf16>
    %cst_37 = arith.constant dense<0.000000e+00> : vector<8x512xf32>
    %72 = tpu.matmul %69, %71, %cst_37 {dimension_numbers = #tpu.dot_dimension_numbers<[1], [0], [0], [1], [0, 0, 1, 1], [], []>} : vector<8x128xbf16>, vector<128x512xbf16>, vector<8x512xf32> -> vector<8x512xf32>
    %73 = arith.addf %68, %72 : vector<8x512xf32>
    %74 = vector.extract_strided_slice %73 {offsets = [0, 0], sizes = [8, 128], strides = [1, 1]} : vector<8x512xf32> to vector<8x128xf32>
    %cst_38 = arith.constant 5.000000e-01 : f32
    %75 = vector.broadcast %cst_38 : f32 to vector<8x128xf32>
    %76 = arith.mulf %75, %74 : vector<8x128xf32>
    %77 = math.tanh %76 : vector<8x128xf32>
    %cst_39 = arith.constant 5.000000e-01 : f32
    %78 = vector.broadcast %cst_39 : f32 to vector<8x128xf32>
    %79 = arith.mulf %78, %77 : vector<8x128xf32>
    %cst_40 = arith.constant 5.000000e-01 : f32
    %80 = vector.broadcast %cst_40 : f32 to vector<8x128xf32>
    %81 = arith.addf %79, %80 : vector<8x128xf32>
    %82 = vector.extract_strided_slice %73 {offsets = [0, 128], sizes = [8, 128], strides = [1, 1]} : vector<8x512xf32> to vector<8x128xf32>
    %cst_41 = arith.constant 5.000000e-01 : f32
    %83 = vector.broadcast %cst_41 : f32 to vector<8x128xf32>
    %84 = arith.mulf %83, %82 : vector<8x128xf32>
    %85 = math.tanh %84 : vector<8x128xf32>
    %cst_42 = arith.constant 5.000000e-01 : f32
    %86 = vector.broadcast %cst_42 : f32 to vector<8x128xf32>
    %87 = arith.mulf %86, %85 : vector<8x128xf32>
    %cst_43 = arith.constant 5.000000e-01 : f32
    %88 = vector.broadcast %cst_43 : f32 to vector<8x128xf32>
    %89 = arith.addf %87, %88 : vector<8x128xf32>
    %90 = vector.extract_strided_slice %73 {offsets = [0, 256], sizes = [8, 128], strides = [1, 1]} : vector<8x512xf32> to vector<8x128xf32>
    %91 = math.tanh %90 : vector<8x128xf32>
    %92 = vector.extract_strided_slice %73 {offsets = [0, 384], sizes = [8, 128], strides = [1, 1]} : vector<8x512xf32> to vector<8x128xf32>
    %cst_44 = arith.constant 5.000000e-01 : f32
    %93 = vector.broadcast %cst_44 : f32 to vector<8x128xf32>
    %94 = arith.mulf %93, %92 : vector<8x128xf32>
    %95 = math.tanh %94 : vector<8x128xf32>
    %cst_45 = arith.constant 5.000000e-01 : f32
    %96 = vector.broadcast %cst_45 : f32 to vector<8x128xf32>
    %97 = arith.mulf %96, %95 : vector<8x128xf32>
    %cst_46 = arith.constant 5.000000e-01 : f32
    %98 = vector.broadcast %cst_46 : f32 to vector<8x128xf32>
    %99 = arith.addf %97, %98 : vector<8x128xf32>
    %100 = arith.mulf %89, %55 : vector<8x128xf32>
    %101 = arith.mulf %81, %91 : vector<8x128xf32>
    %102 = arith.addf %100, %101 : vector<8x128xf32>
    %103 = math.tanh %102 : vector<8x128xf32>
    %104 = arith.mulf %99, %103 : vector<8x128xf32>
    %105 = arith.truncf %104 : vector<8x128xf32> to vector<8x128xbf16>
    %106 = arith.index_cast %66 : i32 to index
    %c0_47 = arith.constant 0 : index
    %107 = vector.load %arg6[%106, %c0_47] : memref<64x128xbf16, #tpu.memory_space<vmem>>, vector<8x128xbf16>
    tpu.vector_store %arg6[%106, %c0_47], %105 {strides = array<i32>} : memref<64x128xbf16, #tpu.memory_space<vmem>>, vector<8x128xbf16>,
    %c2_i32_48 = arith.constant 2 : i32
    %c2_i32_49 = arith.constant 2 : i32
    %108 = arith.muli %c2_i32_49, %c2_i32_48 : i32
    %c7_i32_50 = arith.constant 7 : i32
    %109 = arith.subi %c7_i32_50, %108 : i32
    %110 = arith.muli %arg0, %109 : i32
    %111 = arith.addi %c2_i32_48, %110 : i32
    %c8_i32_51 = arith.constant 8 : i32
    %112 = arith.muli %111, %c8_i32_51 : i32
    %113 = tpu.assume_multiple %112, 8 : i32
    %114 = arith.index_cast %113 : i32 to index
    %c0_52 = arith.constant 0 : index
    %115 = vector.load %arg7[%114, %c0_52] : memref<64x512xf32, #tpu.memory_space<vmem>>, vector<8x512xf32>
    %116 = arith.truncf %104 : vector<8x128xf32> to vector<8x128xbf16>
    %c0_53 = arith.constant 0 : index
    %c0_54 = arith.constant 0 : index
    %c0_55 = arith.constant 0 : index
    %117 = vector.load %arg4[%c0_53, %c0_54, %c0_55] : memref<1x128x512xbf16, #tpu.memory_space<vmem>>, vector<1x128x512xbf16>
    %118 = vector.shape_cast %117 : vector<1x128x512xbf16> to vector<128x512xbf16>
    %cst_56 = arith.constant dense<0.000000e+00> : vector<8x512xf32>
    %119 = tpu.matmul %116, %118, %cst_56 {dimension_numbers = #tpu.dot_dimension_numbers<[1], [0], [0], [1], [0, 0, 1, 1], [], []>} : vector<8x128xbf16>, vector<128x512xbf16>, vector<8x512xf32> -> vector<8x512xf32>
    %120 = arith.addf %115, %119 : vector<8x512xf32>
    %121 = vector.extract_strided_slice %120 {offsets = [0, 0], sizes = [8, 128], strides = [1, 1]} : vector<8x512xf32> to vector<8x128xf32>
    %cst_57 = arith.constant 5.000000e-01 : f32
    %122 = vector.broadcast %cst_57 : f32 to vector<8x128xf32>
    %123 = arith.mulf %122, %121 : vector<8x128xf32>
    %124 = math.tanh %123 : vector<8x128xf32>
    %cst_58 = arith.constant 5.000000e-01 : f32
    %125 = vector.broadcast %cst_58 : f32 to vector<8x128xf32>
    %126 = arith.mulf %125, %124 : vector<8x128xf32>
    %cst_59 = arith.constant 5.000000e-01 : f32
    %127 = vector.broadcast %cst_59 : f32 to vector<8x128xf32>
    %128 = arith.addf %126, %127 : vector<8x128xf32>
    %129 = vector.extract_strided_slice %120 {offsets = [0, 128], sizes = [8, 128], strides = [1, 1]} : vector<8x512xf32> to vector<8x128xf32>
    %cst_60 = arith.constant 5.000000e-01 : f32
    %130 = vector.broadcast %cst_60 : f32 to vector<8x128xf32>
    %131 = arith.mulf %130, %129 : vector<8x128xf32>
    %132 = math.tanh %131 : vector<8x128xf32>
    %cst_61 = arith.constant 5.000000e-01 : f32
    %133 = vector.broadcast %cst_61 : f32 to vector<8x128xf32>
    %134 = arith.mulf %133, %132 : vector<8x128xf32>
    %cst_62 = arith.constant 5.000000e-01 : f32
    %135 = vector.broadcast %cst_62 : f32 to vector<8x128xf32>
    %136 = arith.addf %134, %135 : vector<8x128xf32>
    %137 = vector.extract_strided_slice %120 {offsets = [0, 256], sizes = [8, 128], strides = [1, 1]} : vector<8x512xf32> to vector<8x128xf32>
    %138 = math.tanh %137 : vector<8x128xf32>
    %139 = vector.extract_strided_slice %120 {offsets = [0, 384], sizes = [8, 128], strides = [1, 1]} : vector<8x512xf32> to vector<8x128xf32>
    %cst_63 = arith.constant 5.000000e-01 : f32
    %140 = vector.broadcast %cst_63 : f32 to vector<8x128xf32>
    %141 = arith.mulf %140, %139 : vector<8x128xf32>
    %142 = math.tanh %141 : vector<8x128xf32>
    %cst_64 = arith.constant 5.000000e-01 : f32
    %143 = vector.broadcast %cst_64 : f32 to vector<8x128xf32>
    %144 = arith.mulf %143, %142 : vector<8x128xf32>
    %cst_65 = arith.constant 5.000000e-01 : f32
    %145 = vector.broadcast %cst_65 : f32 to vector<8x128xf32>
    %146 = arith.addf %144, %145 : vector<8x128xf32>
    %147 = arith.mulf %136, %102 : vector<8x128xf32>
    %148 = arith.mulf %128, %138 : vector<8x128xf32>
    %149 = arith.addf %147, %148 : vector<8x128xf32>
    %150 = math.tanh %149 : vector<8x128xf32>
    %151 = arith.mulf %146, %150 : vector<8x128xf32>
    %152 = arith.truncf %151 : vector<8x128xf32> to vector<8x128xbf16>
    %153 = arith.index_cast %113 : i32 to index
    %c0_66 = arith.constant 0 : index
    %154 = vector.load %arg6[%153, %c0_66] : memref<64x128xbf16, #tpu.memory_space<vmem>>, vector<8x128xbf16>
    tpu.vector_store %arg6[%153, %c0_66], %152 {strides = array<i32>} : memref<64x128xbf16, #tpu.memory_space<vmem>>, vector<8x128xbf16>,
    %c3_i32 = arith.constant 3 : i32
    %c2_i32_67 = arith.constant 2 : i32
    %155 = arith.muli %c2_i32_67, %c3_i32 : i32
    %c7_i32_68 = arith.constant 7 : i32
    %156 = arith.subi %c7_i32_68, %155 : i32
    %157 = arith.muli %arg0, %156 : i32
    %158 = arith.addi %c3_i32, %157 : i32
    %c8_i32_69 = arith.constant 8 : i32
    %159 = arith.muli %158, %c8_i32_69 : i32
    %160 = tpu.assume_multiple %159, 8 : i32
    %161 = arith.index_cast %160 : i32 to index
    %c0_70 = arith.constant 0 : index
    %162 = vector.load %arg7[%161, %c0_70] : memref<64x512xf32, #tpu.memory_space<vmem>>, vector<8x512xf32>
    %163 = arith.truncf %151 : vector<8x128xf32> to vector<8x128xbf16>
    %c0_71 = arith.constant 0 : index
    %c0_72 = arith.constant 0 : index
    %c0_73 = arith.constant 0 : index
    %164 = vector.load %arg4[%c0_71, %c0_72, %c0_73] : memref<1x128x512xbf16, #tpu.memory_space<vmem>>, vector<1x128x512xbf16>
    %165 = vector.shape_cast %164 : vector<1x128x512xbf16> to vector<128x512xbf16>
    %cst_74 = arith.constant dense<0.000000e+00> : vector<8x512xf32>
    %166 = tpu.matmul %163, %165, %cst_74 {dimension_numbers = #tpu.dot_dimension_numbers<[1], [0], [0], [1], [0, 0, 1, 1], [], []>} : vector<8x128xbf16>, vector<128x512xbf16>, vector<8x512xf32> -> vector<8x512xf32>
    %167 = arith.addf %162, %166 : vector<8x512xf32>
    %168 = vector.extract_strided_slice %167 {offsets = [0, 0], sizes = [8, 128], strides = [1, 1]} : vector<8x512xf32> to vector<8x128xf32>
    %cst_75 = arith.constant 5.000000e-01 : f32
    %169 = vector.broadcast %cst_75 : f32 to vector<8x128xf32>
    %170 = arith.mulf %169, %168 : vector<8x128xf32>
    %171 = math.tanh %170 : vector<8x128xf32>
    %cst_76 = arith.constant 5.000000e-01 : f32
    %172 = vector.broadcast %cst_76 : f32 to vector<8x128xf32>
    %173 = arith.mulf %172, %171 : vector<8x128xf32>
    %cst_77 = arith.constant 5.000000e-01 : f32
    %174 = vector.broadcast %cst_77 : f32 to vector<8x128xf32>
    %175 = arith.addf %173, %174 : vector<8x128xf32>
    %176 = vector.extract_strided_slice %167 {offsets = [0, 128], sizes = [8, 128], strides = [1, 1]} : vector<8x512xf32> to vector<8x128xf32>
    %cst_78 = arith.constant 5.000000e-01 : f32
    %177 = vector.broadcast %cst_78 : f32 to vector<8x128xf32>
    %178 = arith.mulf %177, %176 : vector<8x128xf32>
    %179 = math.tanh %178 : vector<8x128xf32>
    %cst_79 = arith.constant 5.000000e-01 : f32
    %180 = vector.broadcast %cst_79 : f32 to vector<8x128xf32>
    %181 = arith.mulf %180, %179 : vector<8x128xf32>
    %cst_80 = arith.constant 5.000000e-01 : f32
    %182 = vector.broadcast %cst_80 : f32 to vector<8x128xf32>
    %183 = arith.addf %181, %182 : vector<8x128xf32>
    %184 = vector.extract_strided_slice %167 {offsets = [0, 256], sizes = [8, 128], strides = [1, 1]} : vector<8x512xf32> to vector<8x128xf32>
    %185 = math.tanh %184 : vector<8x128xf32>
    %186 = vector.extract_strided_slice %167 {offsets = [0, 384], sizes = [8, 128], strides = [1, 1]} : vector<8x512xf32> to vector<8x128xf32>
    %cst_81 = arith.constant 5.000000e-01 : f32
    %187 = vector.broadcast %cst_81 : f32 to vector<8x128xf32>
    %188 = arith.mulf %187, %186 : vector<8x128xf32>
    %189 = math.tanh %188 : vector<8x128xf32>
    %cst_82 = arith.constant 5.000000e-01 : f32
    %190 = vector.broadcast %cst_82 : f32 to vector<8x128xf32>
    %191 = arith.mulf %190, %189 : vector<8x128xf32>
    %cst_83 = arith.constant 5.000000e-01 : f32
    %192 = vector.broadcast %cst_83 : f32 to vector<8x128xf32>
    %193 = arith.addf %191, %192 : vector<8x128xf32>
    %194 = arith.mulf %183, %149 : vector<8x128xf32>
    %195 = arith.mulf %175, %185 : vector<8x128xf32>
    %196 = arith.addf %194, %195 : vector<8x128xf32>
    %197 = math.tanh %196 : vector<8x128xf32>
    %198 = arith.mulf %193, %197 : vector<8x128xf32>
    %199 = arith.truncf %198 : vector<8x128xf32> to vector<8x128xbf16>
    %200 = arith.index_cast %160 : i32 to index
    %c0_84 = arith.constant 0 : index
    %201 = vector.load %arg6[%200, %c0_84] : memref<64x128xbf16, #tpu.memory_space<vmem>>, vector<8x128xbf16>
    tpu.vector_store %arg6[%200, %c0_84], %199 {strides = array<i32>} : memref<64x128xbf16, #tpu.memory_space<vmem>>, vector<8x128xbf16>,
    %c4_i32 = arith.constant 4 : i32
    %c2_i32_85 = arith.constant 2 : i32
    %202 = arith.muli %c2_i32_85, %c4_i32 : i32
    %c7_i32_86 = arith.constant 7 : i32
    %203 = arith.subi %c7_i32_86, %202 : i32
    %204 = arith.muli %arg0, %203 : i32
    %205 = arith.addi %c4_i32, %204 : i32
    %c8_i32_87 = arith.constant 8 : i32
    %206 = arith.muli %205, %c8_i32_87 : i32
    %207 = tpu.assume_multiple %206, 8 : i32
    %208 = arith.index_cast %207 : i32 to index
    %c0_88 = arith.constant 0 : index
    %209 = vector.load %arg7[%208, %c0_88] : memref<64x512xf32, #tpu.memory_space<vmem>>, vector<8x512xf32>
    %210 = arith.truncf %198 : vector<8x128xf32> to vector<8x128xbf16>
    %c0_89 = arith.constant 0 : index
    %c0_90 = arith.constant 0 : index
    %c0_91 = arith.constant 0 : index
    %211 = vector.load %arg4[%c0_89, %c0_90, %c0_91] : memref<1x128x512xbf16, #tpu.memory_space<vmem>>, vector<1x128x512xbf16>
    %212 = vector.shape_cast %211 : vector<1x128x512xbf16> to vector<128x512xbf16>
    %cst_92 = arith.constant dense<0.000000e+00> : vector<8x512xf32>
    %213 = tpu.matmul %210, %212, %cst_92 {dimension_numbers = #tpu.dot_dimension_numbers<[1], [0], [0], [1], [0, 0, 1, 1], [], []>} : vector<8x128xbf16>, vector<128x512xbf16>, vector<8x512xf32> -> vector<8x512xf32>
    %214 = arith.addf %209, %213 : vector<8x512xf32>
    %215 = vector.extract_strided_slice %214 {offsets = [0, 0], sizes = [8, 128], strides = [1, 1]} : vector<8x512xf32> to vector<8x128xf32>
    %cst_93 = arith.constant 5.000000e-01 : f32
    %216 = vector.broadcast %cst_93 : f32 to vector<8x128xf32>
    %217 = arith.mulf %216, %215 : vector<8x128xf32>
    %218 = math.tanh %217 : vector<8x128xf32>
    %cst_94 = arith.constant 5.000000e-01 : f32
    %219 = vector.broadcast %cst_94 : f32 to vector<8x128xf32>
    %220 = arith.mulf %219, %218 : vector<8x128xf32>
    %cst_95 = arith.constant 5.000000e-01 : f32
    %221 = vector.broadcast %cst_95 : f32 to vector<8x128xf32>
    %222 = arith.addf %220, %221 : vector<8x128xf32>
    %223 = vector.extract_strided_slice %214 {offsets = [0, 128], sizes = [8, 128], strides = [1, 1]} : vector<8x512xf32> to vector<8x128xf32>
    %cst_96 = arith.constant 5.000000e-01 : f32
    %224 = vector.broadcast %cst_96 : f32 to vector<8x128xf32>
    %225 = arith.mulf %224, %223 : vector<8x128xf32>
    %226 = math.tanh %225 : vector<8x128xf32>
    %cst_97 = arith.constant 5.000000e-01 : f32
    %227 = vector.broadcast %cst_97 : f32 to vector<8x128xf32>
    %228 = arith.mulf %227, %226 : vector<8x128xf32>
    %cst_98 = arith.constant 5.000000e-01 : f32
    %229 = vector.broadcast %cst_98 : f32 to vector<8x128xf32>
    %230 = arith.addf %228, %229 : vector<8x128xf32>
    %231 = vector.extract_strided_slice %214 {offsets = [0, 256], sizes = [8, 128], strides = [1, 1]} : vector<8x512xf32> to vector<8x128xf32>
    %232 = math.tanh %231 : vector<8x128xf32>
    %233 = vector.extract_strided_slice %214 {offsets = [0, 384], sizes = [8, 128], strides = [1, 1]} : vector<8x512xf32> to vector<8x128xf32>
    %cst_99 = arith.constant 5.000000e-01 : f32
    %234 = vector.broadcast %cst_99 : f32 to vector<8x128xf32>
    %235 = arith.mulf %234, %233 : vector<8x128xf32>
    %236 = math.tanh %235 : vector<8x128xf32>
    %cst_100 = arith.constant 5.000000e-01 : f32
    %237 = vector.broadcast %cst_100 : f32 to vector<8x128xf32>
    %238 = arith.mulf %237, %236 : vector<8x128xf32>
    %cst_101 = arith.constant 5.000000e-01 : f32
    %239 = vector.broadcast %cst_101 : f32 to vector<8x128xf32>
    %240 = arith.addf %238, %239 : vector<8x128xf32>
    %241 = arith.mulf %230, %196 : vector<8x128xf32>
    %242 = arith.mulf %222, %232 : vector<8x128xf32>
    %243 = arith.addf %241, %242 : vector<8x128xf32>
    %244 = math.tanh %243 : vector<8x128xf32>
    %245 = arith.mulf %240, %244 : vector<8x128xf32>
    %246 = arith.truncf %245 : vector<8x128xf32> to vector<8x128xbf16>
    %247 = arith.index_cast %207 : i32 to index
    %c0_102 = arith.constant 0 : index
    %248 = vector.load %arg6[%247, %c0_102] : memref<64x128xbf16, #tpu.memory_space<vmem>>, vector<8x128xbf16>
    tpu.vector_store %arg6[%247, %c0_102], %246 {strides = array<i32>} : memref<64x128xbf16, #tpu.memory_space<vmem>>, vector<8x128xbf16>,
    %c5_i32 = arith.constant 5 : i32
    %c2_i32_103 = arith.constant 2 : i32
    %249 = arith.muli %c2_i32_103, %c5_i32 : i32
    %c7_i32_104 = arith.constant 7 : i32
    %250 = arith.subi %c7_i32_104, %249 : i32
    %251 = arith.muli %arg0, %250 : i32
    %252 = arith.addi %c5_i32, %251 : i32
    %c8_i32_105 = arith.constant 8 : i32
    %253 = arith.muli %252, %c8_i32_105 : i32
    %254 = tpu.assume_multiple %253, 8 : i32
    %255 = arith.index_cast %254 : i32 to index
    %c0_106 = arith.constant 0 : index
    %256 = vector.load %arg7[%255, %c0_106] : memref<64x512xf32, #tpu.memory_space<vmem>>, vector<8x512xf32>
    %257 = arith.truncf %245 : vector<8x128xf32> to vector<8x128xbf16>
    %c0_107 = arith.constant 0 : index
    %c0_108 = arith.constant 0 : index
    %c0_109 = arith.constant 0 : index
    %258 = vector.load %arg4[%c0_107, %c0_108, %c0_109] : memref<1x128x512xbf16, #tpu.memory_space<vmem>>, vector<1x128x512xbf16>
    %259 = vector.shape_cast %258 : vector<1x128x512xbf16> to vector<128x512xbf16>
    %cst_110 = arith.constant dense<0.000000e+00> : vector<8x512xf32>
    %260 = tpu.matmul %257, %259, %cst_110 {dimension_numbers = #tpu.dot_dimension_numbers<[1], [0], [0], [1], [0, 0, 1, 1], [], []>} : vector<8x128xbf16>, vector<128x512xbf16>, vector<8x512xf32> -> vector<8x512xf32>
    %261 = arith.addf %256, %260 : vector<8x512xf32>
    %262 = vector.extract_strided_slice %261 {offsets = [0, 0], sizes = [8, 128], strides = [1, 1]} : vector<8x512xf32> to vector<8x128xf32>
    %cst_111 = arith.constant 5.000000e-01 : f32
    %263 = vector.broadcast %cst_111 : f32 to vector<8x128xf32>
    %264 = arith.mulf %263, %262 : vector<8x128xf32>
    %265 = math.tanh %264 : vector<8x128xf32>
    %cst_112 = arith.constant 5.000000e-01 : f32
    %266 = vector.broadcast %cst_112 : f32 to vector<8x128xf32>
    %267 = arith.mulf %266, %265 : vector<8x128xf32>
    %cst_113 = arith.constant 5.000000e-01 : f32
    %268 = vector.broadcast %cst_113 : f32 to vector<8x128xf32>
    %269 = arith.addf %267, %268 : vector<8x128xf32>
    %270 = vector.extract_strided_slice %261 {offsets = [0, 128], sizes = [8, 128], strides = [1, 1]} : vector<8x512xf32> to vector<8x128xf32>
    %cst_114 = arith.constant 5.000000e-01 : f32
    %271 = vector.broadcast %cst_114 : f32 to vector<8x128xf32>
    %272 = arith.mulf %271, %270 : vector<8x128xf32>
    %273 = math.tanh %272 : vector<8x128xf32>
    %cst_115 = arith.constant 5.000000e-01 : f32
    %274 = vector.broadcast %cst_115 : f32 to vector<8x128xf32>
    %275 = arith.mulf %274, %273 : vector<8x128xf32>
    %cst_116 = arith.constant 5.000000e-01 : f32
    %276 = vector.broadcast %cst_116 : f32 to vector<8x128xf32>
    %277 = arith.addf %275, %276 : vector<8x128xf32>
    %278 = vector.extract_strided_slice %261 {offsets = [0, 256], sizes = [8, 128], strides = [1, 1]} : vector<8x512xf32> to vector<8x128xf32>
    %279 = math.tanh %278 : vector<8x128xf32>
    %280 = vector.extract_strided_slice %261 {offsets = [0, 384], sizes = [8, 128], strides = [1, 1]} : vector<8x512xf32> to vector<8x128xf32>
    %cst_117 = arith.constant 5.000000e-01 : f32
    %281 = vector.broadcast %cst_117 : f32 to vector<8x128xf32>
    %282 = arith.mulf %281, %280 : vector<8x128xf32>
    %283 = math.tanh %282 : vector<8x128xf32>
    %cst_118 = arith.constant 5.000000e-01 : f32
    %284 = vector.broadcast %cst_118 : f32 to vector<8x128xf32>
    %285 = arith.mulf %284, %283 : vector<8x128xf32>
    %cst_119 = arith.constant 5.000000e-01 : f32
    %286 = vector.broadcast %cst_119 : f32 to vector<8x128xf32>
    %287 = arith.addf %285, %286 : vector<8x128xf32>
    %288 = arith.mulf %277, %243 : vector<8x128xf32>
    %289 = arith.mulf %269, %279 : vector<8x128xf32>
    %290 = arith.addf %288, %289 : vector<8x128xf32>
    %291 = math.tanh %290 : vector<8x128xf32>
    %292 = arith.mulf %287, %291 : vector<8x128xf32>
    %293 = arith.truncf %292 : vector<8x128xf32> to vector<8x128xbf16>
    %294 = arith.index_cast %254 : i32 to index
    %c0_120 = arith.constant 0 : index
    %295 = vector.load %arg6[%294, %c0_120] : memref<64x128xbf16, #tpu.memory_space<vmem>>, vector<8x128xbf16>
    tpu.vector_store %arg6[%294, %c0_120], %293 {strides = array<i32>} : memref<64x128xbf16, #tpu.memory_space<vmem>>, vector<8x128xbf16>,
    %c6_i32 = arith.constant 6 : i32
    %c2_i32_121 = arith.constant 2 : i32
    %296 = arith.muli %c2_i32_121, %c6_i32 : i32
    %c7_i32_122 = arith.constant 7 : i32
    %297 = arith.subi %c7_i32_122, %296 : i32
    %298 = arith.muli %arg0, %297 : i32
    %299 = arith.addi %c6_i32, %298 : i32
    %c8_i32_123 = arith.constant 8 : i32
    %300 = arith.muli %299, %c8_i32_123 : i32
    %301 = tpu.assume_multiple %300, 8 : i32
    %302 = arith.index_cast %301 : i32 to index
    %c0_124 = arith.constant 0 : index
    %303 = vector.load %arg7[%302, %c0_124] : memref<64x512xf32, #tpu.memory_space<vmem>>, vector<8x512xf32>
    %304 = arith.truncf %292 : vector<8x128xf32> to vector<8x128xbf16>
    %c0_125 = arith.constant 0 : index
    %c0_126 = arith.constant 0 : index
    %c0_127 = arith.constant 0 : index
    %305 = vector.load %arg4[%c0_125, %c0_126, %c0_127] : memref<1x128x512xbf16, #tpu.memory_space<vmem>>, vector<1x128x512xbf16>
    %306 = vector.shape_cast %305 : vector<1x128x512xbf16> to vector<128x512xbf16>
    %cst_128 = arith.constant dense<0.000000e+00> : vector<8x512xf32>
    %307 = tpu.matmul %304, %306, %cst_128 {dimension_numbers = #tpu.dot_dimension_numbers<[1], [0], [0], [1], [0, 0, 1, 1], [], []>} : vector<8x128xbf16>, vector<128x512xbf16>, vector<8x512xf32> -> vector<8x512xf32>
    %308 = arith.addf %303, %307 : vector<8x512xf32>
    %309 = vector.extract_strided_slice %308 {offsets = [0, 0], sizes = [8, 128], strides = [1, 1]} : vector<8x512xf32> to vector<8x128xf32>
    %cst_129 = arith.constant 5.000000e-01 : f32
    %310 = vector.broadcast %cst_129 : f32 to vector<8x128xf32>
    %311 = arith.mulf %310, %309 : vector<8x128xf32>
    %312 = math.tanh %311 : vector<8x128xf32>
    %cst_130 = arith.constant 5.000000e-01 : f32
    %313 = vector.broadcast %cst_130 : f32 to vector<8x128xf32>
    %314 = arith.mulf %313, %312 : vector<8x128xf32>
    %cst_131 = arith.constant 5.000000e-01 : f32
    %315 = vector.broadcast %cst_131 : f32 to vector<8x128xf32>
    %316 = arith.addf %314, %315 : vector<8x128xf32>
    %317 = vector.extract_strided_slice %308 {offsets = [0, 128], sizes = [8, 128], strides = [1, 1]} : vector<8x512xf32> to vector<8x128xf32>
    %cst_132 = arith.constant 5.000000e-01 : f32
    %318 = vector.broadcast %cst_132 : f32 to vector<8x128xf32>
    %319 = arith.mulf %318, %317 : vector<8x128xf32>
    %320 = math.tanh %319 : vector<8x128xf32>
    %cst_133 = arith.constant 5.000000e-01 : f32
    %321 = vector.broadcast %cst_133 : f32 to vector<8x128xf32>
    %322 = arith.mulf %321, %320 : vector<8x128xf32>
    %cst_134 = arith.constant 5.000000e-01 : f32
    %323 = vector.broadcast %cst_134 : f32 to vector<8x128xf32>
    %324 = arith.addf %322, %323 : vector<8x128xf32>
    %325 = vector.extract_strided_slice %308 {offsets = [0, 256], sizes = [8, 128], strides = [1, 1]} : vector<8x512xf32> to vector<8x128xf32>
    %326 = math.tanh %325 : vector<8x128xf32>
    %327 = vector.extract_strided_slice %308 {offsets = [0, 384], sizes = [8, 128], strides = [1, 1]} : vector<8x512xf32> to vector<8x128xf32>
    %cst_135 = arith.constant 5.000000e-01 : f32
    %328 = vector.broadcast %cst_135 : f32 to vector<8x128xf32>
    %329 = arith.mulf %328, %327 : vector<8x128xf32>
    %330 = math.tanh %329 : vector<8x128xf32>
    %cst_136 = arith.constant 5.000000e-01 : f32
    %331 = vector.broadcast %cst_136 : f32 to vector<8x128xf32>
    %332 = arith.mulf %331, %330 : vector<8x128xf32>
    %cst_137 = arith.constant 5.000000e-01 : f32
    %333 = vector.broadcast %cst_137 : f32 to vector<8x128xf32>
    %334 = arith.addf %332, %333 : vector<8x128xf32>
    %335 = arith.mulf %324, %290 : vector<8x128xf32>
    %336 = arith.mulf %316, %326 : vector<8x128xf32>
    %337 = arith.addf %335, %336 : vector<8x128xf32>
    %338 = math.tanh %337 : vector<8x128xf32>
    %339 = arith.mulf %334, %338 : vector<8x128xf32>
    %340 = arith.truncf %339 : vector<8x128xf32> to vector<8x128xbf16>
    %341 = arith.index_cast %301 : i32 to index
    %c0_138 = arith.constant 0 : index
    %342 = vector.load %arg6[%341, %c0_138] : memref<64x128xbf16, #tpu.memory_space<vmem>>, vector<8x128xbf16>
    tpu.vector_store %arg6[%341, %c0_138], %340 {strides = array<i32>} : memref<64x128xbf16, #tpu.memory_space<vmem>>, vector<8x128xbf16>,
    %c7_i32_139 = arith.constant 7 : i32
    %c2_i32_140 = arith.constant 2 : i32
    %343 = arith.muli %c2_i32_140, %c7_i32_139 : i32
    %c7_i32_141 = arith.constant 7 : i32
    %344 = arith.subi %c7_i32_141, %343 : i32
    %345 = arith.muli %arg0, %344 : i32
    %346 = arith.addi %c7_i32_139, %345 : i32
    %c8_i32_142 = arith.constant 8 : i32
    %347 = arith.muli %346, %c8_i32_142 : i32
    %348 = tpu.assume_multiple %347, 8 : i32
    %349 = arith.index_cast %348 : i32 to index
    %c0_143 = arith.constant 0 : index
    %350 = vector.load %arg7[%349, %c0_143] : memref<64x512xf32, #tpu.memory_space<vmem>>, vector<8x512xf32>
    %351 = arith.truncf %339 : vector<8x128xf32> to vector<8x128xbf16>
    %c0_144 = arith.constant 0 : index
    %c0_145 = arith.constant 0 : index
    %c0_146 = arith.constant 0 : index
    %352 = vector.load %arg4[%c0_144, %c0_145, %c0_146] : memref<1x128x512xbf16, #tpu.memory_space<vmem>>, vector<1x128x512xbf16>
    %353 = vector.shape_cast %352 : vector<1x128x512xbf16> to vector<128x512xbf16>
    %cst_147 = arith.constant dense<0.000000e+00> : vector<8x512xf32>
    %354 = tpu.matmul %351, %353, %cst_147 {dimension_numbers = #tpu.dot_dimension_numbers<[1], [0], [0], [1], [0, 0, 1, 1], [], []>} : vector<8x128xbf16>, vector<128x512xbf16>, vector<8x512xf32> -> vector<8x512xf32>
    %355 = arith.addf %350, %354 : vector<8x512xf32>
    %356 = vector.extract_strided_slice %355 {offsets = [0, 0], sizes = [8, 128], strides = [1, 1]} : vector<8x512xf32> to vector<8x128xf32>
    %cst_148 = arith.constant 5.000000e-01 : f32
    %357 = vector.broadcast %cst_148 : f32 to vector<8x128xf32>
    %358 = arith.mulf %357, %356 : vector<8x128xf32>
    %359 = math.tanh %358 : vector<8x128xf32>
    %cst_149 = arith.constant 5.000000e-01 : f32
    %360 = vector.broadcast %cst_149 : f32 to vector<8x128xf32>
    %361 = arith.mulf %360, %359 : vector<8x128xf32>
    %cst_150 = arith.constant 5.000000e-01 : f32
    %362 = vector.broadcast %cst_150 : f32 to vector<8x128xf32>
    %363 = arith.addf %361, %362 : vector<8x128xf32>
    %364 = vector.extract_strided_slice %355 {offsets = [0, 128], sizes = [8, 128], strides = [1, 1]} : vector<8x512xf32> to vector<8x128xf32>
    %cst_151 = arith.constant 5.000000e-01 : f32
    %365 = vector.broadcast %cst_151 : f32 to vector<8x128xf32>
    %366 = arith.mulf %365, %364 : vector<8x128xf32>
    %367 = math.tanh %366 : vector<8x128xf32>
    %cst_152 = arith.constant 5.000000e-01 : f32
    %368 = vector.broadcast %cst_152 : f32 to vector<8x128xf32>
    %369 = arith.mulf %368, %367 : vector<8x128xf32>
    %cst_153 = arith.constant 5.000000e-01 : f32
    %370 = vector.broadcast %cst_153 : f32 to vector<8x128xf32>
    %371 = arith.addf %369, %370 : vector<8x128xf32>
    %372 = vector.extract_strided_slice %355 {offsets = [0, 256], sizes = [8, 128], strides = [1, 1]} : vector<8x512xf32> to vector<8x128xf32>
    %373 = math.tanh %372 : vector<8x128xf32>
    %374 = vector.extract_strided_slice %355 {offsets = [0, 384], sizes = [8, 128], strides = [1, 1]} : vector<8x512xf32> to vector<8x128xf32>
    %cst_154 = arith.constant 5.000000e-01 : f32
    %375 = vector.broadcast %cst_154 : f32 to vector<8x128xf32>
    %376 = arith.mulf %375, %374 : vector<8x128xf32>
    %377 = math.tanh %376 : vector<8x128xf32>
    %cst_155 = arith.constant 5.000000e-01 : f32
    %378 = vector.broadcast %cst_155 : f32 to vector<8x128xf32>
    %379 = arith.mulf %378, %377 : vector<8x128xf32>
    %cst_156 = arith.constant 5.000000e-01 : f32
    %380 = vector.broadcast %cst_156 : f32 to vector<8x128xf32>
    %381 = arith.addf %379, %380 : vector<8x128xf32>
    %382 = arith.mulf %371, %337 : vector<8x128xf32>
    %383 = arith.mulf %363, %373 : vector<8x128xf32>
    %384 = arith.addf %382, %383 : vector<8x128xf32>
    %385 = math.tanh %384 : vector<8x128xf32>
    %386 = arith.mulf %381, %385 : vector<8x128xf32>
    %387 = arith.truncf %386 : vector<8x128xf32> to vector<8x128xbf16>
    %388 = arith.index_cast %348 : i32 to index
    %c0_157 = arith.constant 0 : index
    %389 = vector.load %arg6[%388, %c0_157] : memref<64x128xbf16, #tpu.memory_space<vmem>>, vector<8x128xbf16>
    tpu.vector_store %arg6[%388, %c0_157], %387 {strides = array<i32>} : memref<64x128xbf16, #tpu.memory_space<vmem>>, vector<8x128xbf16>,
    %c8_i32_158 = arith.constant 8 : i32
    %c0_159 = arith.constant 0 : index
    %c0_160 = arith.constant 0 : index
    %390 = vector.load %arg8[%c0_159, %c0_160] : memref<8x128xf32, #tpu.memory_space<vmem>>, vector<8x128xf32>
    tpu.vector_store %arg8[%c0_159, %c0_160], %386 {strides = array<i32>} : memref<8x128xf32, #tpu.memory_space<vmem>>, vector<8x128xf32>,
    %c0_161 = arith.constant 0 : index
    %c0_162 = arith.constant 0 : index
    %391 = vector.load %arg9[%c0_161, %c0_162] : memref<8x128xf32, #tpu.memory_space<vmem>>, vector<8x128xf32>
    tpu.vector_store %arg9[%c0_161, %c0_162], %384 {strides = array<i32>} : memref<8x128xf32, #tpu.memory_space<vmem>>, vector<8x128xf32>,
    return
  }
  func.func @transform_0(%arg0: i32, %arg1: i32) -> (i32, i32) {
    %c2_i32 = arith.constant 2 : i32
    %0 = arith.muli %c2_i32, %arg1 : i32
    %c0_i32 = arith.constant 0 : i32
    %1 = arith.subi %c0_i32, %0 : i32
    %2 = arith.muli %arg0, %1 : i32
    %3 = arith.addi %arg1, %2 : i32
    %c0_i32_0 = arith.constant 0 : i32
    %c0_i32_1 = arith.constant 0 : i32
    return %3, %c0_i32_0 : i32, i32
  }
  func.func @transform_1(%arg0: i32, %arg1: i32) -> (i32, i32, i32) {
    %c0_i32 = arith.constant 0 : i32
    %c0_i32_0 = arith.constant 0 : i32
    %c0_i32_1 = arith.constant 0 : i32
    return %arg0, %c0_i32, %c0_i32_0 : i32, i32, i32
  }
  func.func @transform_2(%arg0: i32, %arg1: i32) -> (i32, i32, i32) {
    %c0_i32 = arith.constant 0 : i32
    %c0_i32_0 = arith.constant 0 : i32
    %c0_i32_1 = arith.constant 0 : i32
    return %arg0, %c0_i32, %c0_i32_0 : i32, i32, i32
  }
  func.func @transform_3(%arg0: i32, %arg1: i32) -> (i32, i32, i32) {
    %c0_i32 = arith.constant 0 : i32
    %c0_i32_0 = arith.constant 0 : i32
    %c0_i32_1 = arith.constant 0 : i32
    return %arg0, %c0_i32, %c0_i32_0 : i32, i32, i32
  }
  func.func @transform_4(%arg0: i32, %arg1: i32) -> (i32, i32) {
    %c2_i32 = arith.constant 2 : i32
    %0 = arith.muli %c2_i32, %arg1 : i32
    %c0_i32 = arith.constant 0 : i32
    %1 = arith.subi %c0_i32, %0 : i32
    %2 = arith.muli %arg0, %1 : i32
    %3 = arith.addi %arg1, %2 : i32
    %c0_i32_0 = arith.constant 0 : i32
    return %3, %arg0 : i32, i32
  }
}

module attributes {stable_mosaic.version = 11 : i64} {
  func.func @_lstm_layer_kernel(%arg0: i32, %arg1: i32, %arg2: memref<64x128xbf16, #tpu.memory_space<vmem>>, %arg3: memref<1x128x512xbf16, #tpu.memory_space<vmem>>, %arg4: memref<1x128x512xbf16, #tpu.memory_space<vmem>>, %arg5: memref<1x1x512xf32, #tpu.memory_space<vmem>>, %arg6: memref<64x128xbf16, #tpu.memory_space<vmem>>, %arg7: memref<64x512xf32, #tpu.memory_space<vmem>>, %arg8: memref<8x128xf32, #tpu.memory_space<vmem>>, %arg9: memref<8x128xf32, #tpu.memory_space<vmem>>) attributes {dimension_semantics = [#tpu.dimension_semantics<parallel>, #tpu.dimension_semantics<arbitrary>], iteration_bounds = array<i64: 2, 1>, scalar_prefetch = 0 : i64, scratch_operands = 3 : i64, tpu.core_type = #tpu.core_type<tc>, window_params = [{transform_indices = @transform_0, window_bounds = array<i64: 64, 128>}, {transform_indices = @transform_1, window_bounds = array<i64: 1, 128, 512>}, {transform_indices = @transform_2, window_bounds = array<i64: 1, 128, 512>}, {transform_indices = @transform_3, window_bounds = array<i64: 1, 1, 512>}, {transform_indices = @transform_4, window_bounds = array<i64: 64, 128>}]} {
    %c0_i32 = arith.constant 0 : i32
    %0 = arith.cmpi eq, %arg1, %c0_i32 : i32
    %1 = arith.extui %0 : i1 to i32
    %c0_i32_0 = arith.constant 0 : i32
    %2 = arith.cmpi ne, %1, %c0_i32_0 : i32
    scf.if %2 {
      %cst_163 = arith.constant 0.000000e+00 : f32
      %392 = vector.broadcast %cst_163 : f32 to vector<8x128xf32>
      %c0_164 = arith.constant 0 : index
      %c0_165 = arith.constant 0 : index
      %393 = vector.load %arg8[%c0_164, %c0_165] : memref<8x128xf32, #tpu.memory_space<vmem>>, vector<8x128xf32>
      tpu.vector_store %arg8[%c0_164, %c0_165], %392 {strides = array<i32>} : memref<8x128xf32, #tpu.memory_space<vmem>>, vector<8x128xf32>,
      %cst_166 = arith.constant 0.000000e+00 : f32
      %394 = vector.broadcast %cst_166 : f32 to vector<8x128xf32>
      %c0_167 = arith.constant 0 : index
      %c0_168 = arith.constant 0 : index
      %395 = vector.load %arg9[%c0_167, %c0_168] : memref<8x128xf32, #tpu.memory_space<vmem>>, vector<8x128xf32>
      tpu.vector_store %arg9[%c0_167, %c0_168], %394 {strides = array<i32>} : memref<8x128xf32, #tpu.memory_space<vmem>>, vector<8x128xf32>,
    } else {
    }
    %c0 = arith.constant 0 : index
    %c0_1 = arith.constant 0 : index
    %3 = vector.load %arg2[%c0, %c0_1] : memref<64x128xbf16, #tpu.memory_space<vmem>>, vector<64x128xbf16>
    %c0_2 = arith.constant 0 : index
    %c0_3 = arith.constant 0 : index
    %c0_4 = arith.constant 0 : index
    %4 = vector.load %arg3[%c0_2, %c0_3, %c0_4] : memref<1x128x512xbf16, #tpu.memory_space<vmem>>, vector<1x128x512xbf16>
    %5 = vector.shape_cast %4 : vector<1x128x512xbf16> to vector<128x512xbf16>
    %cst = arith.constant dense<0.000000e+00> : vector<64x512xf32>
    %6 = tpu.matmul %3, %5, %cst {dimension_numbers = #tpu.dot_dimension_numbers<[1], [0], [0], [1], [0, 0, 1, 1], [], []>} : vector<64x128xbf16>, vector<128x512xbf16>, vector<64x512xf32> -> vector<64x512xf32>
    %c0_5 = arith.constant 0 : index
    %c0_6 = arith.constant 0 : index
    %c0_7 = arith.constant 0 : index
    %7 = vector.load %arg5[%c0_5, %c0_6, %c0_7] : memref<1x1x512xf32, #tpu.memory_space<vmem>>, vector<1x1x512xf32>
    %8 = vector.shape_cast %7 : vector<1x1x512xf32> to vector<1x512xf32>
    %9 = vector.broadcast %8 : vector<1x512xf32> to vector<64x512xf32>
    %10 = arith.addf %6, %9 : vector<64x512xf32>
    %c0_8 = arith.constant 0 : index
    %c0_9 = arith.constant 0 : index
    %11 = vector.load %arg7[%c0_8, %c0_9] : memref<64x512xf32, #tpu.memory_space<vmem>>, vector<64x512xf32>
    tpu.vector_store %arg7[%c0_8, %c0_9], %10 {strides = array<i32>} : memref<64x512xf32, #tpu.memory_space<vmem>>, vector<64x512xf32>,
    %c0_10 = arith.constant 0 : index
    %c0_11 = arith.constant 0 : index
    %12 = vector.load %arg8[%c0_10, %c0_11] : memref<8x128xf32, #tpu.memory_space<vmem>>, vector<8x128xf32>
    %c0_12 = arith.constant 0 : index
    %c0_13 = arith.constant 0 : index
    %13 = vector.load %arg9[%c0_12, %c0_13] : memref<8x128xf32, #tpu.memory_space<vmem>>, vector<8x128xf32>
    %c0_i32_14 = arith.constant 0 : i32
    %c2_i32 = arith.constant 2 : i32
    %14 = arith.muli %c2_i32, %c0_i32_14 : i32
    %c7_i32 = arith.constant 7 : i32
    %15 = arith.subi %c7_i32, %14 : i32
    %16 = arith.muli %arg0, %15 : i32
    %17 = arith.addi %c0_i32_14, %16 : i32
    %c8_i32 = arith.constant 8 : i32
    %18 = arith.muli %17, %c8_i32 : i32
    %19 = tpu.assume_multiple %18, 8 : i32
    %20 = arith.index_cast %19 : i32 to index
    %c0_15 = arith.constant 0 : index
    %21 = vector.load %arg7[%20, %c0_15] : memref<64x512xf32, #tpu.memory_space<vmem>>, vector<8x512xf32>
    %22 = arith.truncf %12 : vector<8x128xf32> to vector<8x128xbf16>
    %c0_16 = arith.constant 0 : index
    %c0_17 = arith.constant 0 : index
    %c0_18 = arith.constant 0 : index
    %23 = vector.load %arg4[%c0_16, %c0_17, %c0_18] : memref<1x128x512xbf16, #tpu.memory_space<vmem>>, vector<1x128x512xbf16>
    %24 = vector.shape_cast %23 : vector<1x128x512xbf16> to vector<128x512xbf16>
    %cst_19 = arith.constant dense<0.000000e+00> : vector<8x512xf32>
    %25 = tpu.matmul %22, %24, %cst_19 {dimension_numbers = #tpu.dot_dimension_numbers<[1], [0], [0], [1], [0, 0, 1, 1], [], []>} : vector<8x128xbf16>, vector<128x512xbf16>, vector<8x512xf32> -> vector<8x512xf32>
    %26 = arith.addf %21, %25 : vector<8x512xf32>
    %27 = vector.extract_strided_slice %26 {offsets = [0, 0], sizes = [8, 128], strides = [1, 1]} : vector<8x512xf32> to vector<8x128xf32>
    %cst_20 = arith.constant 5.000000e-01 : f32
    %28 = vector.broadcast %cst_20 : f32 to vector<8x128xf32>
    %29 = arith.mulf %28, %27 : vector<8x128xf32>
    %30 = math.tanh %29 : vector<8x128xf32>
    %cst_21 = arith.constant 5.000000e-01 : f32
    %31 = vector.broadcast %cst_21 : f32 to vector<8x128xf32>
    %32 = arith.mulf %31, %30 : vector<8x128xf32>
    %cst_22 = arith.constant 5.000000e-01 : f32
    %33 = vector.broadcast %cst_22 : f32 to vector<8x128xf32>
    %34 = arith.addf %32, %33 : vector<8x128xf32>
    %35 = vector.extract_strided_slice %26 {offsets = [0, 128], sizes = [8, 128], strides = [1, 1]} : vector<8x512xf32> to vector<8x128xf32>
    %cst_23 = arith.constant 5.000000e-01 : f32
    %36 = vector.broadcast %cst_23 : f32 to vector<8x128xf32>
    %37 = arith.mulf %36, %35 : vector<8x128xf32>
    %38 = math.tanh %37 : vector<8x128xf32>
    %cst_24 = arith.constant 5.000000e-01 : f32
    %39 = vector.broadcast %cst_24 : f32 to vector<8x128xf32>
    %40 = arith.mulf %39, %38 : vector<8x128xf32>
    %cst_25 = arith.constant 5.000000e-01 : f32
    %41 = vector.broadcast %cst_25 : f32 to vector<8x128xf32>
    %42 = arith.addf %40, %41 : vector<8x128xf32>
    %43 = vector.extract_strided_slice %26 {offsets = [0, 256], sizes = [8, 128], strides = [1, 1]} : vector<8x512xf32> to vector<8x128xf32>
    %44 = math.tanh %43 : vector<8x128xf32>
    %45 = vector.extract_strided_slice %26 {offsets = [0, 384], sizes = [8, 128], strides = [1, 1]} : vector<8x512xf32> to vector<8x128xf32>
    %cst_26 = arith.constant 5.000000e-01 : f32
    %46 = vector.broadcast %cst_26 : f32 to vector<8x128xf32>
    %47 = arith.mulf %46, %45 : vector<8x128xf32>
    %48 = math.tanh %47 : vector<8x128xf32>
    %cst_27 = arith.constant 5.000000e-01 : f32
    %49 = vector.broadcast %cst_27 : f32 to vector<8x128xf32>
    %50 = arith.mulf %49, %48 : vector<8x128xf32>
    %cst_28 = arith.constant 5.000000e-01 : f32
    %51 = vector.broadcast %cst_28 : f32 to vector<8x128xf32>
    %52 = arith.addf %50, %51 : vector<8x128xf32>
    %53 = arith.mulf %42, %13 : vector<8x128xf32>
    %54 = arith.mulf %34, %44 : vector<8x128xf32>
    %55 = arith.addf %53, %54 : vector<8x128xf32>
    %56 = math.tanh %55 : vector<8x128xf32>
    %57 = arith.mulf %52, %56 : vector<8x128xf32>
    %58 = arith.truncf %57 : vector<8x128xf32> to vector<8x128xbf16>
    %59 = arith.index_cast %19 : i32 to index
    %c0_29 = arith.constant 0 : index
    %60 = vector.load %arg6[%59, %c0_29] : memref<64x128xbf16, #tpu.memory_space<vmem>>, vector<8x128xbf16>
    tpu.vector_store %arg6[%59, %c0_29], %58 {strides = array<i32>} : memref<64x128xbf16, #tpu.memory_space<vmem>>, vector<8x128xbf16>,
    %c1_i32 = arith.constant 1 : i32
    %c2_i32_30 = arith.constant 2 : i32
    %61 = arith.muli %c2_i32_30, %c1_i32 : i32
    %c7_i32_31 = arith.constant 7 : i32
    %62 = arith.subi %c7_i32_31, %61 : i32
    %63 = arith.muli %arg0, %62 : i32
    %64 = arith.addi %c1_i32, %63 : i32
    %c8_i32_32 = arith.constant 8 : i32
    %65 = arith.muli %64, %c8_i32_32 : i32
    %66 = tpu.assume_multiple %65, 8 : i32
    %67 = arith.index_cast %66 : i32 to index
    %c0_33 = arith.constant 0 : index
    %68 = vector.load %arg7[%67, %c0_33] : memref<64x512xf32, #tpu.memory_space<vmem>>, vector<8x512xf32>
    %69 = arith.truncf %57 : vector<8x128xf32> to vector<8x128xbf16>
    %c0_34 = arith.constant 0 : index
    %c0_35 = arith.constant 0 : index
    %c0_36 = arith.constant 0 : index
    %70 = vector.load %arg4[%c0_34, %c0_35, %c0_36] : memref<1x128x512xbf16, #tpu.memory_space<vmem>>, vector<1x128x512xbf16>
    %71 = vector.shape_cast %70 : vector<1x128x512xbf16> to vector<128x512xbf16>
    %cst_37 = arith.constant dense<0.000000e+00> : vector<8x512xf32>
    %72 = tpu.matmul %69, %71, %cst_37 {dimension_numbers = #tpu.dot_dimension_numbers<[1], [0], [0], [1], [0, 0, 1, 1], [], []>} : vector<8x128xbf16>, vector<128x512xbf16>, vector<8x512xf32> -> vector<8x512xf32>
    %73 = arith.addf %68, %72 : vector<8x512xf32>
    %74 = vector.extract_strided_slice %73 {offsets = [0, 0], sizes = [8, 128], strides = [1, 1]} : vector<8x512xf32> to vector<8x128xf32>
    %cst_38 = arith.constant 5.000000e-01 : f32
    %75 = vector.broadcast %cst_38 : f32 to vector<8x128xf32>
    %76 = arith.mulf %75, %74 : vector<8x128xf32>
    %77 = math.tanh %76 : vector<8x128xf32>
    %cst_39 = arith.constant 5.000000e-01 : f32
    %78 = vector.broadcast %cst_39 : f32 to vector<8x128xf32>
    %79 = arith.mulf %78, %77 : vector<8x128xf32>
    %cst_40 = arith.constant 5.000000e-01 : f32
    %80 = vector.broadcast %cst_40 : f32 to vector<8x128xf32>
    %81 = arith.addf %79, %80 : vector<8x128xf32>
    %82 = vector.extract_strided_slice %73 {offsets = [0, 128], sizes = [8, 128], strides = [1, 1]} : vector<8x512xf32> to vector<8x128xf32>
    %cst_41 = arith.constant 5.000000e-01 : f32
    %83 = vector.broadcast %cst_41 : f32 to vector<8x128xf32>
    %84 = arith.mulf %83, %82 : vector<8x128xf32>
    %85 = math.tanh %84 : vector<8x128xf32>
    %cst_42 = arith.constant 5.000000e-01 : f32
    %86 = vector.broadcast %cst_42 : f32 to vector<8x128xf32>
    %87 = arith.mulf %86, %85 : vector<8x128xf32>
    %cst_43 = arith.constant 5.000000e-01 : f32
    %88 = vector.broadcast %cst_43 : f32 to vector<8x128xf32>
    %89 = arith.addf %87, %88 : vector<8x128xf32>
    %90 = vector.extract_strided_slice %73 {offsets = [0, 256], sizes = [8, 128], strides = [1, 1]} : vector<8x512xf32> to vector<8x128xf32>
    %91 = math.tanh %90 : vector<8x128xf32>
    %92 = vector.extract_strided_slice %73 {offsets = [0, 384], sizes = [8, 128], strides = [1, 1]} : vector<8x512xf32> to vector<8x128xf32>
    %cst_44 = arith.constant 5.000000e-01 : f32
    %93 = vector.broadcast %cst_44 : f32 to vector<8x128xf32>
    %94 = arith.mulf %93, %92 : vector<8x128xf32>
    %95 = math.tanh %94 : vector<8x128xf32>
    %cst_45 = arith.constant 5.000000e-01 : f32
    %96 = vector.broadcast %cst_45 : f32 to vector<8x128xf32>
    %97 = arith.mulf %96, %95 : vector<8x128xf32>
    %cst_46 = arith.constant 5.000000e-01 : f32
    %98 = vector.broadcast %cst_46 : f32 to vector<8x128xf32>
    %99 = arith.addf %97, %98 : vector<8x128xf32>
    %100 = arith.mulf %89, %55 : vector<8x128xf32>
    %101 = arith.mulf %81, %91 : vector<8x128xf32>
    %102 = arith.addf %100, %101 : vector<8x128xf32>
    %103 = math.tanh %102 : vector<8x128xf32>
    %104 = arith.mulf %99, %103 : vector<8x128xf32>
    %105 = arith.truncf %104 : vector<8x128xf32> to vector<8x128xbf16>
    %106 = arith.index_cast %66 : i32 to index
    %c0_47 = arith.constant 0 : index
    %107 = vector.load %arg6[%106, %c0_47] : memref<64x128xbf16, #tpu.memory_space<vmem>>, vector<8x128xbf16>
    tpu.vector_store %arg6[%106, %c0_47], %105 {strides = array<i32>} : memref<64x128xbf16, #tpu.memory_space<vmem>>, vector<8x128xbf16>,
    %c2_i32_48 = arith.constant 2 : i32
    %c2_i32_49 = arith.constant 2 : i32
    %108 = arith.muli %c2_i32_49, %c2_i32_48 : i32
    %c7_i32_50 = arith.constant 7 : i32
    %109 = arith.subi %c7_i32_50, %108 : i32
    %110 = arith.muli %arg0, %109 : i32
    %111 = arith.addi %c2_i32_48, %110 : i32
    %c8_i32_51 = arith.constant 8 : i32
    %112 = arith.muli %111, %c8_i32_51 : i32
    %113 = tpu.assume_multiple %112, 8 : i32
    %114 = arith.index_cast %113 : i32 to index
    %c0_52 = arith.constant 0 : index
    %115 = vector.load %arg7[%114, %c0_52] : memref<64x512xf32, #tpu.memory_space<vmem>>, vector<8x512xf32>
    %116 = arith.truncf %104 : vector<8x128xf32> to vector<8x128xbf16>
    %c0_53 = arith.constant 0 : index
    %c0_54 = arith.constant 0 : index
    %c0_55 = arith.constant 0 : index
    %117 = vector.load %arg4[%c0_53, %c0_54, %c0_55] : memref<1x128x512xbf16, #tpu.memory_space<vmem>>, vector<1x128x512xbf16>
    %118 = vector.shape_cast %117 : vector<1x128x512xbf16> to vector<128x512xbf16>
    %cst_56 = arith.constant dense<0.000000e+00> : vector<8x512xf32>
    %119 = tpu.matmul %116, %118, %cst_56 {dimension_numbers = #tpu.dot_dimension_numbers<[1], [0], [0], [1], [0, 0, 1, 1], [], []>} : vector<8x128xbf16>, vector<128x512xbf16>, vector<8x512xf32> -> vector<8x512xf32>
    %120 = arith.addf %115, %119 : vector<8x512xf32>
    %121 = vector.extract_strided_slice %120 {offsets = [0, 0], sizes = [8, 128], strides = [1, 1]} : vector<8x512xf32> to vector<8x128xf32>
    %cst_57 = arith.constant 5.000000e-01 : f32
    %122 = vector.broadcast %cst_57 : f32 to vector<8x128xf32>
    %123 = arith.mulf %122, %121 : vector<8x128xf32>
    %124 = math.tanh %123 : vector<8x128xf32>
    %cst_58 = arith.constant 5.000000e-01 : f32
    %125 = vector.broadcast %cst_58 : f32 to vector<8x128xf32>
    %126 = arith.mulf %125, %124 : vector<8x128xf32>
    %cst_59 = arith.constant 5.000000e-01 : f32
    %127 = vector.broadcast %cst_59 : f32 to vector<8x128xf32>
    %128 = arith.addf %126, %127 : vector<8x128xf32>
    %129 = vector.extract_strided_slice %120 {offsets = [0, 128], sizes = [8, 128], strides = [1, 1]} : vector<8x512xf32> to vector<8x128xf32>
    %cst_60 = arith.constant 5.000000e-01 : f32
    %130 = vector.broadcast %cst_60 : f32 to vector<8x128xf32>
    %131 = arith.mulf %130, %129 : vector<8x128xf32>
    %132 = math.tanh %131 : vector<8x128xf32>
    %cst_61 = arith.constant 5.000000e-01 : f32
    %133 = vector.broadcast %cst_61 : f32 to vector<8x128xf32>
    %134 = arith.mulf %133, %132 : vector<8x128xf32>
    %cst_62 = arith.constant 5.000000e-01 : f32
    %135 = vector.broadcast %cst_62 : f32 to vector<8x128xf32>
    %136 = arith.addf %134, %135 : vector<8x128xf32>
    %137 = vector.extract_strided_slice %120 {offsets = [0, 256], sizes = [8, 128], strides = [1, 1]} : vector<8x512xf32> to vector<8x128xf32>
    %138 = math.tanh %137 : vector<8x128xf32>
    %139 = vector.extract_strided_slice %120 {offsets = [0, 384], sizes = [8, 128], strides = [1, 1]} : vector<8x512xf32> to vector<8x128xf32>
    %cst_63 = arith.constant 5.000000e-01 : f32
    %140 = vector.broadcast %cst_63 : f32 to vector<8x128xf32>
    %141 = arith.mulf %140, %139 : vector<8x128xf32>
    %142 = math.tanh %141 : vector<8x128xf32>
    %cst_64 = arith.constant 5.000000e-01 : f32
    %143 = vector.broadcast %cst_64 : f32 to vector<8x128xf32>
    %144 = arith.mulf %143, %142 : vector<8x128xf32>
    %cst_65 = arith.constant 5.000000e-01 : f32
    %145 = vector.broadcast %cst_65 : f32 to vector<8x128xf32>
    %146 = arith.addf %144, %145 : vector<8x128xf32>
    %147 = arith.mulf %136, %102 : vector<8x128xf32>
    %148 = arith.mulf %128, %138 : vector<8x128xf32>
    %149 = arith.addf %147, %148 : vector<8x128xf32>
    %150 = math.tanh %149 : vector<8x128xf32>
    %151 = arith.mulf %146, %150 : vector<8x128xf32>
    %152 = arith.truncf %151 : vector<8x128xf32> to vector<8x128xbf16>
    %153 = arith.index_cast %113 : i32 to index
    %c0_66 = arith.constant 0 : index
    %154 = vector.load %arg6[%153, %c0_66] : memref<64x128xbf16, #tpu.memory_space<vmem>>, vector<8x128xbf16>
    tpu.vector_store %arg6[%153, %c0_66], %152 {strides = array<i32>} : memref<64x128xbf16, #tpu.memory_space<vmem>>, vector<8x128xbf16>,
    %c3_i32 = arith.constant 3 : i32
    %c2_i32_67 = arith.constant 2 : i32
    %155 = arith.muli %c2_i32_67, %c3_i32 : i32
    %c7_i32_68 = arith.constant 7 : i32
    %156 = arith.subi %c7_i32_68, %155 : i32
    %157 = arith.muli %arg0, %156 : i32
    %158 = arith.addi %c3_i32, %157 : i32
    %c8_i32_69 = arith.constant 8 : i32
    %159 = arith.muli %158, %c8_i32_69 : i32
    %160 = tpu.assume_multiple %159, 8 : i32
    %161 = arith.index_cast %160 : i32 to index
    %c0_70 = arith.constant 0 : index
    %162 = vector.load %arg7[%161, %c0_70] : memref<64x512xf32, #tpu.memory_space<vmem>>, vector<8x512xf32>
    %163 = arith.truncf %151 : vector<8x128xf32> to vector<8x128xbf16>
    %c0_71 = arith.constant 0 : index
    %c0_72 = arith.constant 0 : index
    %c0_73 = arith.constant 0 : index
    %164 = vector.load %arg4[%c0_71, %c0_72, %c0_73] : memref<1x128x512xbf16, #tpu.memory_space<vmem>>, vector<1x128x512xbf16>
    %165 = vector.shape_cast %164 : vector<1x128x512xbf16> to vector<128x512xbf16>
    %cst_74 = arith.constant dense<0.000000e+00> : vector<8x512xf32>
    %166 = tpu.matmul %163, %165, %cst_74 {dimension_numbers = #tpu.dot_dimension_numbers<[1], [0], [0], [1], [0, 0, 1, 1], [], []>} : vector<8x128xbf16>, vector<128x512xbf16>, vector<8x512xf32> -> vector<8x512xf32>
    %167 = arith.addf %162, %166 : vector<8x512xf32>
    %168 = vector.extract_strided_slice %167 {offsets = [0, 0], sizes = [8, 128], strides = [1, 1]} : vector<8x512xf32> to vector<8x128xf32>
    %cst_75 = arith.constant 5.000000e-01 : f32
    %169 = vector.broadcast %cst_75 : f32 to vector<8x128xf32>
    %170 = arith.mulf %169, %168 : vector<8x128xf32>
    %171 = math.tanh %170 : vector<8x128xf32>
    %cst_76 = arith.constant 5.000000e-01 : f32
    %172 = vector.broadcast %cst_76 : f32 to vector<8x128xf32>
    %173 = arith.mulf %172, %171 : vector<8x128xf32>
    %cst_77 = arith.constant 5.000000e-01 : f32
    %174 = vector.broadcast %cst_77 : f32 to vector<8x128xf32>
    %175 = arith.addf %173, %174 : vector<8x128xf32>
    %176 = vector.extract_strided_slice %167 {offsets = [0, 128], sizes = [8, 128], strides = [1, 1]} : vector<8x512xf32> to vector<8x128xf32>
    %cst_78 = arith.constant 5.000000e-01 : f32
    %177 = vector.broadcast %cst_78 : f32 to vector<8x128xf32>
    %178 = arith.mulf %177, %176 : vector<8x128xf32>
    %179 = math.tanh %178 : vector<8x128xf32>
    %cst_79 = arith.constant 5.000000e-01 : f32
    %180 = vector.broadcast %cst_79 : f32 to vector<8x128xf32>
    %181 = arith.mulf %180, %179 : vector<8x128xf32>
    %cst_80 = arith.constant 5.000000e-01 : f32
    %182 = vector.broadcast %cst_80 : f32 to vector<8x128xf32>
    %183 = arith.addf %181, %182 : vector<8x128xf32>
    %184 = vector.extract_strided_slice %167 {offsets = [0, 256], sizes = [8, 128], strides = [1, 1]} : vector<8x512xf32> to vector<8x128xf32>
    %185 = math.tanh %184 : vector<8x128xf32>
    %186 = vector.extract_strided_slice %167 {offsets = [0, 384], sizes = [8, 128], strides = [1, 1]} : vector<8x512xf32> to vector<8x128xf32>
    %cst_81 = arith.constant 5.000000e-01 : f32
    %187 = vector.broadcast %cst_81 : f32 to vector<8x128xf32>
    %188 = arith.mulf %187, %186 : vector<8x128xf32>
    %189 = math.tanh %188 : vector<8x128xf32>
    %cst_82 = arith.constant 5.000000e-01 : f32
    %190 = vector.broadcast %cst_82 : f32 to vector<8x128xf32>
    %191 = arith.mulf %190, %189 : vector<8x128xf32>
    %cst_83 = arith.constant 5.000000e-01 : f32
    %192 = vector.broadcast %cst_83 : f32 to vector<8x128xf32>
    %193 = arith.addf %191, %192 : vector<8x128xf32>
    %194 = arith.mulf %183, %149 : vector<8x128xf32>
    %195 = arith.mulf %175, %185 : vector<8x128xf32>
    %196 = arith.addf %194, %195 : vector<8x128xf32>
    %197 = math.tanh %196 : vector<8x128xf32>
    %198 = arith.mulf %193, %197 : vector<8x128xf32>
    %199 = arith.truncf %198 : vector<8x128xf32> to vector<8x128xbf16>
    %200 = arith.index_cast %160 : i32 to index
    %c0_84 = arith.constant 0 : index
    %201 = vector.load %arg6[%200, %c0_84] : memref<64x128xbf16, #tpu.memory_space<vmem>>, vector<8x128xbf16>
    tpu.vector_store %arg6[%200, %c0_84], %199 {strides = array<i32>} : memref<64x128xbf16, #tpu.memory_space<vmem>>, vector<8x128xbf16>,
    %c4_i32 = arith.constant 4 : i32
    %c2_i32_85 = arith.constant 2 : i32
    %202 = arith.muli %c2_i32_85, %c4_i32 : i32
    %c7_i32_86 = arith.constant 7 : i32
    %203 = arith.subi %c7_i32_86, %202 : i32
    %204 = arith.muli %arg0, %203 : i32
    %205 = arith.addi %c4_i32, %204 : i32
    %c8_i32_87 = arith.constant 8 : i32
    %206 = arith.muli %205, %c8_i32_87 : i32
    %207 = tpu.assume_multiple %206, 8 : i32
    %208 = arith.index_cast %207 : i32 to index
    %c0_88 = arith.constant 0 : index
    %209 = vector.load %arg7[%208, %c0_88] : memref<64x512xf32, #tpu.memory_space<vmem>>, vector<8x512xf32>
    %210 = arith.truncf %198 : vector<8x128xf32> to vector<8x128xbf16>
    %c0_89 = arith.constant 0 : index
    %c0_90 = arith.constant 0 : index
    %c0_91 = arith.constant 0 : index
    %211 = vector.load %arg4[%c0_89, %c0_90, %c0_91] : memref<1x128x512xbf16, #tpu.memory_space<vmem>>, vector<1x128x512xbf16>
    %212 = vector.shape_cast %211 : vector<1x128x512xbf16> to vector<128x512xbf16>
    %cst_92 = arith.constant dense<0.000000e+00> : vector<8x512xf32>
    %213 = tpu.matmul %210, %212, %cst_92 {dimension_numbers = #tpu.dot_dimension_numbers<[1], [0], [0], [1], [0, 0, 1, 1], [], []>} : vector<8x128xbf16>, vector<128x512xbf16>, vector<8x512xf32> -> vector<8x512xf32>
    %214 = arith.addf %209, %213 : vector<8x512xf32>
    %215 = vector.extract_strided_slice %214 {offsets = [0, 0], sizes = [8, 128], strides = [1, 1]} : vector<8x512xf32> to vector<8x128xf32>
    %cst_93 = arith.constant 5.000000e-01 : f32
    %216 = vector.broadcast %cst_93 : f32 to vector<8x128xf32>
    %217 = arith.mulf %216, %215 : vector<8x128xf32>
    %218 = math.tanh %217 : vector<8x128xf32>
    %cst_94 = arith.constant 5.000000e-01 : f32
    %219 = vector.broadcast %cst_94 : f32 to vector<8x128xf32>
    %220 = arith.mulf %219, %218 : vector<8x128xf32>
    %cst_95 = arith.constant 5.000000e-01 : f32
    %221 = vector.broadcast %cst_95 : f32 to vector<8x128xf32>
    %222 = arith.addf %220, %221 : vector<8x128xf32>
    %223 = vector.extract_strided_slice %214 {offsets = [0, 128], sizes = [8, 128], strides = [1, 1]} : vector<8x512xf32> to vector<8x128xf32>
    %cst_96 = arith.constant 5.000000e-01 : f32
    %224 = vector.broadcast %cst_96 : f32 to vector<8x128xf32>
    %225 = arith.mulf %224, %223 : vector<8x128xf32>
    %226 = math.tanh %225 : vector<8x128xf32>
    %cst_97 = arith.constant 5.000000e-01 : f32
    %227 = vector.broadcast %cst_97 : f32 to vector<8x128xf32>
    %228 = arith.mulf %227, %226 : vector<8x128xf32>
    %cst_98 = arith.constant 5.000000e-01 : f32
    %229 = vector.broadcast %cst_98 : f32 to vector<8x128xf32>
    %230 = arith.addf %228, %229 : vector<8x128xf32>
    %231 = vector.extract_strided_slice %214 {offsets = [0, 256], sizes = [8, 128], strides = [1, 1]} : vector<8x512xf32> to vector<8x128xf32>
    %232 = math.tanh %231 : vector<8x128xf32>
    %233 = vector.extract_strided_slice %214 {offsets = [0, 384], sizes = [8, 128], strides = [1, 1]} : vector<8x512xf32> to vector<8x128xf32>
    %cst_99 = arith.constant 5.000000e-01 : f32
    %234 = vector.broadcast %cst_99 : f32 to vector<8x128xf32>
    %235 = arith.mulf %234, %233 : vector<8x128xf32>
    %236 = math.tanh %235 : vector<8x128xf32>
    %cst_100 = arith.constant 5.000000e-01 : f32
    %237 = vector.broadcast %cst_100 : f32 to vector<8x128xf32>
    %238 = arith.mulf %237, %236 : vector<8x128xf32>
    %cst_101 = arith.constant 5.000000e-01 : f32
    %239 = vector.broadcast %cst_101 : f32 to vector<8x128xf32>
    %240 = arith.addf %238, %239 : vector<8x128xf32>
    %241 = arith.mulf %230, %196 : vector<8x128xf32>
    %242 = arith.mulf %222, %232 : vector<8x128xf32>
    %243 = arith.addf %241, %242 : vector<8x128xf32>
    %244 = math.tanh %243 : vector<8x128xf32>
    %245 = arith.mulf %240, %244 : vector<8x128xf32>
    %246 = arith.truncf %245 : vector<8x128xf32> to vector<8x128xbf16>
    %247 = arith.index_cast %207 : i32 to index
    %c0_102 = arith.constant 0 : index
    %248 = vector.load %arg6[%247, %c0_102] : memref<64x128xbf16, #tpu.memory_space<vmem>>, vector<8x128xbf16>
    tpu.vector_store %arg6[%247, %c0_102], %246 {strides = array<i32>} : memref<64x128xbf16, #tpu.memory_space<vmem>>, vector<8x128xbf16>,
    %c5_i32 = arith.constant 5 : i32
    %c2_i32_103 = arith.constant 2 : i32
    %249 = arith.muli %c2_i32_103, %c5_i32 : i32
    %c7_i32_104 = arith.constant 7 : i32
    %250 = arith.subi %c7_i32_104, %249 : i32
    %251 = arith.muli %arg0, %250 : i32
    %252 = arith.addi %c5_i32, %251 : i32
    %c8_i32_105 = arith.constant 8 : i32
    %253 = arith.muli %252, %c8_i32_105 : i32
    %254 = tpu.assume_multiple %253, 8 : i32
    %255 = arith.index_cast %254 : i32 to index
    %c0_106 = arith.constant 0 : index
    %256 = vector.load %arg7[%255, %c0_106] : memref<64x512xf32, #tpu.memory_space<vmem>>, vector<8x512xf32>
    %257 = arith.truncf %245 : vector<8x128xf32> to vector<8x128xbf16>
    %c0_107 = arith.constant 0 : index
    %c0_108 = arith.constant 0 : index
    %c0_109 = arith.constant 0 : index
    %258 = vector.load %arg4[%c0_107, %c0_108, %c0_109] : memref<1x128x512xbf16, #tpu.memory_space<vmem>>, vector<1x128x512xbf16>
    %259 = vector.shape_cast %258 : vector<1x128x512xbf16> to vector<128x512xbf16>
    %cst_110 = arith.constant dense<0.000000e+00> : vector<8x512xf32>
    %260 = tpu.matmul %257, %259, %cst_110 {dimension_numbers = #tpu.dot_dimension_numbers<[1], [0], [0], [1], [0, 0, 1, 1], [], []>} : vector<8x128xbf16>, vector<128x512xbf16>, vector<8x512xf32> -> vector<8x512xf32>
    %261 = arith.addf %256, %260 : vector<8x512xf32>
    %262 = vector.extract_strided_slice %261 {offsets = [0, 0], sizes = [8, 128], strides = [1, 1]} : vector<8x512xf32> to vector<8x128xf32>
    %cst_111 = arith.constant 5.000000e-01 : f32
    %263 = vector.broadcast %cst_111 : f32 to vector<8x128xf32>
    %264 = arith.mulf %263, %262 : vector<8x128xf32>
    %265 = math.tanh %264 : vector<8x128xf32>
    %cst_112 = arith.constant 5.000000e-01 : f32
    %266 = vector.broadcast %cst_112 : f32 to vector<8x128xf32>
    %267 = arith.mulf %266, %265 : vector<8x128xf32>
    %cst_113 = arith.constant 5.000000e-01 : f32
    %268 = vector.broadcast %cst_113 : f32 to vector<8x128xf32>
    %269 = arith.addf %267, %268 : vector<8x128xf32>
    %270 = vector.extract_strided_slice %261 {offsets = [0, 128], sizes = [8, 128], strides = [1, 1]} : vector<8x512xf32> to vector<8x128xf32>
    %cst_114 = arith.constant 5.000000e-01 : f32
    %271 = vector.broadcast %cst_114 : f32 to vector<8x128xf32>
    %272 = arith.mulf %271, %270 : vector<8x128xf32>
    %273 = math.tanh %272 : vector<8x128xf32>
    %cst_115 = arith.constant 5.000000e-01 : f32
    %274 = vector.broadcast %cst_115 : f32 to vector<8x128xf32>
    %275 = arith.mulf %274, %273 : vector<8x128xf32>
    %cst_116 = arith.constant 5.000000e-01 : f32
    %276 = vector.broadcast %cst_116 : f32 to vector<8x128xf32>
    %277 = arith.addf %275, %276 : vector<8x128xf32>
    %278 = vector.extract_strided_slice %261 {offsets = [0, 256], sizes = [8, 128], strides = [1, 1]} : vector<8x512xf32> to vector<8x128xf32>
    %279 = math.tanh %278 : vector<8x128xf32>
    %280 = vector.extract_strided_slice %261 {offsets = [0, 384], sizes = [8, 128], strides = [1, 1]} : vector<8x512xf32> to vector<8x128xf32>
    %cst_117 = arith.constant 5.000000e-01 : f32
    %281 = vector.broadcast %cst_117 : f32 to vector<8x128xf32>
    %282 = arith.mulf %281, %280 : vector<8x128xf32>
    %283 = math.tanh %282 : vector<8x128xf32>
    %cst_118 = arith.constant 5.000000e-01 : f32
    %284 = vector.broadcast %cst_118 : f32 to vector<8x128xf32>
    %285 = arith.mulf %284, %283 : vector<8x128xf32>
    %cst_119 = arith.constant 5.000000e-01 : f32
    %286 = vector.broadcast %cst_119 : f32 to vector<8x128xf32>
    %287 = arith.addf %285, %286 : vector<8x128xf32>
    %288 = arith.mulf %277, %243 : vector<8x128xf32>
    %289 = arith.mulf %269, %279 : vector<8x128xf32>
    %290 = arith.addf %288, %289 : vector<8x128xf32>
    %291 = math.tanh %290 : vector<8x128xf32>
    %292 = arith.mulf %287, %291 : vector<8x128xf32>
    %293 = arith.truncf %292 : vector<8x128xf32> to vector<8x128xbf16>
    %294 = arith.index_cast %254 : i32 to index
    %c0_120 = arith.constant 0 : index
    %295 = vector.load %arg6[%294, %c0_120] : memref<64x128xbf16, #tpu.memory_space<vmem>>, vector<8x128xbf16>
    tpu.vector_store %arg6[%294, %c0_120], %293 {strides = array<i32>} : memref<64x128xbf16, #tpu.memory_space<vmem>>, vector<8x128xbf16>,
    %c6_i32 = arith.constant 6 : i32
    %c2_i32_121 = arith.constant 2 : i32
    %296 = arith.muli %c2_i32_121, %c6_i32 : i32
    %c7_i32_122 = arith.constant 7 : i32
    %297 = arith.subi %c7_i32_122, %296 : i32
    %298 = arith.muli %arg0, %297 : i32
    %299 = arith.addi %c6_i32, %298 : i32
    %c8_i32_123 = arith.constant 8 : i32
    %300 = arith.muli %299, %c8_i32_123 : i32
    %301 = tpu.assume_multiple %300, 8 : i32
    %302 = arith.index_cast %301 : i32 to index
    %c0_124 = arith.constant 0 : index
    %303 = vector.load %arg7[%302, %c0_124] : memref<64x512xf32, #tpu.memory_space<vmem>>, vector<8x512xf32>
    %304 = arith.truncf %292 : vector<8x128xf32> to vector<8x128xbf16>
    %c0_125 = arith.constant 0 : index
    %c0_126 = arith.constant 0 : index
    %c0_127 = arith.constant 0 : index
    %305 = vector.load %arg4[%c0_125, %c0_126, %c0_127] : memref<1x128x512xbf16, #tpu.memory_space<vmem>>, vector<1x128x512xbf16>
    %306 = vector.shape_cast %305 : vector<1x128x512xbf16> to vector<128x512xbf16>
    %cst_128 = arith.constant dense<0.000000e+00> : vector<8x512xf32>
    %307 = tpu.matmul %304, %306, %cst_128 {dimension_numbers = #tpu.dot_dimension_numbers<[1], [0], [0], [1], [0, 0, 1, 1], [], []>} : vector<8x128xbf16>, vector<128x512xbf16>, vector<8x512xf32> -> vector<8x512xf32>
    %308 = arith.addf %303, %307 : vector<8x512xf32>
    %309 = vector.extract_strided_slice %308 {offsets = [0, 0], sizes = [8, 128], strides = [1, 1]} : vector<8x512xf32> to vector<8x128xf32>
    %cst_129 = arith.constant 5.000000e-01 : f32
    %310 = vector.broadcast %cst_129 : f32 to vector<8x128xf32>
    %311 = arith.mulf %310, %309 : vector<8x128xf32>
    %312 = math.tanh %311 : vector<8x128xf32>
    %cst_130 = arith.constant 5.000000e-01 : f32
    %313 = vector.broadcast %cst_130 : f32 to vector<8x128xf32>
    %314 = arith.mulf %313, %312 : vector<8x128xf32>
    %cst_131 = arith.constant 5.000000e-01 : f32
    %315 = vector.broadcast %cst_131 : f32 to vector<8x128xf32>
    %316 = arith.addf %314, %315 : vector<8x128xf32>
    %317 = vector.extract_strided_slice %308 {offsets = [0, 128], sizes = [8, 128], strides = [1, 1]} : vector<8x512xf32> to vector<8x128xf32>
    %cst_132 = arith.constant 5.000000e-01 : f32
    %318 = vector.broadcast %cst_132 : f32 to vector<8x128xf32>
    %319 = arith.mulf %318, %317 : vector<8x128xf32>
    %320 = math.tanh %319 : vector<8x128xf32>
    %cst_133 = arith.constant 5.000000e-01 : f32
    %321 = vector.broadcast %cst_133 : f32 to vector<8x128xf32>
    %322 = arith.mulf %321, %320 : vector<8x128xf32>
    %cst_134 = arith.constant 5.000000e-01 : f32
    %323 = vector.broadcast %cst_134 : f32 to vector<8x128xf32>
    %324 = arith.addf %322, %323 : vector<8x128xf32>
    %325 = vector.extract_strided_slice %308 {offsets = [0, 256], sizes = [8, 128], strides = [1, 1]} : vector<8x512xf32> to vector<8x128xf32>
    %326 = math.tanh %325 : vector<8x128xf32>
    %327 = vector.extract_strided_slice %308 {offsets = [0, 384], sizes = [8, 128], strides = [1, 1]} : vector<8x512xf32> to vector<8x128xf32>
    %cst_135 = arith.constant 5.000000e-01 : f32
    %328 = vector.broadcast %cst_135 : f32 to vector<8x128xf32>
    %329 = arith.mulf %328, %327 : vector<8x128xf32>
    %330 = math.tanh %329 : vector<8x128xf32>
    %cst_136 = arith.constant 5.000000e-01 : f32
    %331 = vector.broadcast %cst_136 : f32 to vector<8x128xf32>
    %332 = arith.mulf %331, %330 : vector<8x128xf32>
    %cst_137 = arith.constant 5.000000e-01 : f32
    %333 = vector.broadcast %cst_137 : f32 to vector<8x128xf32>
    %334 = arith.addf %332, %333 : vector<8x128xf32>
    %335 = arith.mulf %324, %290 : vector<8x128xf32>
    %336 = arith.mulf %316, %326 : vector<8x128xf32>
    %337 = arith.addf %335, %336 : vector<8x128xf32>
    %338 = math.tanh %337 : vector<8x128xf32>
    %339 = arith.mulf %334, %338 : vector<8x128xf32>
    %340 = arith.truncf %339 : vector<8x128xf32> to vector<8x128xbf16>
    %341 = arith.index_cast %301 : i32 to index
    %c0_138 = arith.constant 0 : index
    %342 = vector.load %arg6[%341, %c0_138] : memref<64x128xbf16, #tpu.memory_space<vmem>>, vector<8x128xbf16>
    tpu.vector_store %arg6[%341, %c0_138], %340 {strides = array<i32>} : memref<64x128xbf16, #tpu.memory_space<vmem>>, vector<8x128xbf16>,
    %c7_i32_139 = arith.constant 7 : i32
    %c2_i32_140 = arith.constant 2 : i32
    %343 = arith.muli %c2_i32_140, %c7_i32_139 : i32
    %c7_i32_141 = arith.constant 7 : i32
    %344 = arith.subi %c7_i32_141, %343 : i32
    %345 = arith.muli %arg0, %344 : i32
    %346 = arith.addi %c7_i32_139, %345 : i32
    %c8_i32_142 = arith.constant 8 : i32
    %347 = arith.muli %346, %c8_i32_142 : i32
    %348 = tpu.assume_multiple %347, 8 : i32
    %349 = arith.index_cast %348 : i32 to index
    %c0_143 = arith.constant 0 : index
    %350 = vector.load %arg7[%349, %c0_143] : memref<64x512xf32, #tpu.memory_space<vmem>>, vector<8x512xf32>
    %351 = arith.truncf %339 : vector<8x128xf32> to vector<8x128xbf16>
    %c0_144 = arith.constant 0 : index
    %c0_145 = arith.constant 0 : index
    %c0_146 = arith.constant 0 : index
    %352 = vector.load %arg4[%c0_144, %c0_145, %c0_146] : memref<1x128x512xbf16, #tpu.memory_space<vmem>>, vector<1x128x512xbf16>
    %353 = vector.shape_cast %352 : vector<1x128x512xbf16> to vector<128x512xbf16>
    %cst_147 = arith.constant dense<0.000000e+00> : vector<8x512xf32>
    %354 = tpu.matmul %351, %353, %cst_147 {dimension_numbers = #tpu.dot_dimension_numbers<[1], [0], [0], [1], [0, 0, 1, 1], [], []>} : vector<8x128xbf16>, vector<128x512xbf16>, vector<8x512xf32> -> vector<8x512xf32>
    %355 = arith.addf %350, %354 : vector<8x512xf32>
    %356 = vector.extract_strided_slice %355 {offsets = [0, 0], sizes = [8, 128], strides = [1, 1]} : vector<8x512xf32> to vector<8x128xf32>
    %cst_148 = arith.constant 5.000000e-01 : f32
    %357 = vector.broadcast %cst_148 : f32 to vector<8x128xf32>
    %358 = arith.mulf %357, %356 : vector<8x128xf32>
    %359 = math.tanh %358 : vector<8x128xf32>
    %cst_149 = arith.constant 5.000000e-01 : f32
    %360 = vector.broadcast %cst_149 : f32 to vector<8x128xf32>
    %361 = arith.mulf %360, %359 : vector<8x128xf32>
    %cst_150 = arith.constant 5.000000e-01 : f32
    %362 = vector.broadcast %cst_150 : f32 to vector<8x128xf32>
    %363 = arith.addf %361, %362 : vector<8x128xf32>
    %364 = vector.extract_strided_slice %355 {offsets = [0, 128], sizes = [8, 128], strides = [1, 1]} : vector<8x512xf32> to vector<8x128xf32>
    %cst_151 = arith.constant 5.000000e-01 : f32
    %365 = vector.broadcast %cst_151 : f32 to vector<8x128xf32>
    %366 = arith.mulf %365, %364 : vector<8x128xf32>
    %367 = math.tanh %366 : vector<8x128xf32>
    %cst_152 = arith.constant 5.000000e-01 : f32
    %368 = vector.broadcast %cst_152 : f32 to vector<8x128xf32>
    %369 = arith.mulf %368, %367 : vector<8x128xf32>
    %cst_153 = arith.constant 5.000000e-01 : f32
    %370 = vector.broadcast %cst_153 : f32 to vector<8x128xf32>
    %371 = arith.addf %369, %370 : vector<8x128xf32>
    %372 = vector.extract_strided_slice %355 {offsets = [0, 256], sizes = [8, 128], strides = [1, 1]} : vector<8x512xf32> to vector<8x128xf32>
    %373 = math.tanh %372 : vector<8x128xf32>
    %374 = vector.extract_strided_slice %355 {offsets = [0, 384], sizes = [8, 128], strides = [1, 1]} : vector<8x512xf32> to vector<8x128xf32>
    %cst_154 = arith.constant 5.000000e-01 : f32
    %375 = vector.broadcast %cst_154 : f32 to vector<8x128xf32>
    %376 = arith.mulf %375, %374 : vector<8x128xf32>
    %377 = math.tanh %376 : vector<8x128xf32>
    %cst_155 = arith.constant 5.000000e-01 : f32
    %378 = vector.broadcast %cst_155 : f32 to vector<8x128xf32>
    %379 = arith.mulf %378, %377 : vector<8x128xf32>
    %cst_156 = arith.constant 5.000000e-01 : f32
    %380 = vector.broadcast %cst_156 : f32 to vector<8x128xf32>
    %381 = arith.addf %379, %380 : vector<8x128xf32>
    %382 = arith.mulf %371, %337 : vector<8x128xf32>
    %383 = arith.mulf %363, %373 : vector<8x128xf32>
    %384 = arith.addf %382, %383 : vector<8x128xf32>
    %385 = math.tanh %384 : vector<8x128xf32>
    %386 = arith.mulf %381, %385 : vector<8x128xf32>
    %387 = arith.truncf %386 : vector<8x128xf32> to vector<8x128xbf16>
    %388 = arith.index_cast %348 : i32 to index
    %c0_157 = arith.constant 0 : index
    %389 = vector.load %arg6[%388, %c0_157] : memref<64x128xbf16, #tpu.memory_space<vmem>>, vector<8x128xbf16>
    tpu.vector_store %arg6[%388, %c0_157], %387 {strides = array<i32>} : memref<64x128xbf16, #tpu.memory_space<vmem>>, vector<8x128xbf16>,
    %c8_i32_158 = arith.constant 8 : i32
    %c0_159 = arith.constant 0 : index
    %c0_160 = arith.constant 0 : index
    %390 = vector.load %arg8[%c0_159, %c0_160] : memref<8x128xf32, #tpu.memory_space<vmem>>, vector<8x128xf32>
    tpu.vector_store %arg8[%c0_159, %c0_160], %386 {strides = array<i32>} : memref<8x128xf32, #tpu.memory_space<vmem>>, vector<8x128xf32>,
    %c0_161 = arith.constant 0 : index
    %c0_162 = arith.constant 0 : index
    %391 = vector.load %arg9[%c0_161, %c0_162] : memref<8x128xf32, #tpu.memory_space<vmem>>, vector<8x128xf32>
    tpu.vector_store %arg9[%c0_161, %c0_162], %384 {strides = array<i32>} : memref<8x128xf32, #tpu.memory_space<vmem>>, vector<8x128xf32>,
    return
  }
  func.func @transform_0(%arg0: i32, %arg1: i32) -> (i32, i32) {
    %c2_i32 = arith.constant 2 : i32
    %0 = arith.muli %c2_i32, %arg1 : i32
    %c0_i32 = arith.constant 0 : i32
    %1 = arith.subi %c0_i32, %0 : i32
    %2 = arith.muli %arg0, %1 : i32
    %3 = arith.addi %arg1, %2 : i32
    %c0_i32_0 = arith.constant 0 : i32
    %c0_i32_1 = arith.constant 0 : i32
    return %3, %c0_i32_0 : i32, i32
  }
  func.func @transform_1(%arg0: i32, %arg1: i32) -> (i32, i32, i32) {
    %c0_i32 = arith.constant 0 : i32
    %c0_i32_0 = arith.constant 0 : i32
    %c0_i32_1 = arith.constant 0 : i32
    return %arg0, %c0_i32, %c0_i32_0 : i32, i32, i32
  }
  func.func @transform_2(%arg0: i32, %arg1: i32) -> (i32, i32, i32) {
    %c0_i32 = arith.constant 0 : i32
    %c0_i32_0 = arith.constant 0 : i32
    %c0_i32_1 = arith.constant 0 : i32
    return %arg0, %c0_i32, %c0_i32_0 : i32, i32, i32
  }
  func.func @transform_3(%arg0: i32, %arg1: i32) -> (i32, i32, i32) {
    %c0_i32 = arith.constant 0 : i32
    %c0_i32_0 = arith.constant 0 : i32
    %c0_i32_1 = arith.constant 0 : i32
    return %arg0, %c0_i32, %c0_i32_0 : i32, i32, i32
  }
  func.func @transform_4(%arg0: i32, %arg1: i32) -> (i32, i32) {
    %c2_i32 = arith.constant 2 : i32
    %0 = arith.muli %c2_i32, %arg1 : i32
    %c0_i32 = arith.constant 0 : i32
    %1 = arith.subi %c0_i32, %0 : i32
    %2 = arith.muli %arg0, %1 : i32
    %3 = arith.addi %arg1, %2 : i32
    %c0_i32_0 = arith.constant 0 : i32
    return %3, %arg0 : i32, i32
  }
}

</mosaic_0001>

<bundles_post_ra>
// kernel: tpu_custom_call.1
= control target key start
LH: loop header
LB: loop body
LE: loop exit
PB: predicated region body
PF: predicated region fallthrough
CT: control target
= control target key end

     0   :  { %9 = vsyncpa [#allocation6], 0  ;;  %s5123_s0 = inlined_call_operand.hbm [shape: bf16[64,128], index: 0, kind: input, shape index: {}]   ;;  %s5124_s1 = inlined_call_operand.hbm [shape: bf16[2,128,512], index: 1, kind: input, shape index: {}]   ;;  %s5125_s2 = inlined_call_operand.hbm [shape: bf16[2,128,512], index: 2, kind: input, shape index: {}]   ;;  %s5126_s3 = inlined_call_operand.vmem [shape: f32[2,1,512], index: 3, kind: input, shape index: {}]   ;;  %s5127_s4 = inlined_call_operand.hbm [shape: bf16[64,256], index: 4, kind: output, shape index: {}]  }
   0x1   :  { %11 = vsyncpa [#allocation6 + $0x1], 0 }
   0x2   :  { %12 = vsyncpa [#allocation9], 0 }
   0x3   :  { %13 = vsyncpa [#allocation7], 0 }
   0x4   :  { %15 = vsyncpa [#allocation7 + $0x1], 0  ;;  %s4371_s15 = smov 0   ;;  %s4373_s16 = smov 0  }
   0x5   :  { %s4375_s17 = smov 0   ;;  %s4377_s18 = smov 0  }
   0x6   :  { %s4379_s19 = smov 0   ;;  %s4381_s20 = smov 0  }
   0x7 LB: > { %s3425_s21 = sadd.s32 4294967295, %s4331_s20   ;;  %s3426_s22 = sadd.s32 4294967294, %s4331_s20   ;;  %s4331_s20 = sphi %s4381_s20, %s21_s20   ;;  %s4327_s19 = sphi %s4379_s19, %s5153_s19   ;;  %s4323_s18 = sphi %s4377_s18, %s5152_s18   ;;  %s4319_s17 = sphi %s4375_s17, %s5151_s17   ;;  %s4315_s16 = sphi %s4373_s16, %s5150_s16   ;;  %s4311_s15 = sphi %s4371_s15, %s5149_s15  }
   0x8   : > { %s33_s23 = sadd.s32 1, %s4327_s19  ;;  %s74_s24 = sadd.s32 1, %s4319_s17 }
   0x9   : > { %p35_p0 = scmp.ge.s32.totalorder %s33_s23, 2  ;;  %p87_p1 = scmp.ne.s32.totalorder %s4315_s16, %s4311_s15 }
   0xa   : > { %p4407_p2 = scmp.eq.s32.totalorder %s3425_s21, 0  ;;  %p172_p3 = scmp.ne.s32.totalorder %s4319_s17, %s4315_s16 }
   0xb   : > { %s5155_s23 = smov (%p35_p0, %s33_s23), 0  ;;  %p173_p5 = scmp.eq.s32.totalorder %s3425_s21, 1 }
   0xc   : > { %s5134_s25 = scalar_select %p4407_p2, 1, 0 }
   0xd   : > { %p4417_p4 = por %p4407_p2, %p87_p1  ;;  %s71_s27 = ssub.s32 %s4327_s19, %s5155_s23 }
   0xe   : > { %p179_p6 = scmp.eq.s32.totalorder %s3426_s22, 1  ;;  %p72_p7 = scmp.eq.s32.totalorder %s71_s27, 0 }
   0xf   : > { %s5135_s26 = scalar_select %p4417_p4, 1, 0 }
  0x10   : > { %p4423_p8 = por %p173_p5, %p172_p3  ;;  %p4427_p9 = por %p179_p6, %p87_p1 }
  0x11   : > { %p3427_p10 = scmp.ge.s32.totalorder %s4331_s20, 1  ;;  %p186_p11 = scmp.lt.s32.totalorder %s4331_s20, 3 }
  0x12   : > { %s5136_s28 = scalar_select %p4423_p8, 1, 0 }
  0x13   : > { %s5137_s29 = scalar_select %p4427_p9, 1, 0 }
  0x14   : > { %s4433_s30 = scalar_select %p72_p7, %s4319_s17, %s74_s24  }
  0x15   : > { %s3765_s5 = sshll.u32 %s4323_s18, 12  ;;  %p4442_p12 = pnand %p3427_p10, %p186_p11 }
  0x16   : > { %s4440_s8 = scalar_lea.hbm %s5124_s1, %s3765_s5  ;;  %s4333_s10 = smov [#allocation8]  }
  0x17   : > { %s5138_s9 = scalar_select %p4442_p12, 1, 0 }
  0x18   : > { %s201_s11 = sshll.u32 %s4333_s10, 4  ;;  %p3802_p13 = pneg %p4442_p12  ;;  %s4446_s11 = int_to_ptr.vmem [resolvable:$true] %s201_s11 }
  0x19   : > { %s4453_s14 = scalar_lea.hbm %s5125_s2, %s3765_s5  ;;  %s4334_s22 = smov [#allocation10]  }
  0x1a   : > { %p4458_p1 = pnand %p3802_p13, %p4417_p4  ;;  %s4463_s24 = sshll.u32 %s4334_s22, 4  ;;  %s218_s24 = int_to_ptr.vmem [resolvable:$true] %s4463_s24 }
  0x1b   : > { %s4157_s27 = scalar_lea.hbm %s4440_s8, 4096  ;;  %s4162_s7 = scalar_lea.hbm %s5124_s1, 8192 }
  0x1c   : > { %p4158_p5 = scmp.ne.s32.totalorder %s4440_s8, %s4157_s27  ;;  %p4159_p6 = pneg %p4458_p1 }
  0x1d   : > { %p4163_p11 = scmp.lt.u32.totalorder %s4440_s8, %s5124_s1  ;;  %p4164_p13 = scmp.lt.u32.totalorder %s4162_s7, %s4157_s27 }
  0x1e   : > { %p4160_p7 = pnand %p4159_p6, %p4158_p5  ;;  %p4166_p3 = scmp.lt.u32.totalorder %s4157_s27, %s4440_s8 }
  0x1f   : > { %p4165_p0 = por %p4164_p13, %p4163_p11 }
  0x20   : > { %p4161_p10 = pneg %p4160_p7 }
  0x21   : > { %p4167_p9 = por %p4166_p3, %p4165_p0 }
  0x23   : > { %p4168_p8 = pnand %p4167_p9, %p4161_p10 }
  0x25   : > { %4171 = shalt.err (!%p4168_p8)
}
  0x26   : > { %s4172_s13 = scalar_lea.vmem %s4446_s11, 4096  ;;  %p4180_p2 = scmp.lt.s32.totalorder %s4446_s11, %s4446_s11 }
  0x27   : > { %p4173_p5 = scmp.ne.s32.totalorder %s4446_s11, %s4172_s13  ;;  %p4181_p12 = scmp.lt.s32.totalorder %s4172_s13, %s4172_s13 }
  0x29   : > { %p4175_p7 = pnand %p4173_p5, %p4159_p6  ;;  %p4182_p11 = por %p4181_p12, %p4180_p2 }
  0x2b   : > { %p4176_p4 = pneg %p4175_p7 }
  0x2d   : > { %p4183_p13 = pnand %p4182_p11, %p4176_p4 }
  0x2f   : > { %4186 = shalt.err (!%p4183_p13)
}
  0x30   : > { %s4335_s22 = smov 256   ;;  %s4336_s27 = smov 16  }
  0x31   : > { %3805 = dma.hbm_to_vmem [thread:$0]  (!%p4458_p1), %s4440_s8, 4096, %s4446_s11, [#allocation9], %s4335_s22, %s4335_s22, %s4336_s27  }
  0x32   : > { %s4187_s5 = scalar_lea.hbm %s4453_s14, 4096  ;;  %s4192_s10 = scalar_lea.hbm %s5125_s2, 8192 }
  0x33   : > { %p4188_p2 = scmp.ne.s32.totalorder %s4453_s14, %s4187_s5  ;;  %p4193_p12 = scmp.lt.u32.totalorder %s4453_s14, %s5125_s2 }
  0x34   : > { %p4194_p0 = scmp.lt.u32.totalorder %s4192_s10, %s4187_s5  ;;  %p4196_p10 = scmp.lt.u32.totalorder %s4187_s5, %s4453_s14 }
  0x35   : > { %p4190_p4 = pnand %p4188_p2, %p4159_p6 }
  0x36   : > { %p4195_p3 = por %p4194_p0, %p4193_p12 }
  0x37   : > { %p4191_p9 = pneg %p4190_p4 }
  0x38   : > { %p4197_p5 = por %p4196_p10, %p4195_p3 }
  0x3a   : > { %p4198_p7 = pnand %p4197_p5, %p4191_p9 }
  0x3c   : > { %4201 = shalt.err (!%p4198_p7)
}
  0x3d   : > { %s4202_s8 = scalar_lea.vmem %s218_s24, 4096  ;;  %p4210_p4 = scmp.lt.s32.totalorder %s218_s24, %s218_s24 }
  0x3e   : > { %p4203_p11 = scmp.ne.s32.totalorder %s218_s24, %s4202_s8  ;;  %p4211_p8 = scmp.lt.s32.totalorder %s4202_s8, %s4202_s8 }
  0x40   : > { %p4205_p13 = pnand %p4203_p11, %p4159_p6  ;;  %p4212_p0 = por %p4211_p8, %p4210_p4 }
  0x42   : > { %p4206_p2 = pneg %p4205_p13 }
  0x44   : > { %p4213_p12 = pnand %p4212_p0, %p4206_p2 }
  0x46   : > { %4216 = shalt.err (!%p4213_p12)
}
  0x47   : > { %3808 = dma.hbm_to_vmem [thread:$0]  (!%p4458_p1), %s4453_s14, 4096, %s218_s24, [#allocation9], %s4335_s22, %s4335_s22, %s4336_s27  }
  0x48   : > { %p5140_p9 = scmp.lt.s32.totalorder %s4331_s20, 2  ;;  %p5141_p3 = scmp.eq.s32.totalorder %s4331_s20, 0 }
  0x49   : > { %s4337_s5 = smov [#allocation5]   ;;  %s4217_s12 = scalar_lea.hbm %s5123_s0, 512 }
  0x4a   : > { %p4516_p10 = pnand %p5141_p3, %p5140_p9  ;;  %s253_s6 = sshll.u32 %s4337_s5, 4  ;;  %s254_s6 = int_to_ptr.vmem [resolvable:$true] %s253_s6 }
  0x4b   : > { %p4218_p6 = scmp.ne.s32.totalorder %s5123_s0, %s4217_s12  ;;  %p4224_p7 = scmp.lt.u32.totalorder %s4217_s12, %s5123_s0 }
  0x4c   : > { %p4219_p1 = pneg %p4516_p10 }
  0x4e   : > { %p4220_p8 = pnand %p4219_p1, %p4218_p6 }
  0x50   : > { %p4221_p5 = pneg %p4220_p8 }
  0x52   : > { %p4226_p11 = pnand %p4224_p7, %p4221_p5 }
  0x54   : > { %4229 = shalt.err (!%p4226_p11)
}
  0x55   : > { %s4230_s22 = scalar_lea.vmem %s254_s6, 512  ;;  %s4237_s27 = scalar_lea.vmem %s254_s6, 1024 }
  0x56   : > { %p4231_p13 = scmp.ne.s32.totalorder %s254_s6, %s4230_s22  ;;  %p4238_p0 = scmp.lt.s32.totalorder %s254_s6, %s254_s6 }
  0x57   : > { %p4239_p12 = scmp.lt.s32.totalorder %s4237_s27, %s4230_s22 }
  0x58   : > { %p4233_p2 = pnand %p4231_p13, %p4219_p1 }
  0x59   : > { %p4240_p9 = por %p4239_p12, %p4238_p0 }
  0x5a   : > { %p4234_p4 = pneg %p4233_p2 }
  0x5c   : > { %p4241_p3 = pnand %p4240_p9, %p4234_p4 }
  0x5e   : > { %4244 = shalt.err (!%p4241_p3)
}
  0x5f   : > { %s4338_s8 = smov 64   ;;  %s4339_s5 = smov 4  }
  0x60   : > { %3812 = dma.hbm_to_vmem [thread:$0]  (!%p4516_p10), %s5123_s0, 512, %s254_s6, [#allocation6], %s4338_s8, %s4338_s8, %s4339_s5  }
  0x61   : > { %p5143_p6 = scmp.ne.s32.totalorder %s5138_s9, 0 }
  0x62   : > { %p5144_p1 = scmp.ne.s32.totalorder (!%p5143_p6), %s5134_s25, 0 }
  0x63   : > { %265 = sbr.rel (%p5143_p6) target bundleno = 2205 (0x89d), region = 36 }
  0x6a   : > { %4298 = dma.done.wait (%p5144_p1), [#allocation6], 512  }
  0x6b   : > { %4300 = vsyncadd (%p5144_p1), [#allocation6], 4294966784  ;;  %p5145_p8 = scmp.ne.s32.totalorder %s5135_s26, 0 }
  0x6d   : > { %4302 = dma.done.wait (%p5145_p8), [#allocation9], 8192  }
  0x6e   : > { %4304 = vsyncadd (%p5145_p8), [#allocation9], 4294959104  ;;  %v4340_v0 = vmov 0   ;;  %v3881_v1 = vld [vmem:[#allocation8 + $0x4] ss:$16 sps:$4 sm:$0xff]   ;;  %v3939_v44 = vld [vmem:[#allocation5 + $0x8] sm:$0xff]  }
  0x6f   : > { %607 = vmatprep.mubr.bf16.mxu0 %v4340_v0  ;;  %680 = vmatprep.mubr.bf16.mxu1 %v4340_v0  ;;  %v3883_v2 = vld [vmem:[#allocation8 + $0xc] ss:$16 sps:$4 sm:$0xff]   ;;  %v3885_v3 = vld [vmem:[#allocation8] ss:$16 sps:$4 sm:$0xff]   ;;  %v3886_v4 = vld [vmem:[#allocation8 + $0x8] ss:$16 sps:$4 sm:$0xff]  }
  0x70   : > { %575 = vmatprep.subr.bf16.mxu0 %v3881_v1  ;;  %648 = vmatprep.subr.bf16.mxu1 %v3883_v2  ;;  %v3887_v5 = vld [vmem:[#allocation8 + $0x24] ss:$16 sps:$4 sm:$0xff]   ;;  %v3889_v6 = vld [vmem:[#allocation8 + $0x2c] ss:$16 sps:$4 sm:$0xff]   ;;  %v3891_v7 = vld [vmem:[#allocation8 + $0x20] ss:$16 sps:$4 sm:$0xff]  }
  0x71   : > { %576 = vmatpush1.bf16.msra.mxu0 %v3885_v3  ;;  %649 = vmatpush1.bf16.msra.mxu1 %v3886_v4  ;;  %v3892_v8 = vld [vmem:[#allocation8 + $0x28] ss:$16 sps:$4 sm:$0xff]   ;;  %v3893_v9 = vld [vmem:[#allocation8 + $0x44] ss:$16 sps:$4 sm:$0xff]   ;;  %v3895_v10 = vld [vmem:[#allocation8 + $0x4c] ss:$16 sps:$4 sm:$0xff]  }
  0x72   : > { %577 = vmatprep.subr.bf16.mxu0 %v3887_v5  ;;  %650 = vmatprep.subr.bf16.mxu1 %v3889_v6  ;;  %v3897_v11 = vld [vmem:[#allocation8 + $0x40] ss:$16 sps:$4 sm:$0xff]   ;;  %v3898_v12 = vld [vmem:[#allocation8 + $0x48] ss:$16 sps:$4 sm:$0xff]   ;;  %v3899_v13 = vld [vmem:[#allocation8 + $0x64] ss:$16 sps:$4 sm:$0xff]  }
  0x73   : > { %v3901_v14 = vld [vmem:[#allocation8 + $0x6c] ss:$16 sps:$4 sm:$0xff]   ;;  %v3903_v15 = vld [vmem:[#allocation8 + $0x60] ss:$16 sps:$4 sm:$0xff]   ;;  %v3904_v16 = vld [vmem:[#allocation8 + $0x68] ss:$16 sps:$4 sm:$0xff]  }
  0x74   : > { %v3905_v17 = vld [vmem:[#allocation8 + $0x84] ss:$16 sps:$4 sm:$0xff]   ;;  %v3907_v18 = vld [vmem:[#allocation8 + $0x8c] ss:$16 sps:$4 sm:$0xff]   ;;  %v3909_v19 = vld [vmem:[#allocation8 + $0x80] ss:$16 sps:$4 sm:$0xff]  }
  0x75   : > { %578 = vmatpush1.bf16.msra.mxu0 %v3891_v7  ;;  %651 = vmatpush1.bf16.msra.mxu1 %v3892_v8  ;;  %v3910_v20 = vld [vmem:[#allocation8 + $0x88] ss:$16 sps:$4 sm:$0xff]   ;;  %v3911_v21 = vld [vmem:[#allocation8 + $0xa4] ss:$16 sps:$4 sm:$0xff]   ;;  %v3913_v22 = vld [vmem:[#allocation8 + $0xac] ss:$16 sps:$4 sm:$0xff]   ;;  %v371_v7 = vlaneseq }
  0x76   : > { %579 = vmatprep.subr.bf16.mxu0 %v3893_v9  ;;  %652 = vmatprep.subr.bf16.mxu1 %v3895_v10  ;;  %v3915_v23 = vld [vmem:[#allocation8 + $0xa0] ss:$16 sps:$4 sm:$0xff]   ;;  %v3916_v24 = vld [vmem:[#allocation8 + $0xa8] ss:$16 sps:$4 sm:$0xff]   ;;  %v3917_v25 = vld [vmem:[#allocation8 + $0xc4] ss:$16 sps:$4 sm:$0xff]  }
  0x77   : > { %v3919_v26 = vld [vmem:[#allocation8 + $0xcc] ss:$16 sps:$4 sm:$0xff]   ;;  %v3921_v27 = vld [vmem:[#allocation8 + $0xc0] ss:$16 sps:$4 sm:$0xff]   ;;  %v3922_v28 = vld [vmem:[#allocation8 + $0xc8] ss:$16 sps:$4 sm:$0xff]  }
  0x78   : > { %v3923_v29 = vld [vmem:[#allocation8 + $0xe4] ss:$16 sps:$4 sm:$0xff]   ;;  %v3925_v30 = vld [vmem:[#allocation8 + $0xec] ss:$16 sps:$4 sm:$0xff]   ;;  %v3927_v31 = vld [vmem:[#allocation8 + $0xe0] ss:$16 sps:$4 sm:$0xff]  }
  0x79   : > { %580 = vmatpush1.bf16.msra.mxu0 %v3897_v11  ;;  %653 = vmatpush1.bf16.msra.mxu1 %v3898_v12  ;;  %v3928_v32 = vld [vmem:[#allocation8 + $0xe8] ss:$16 sps:$4 sm:$0xff]   ;;  %v4548_v33 = vld [vmem:[#allocation10 + $0x4] ss:$16 sps:$4 sm:$0xff]   ;;  %v4550_v34 = vld [vmem:[#allocation10 + $0xc] ss:$16 sps:$4 sm:$0xff]  }
  0x7a   : > { %581 = vmatprep.subr.bf16.mxu0 %v3899_v13  ;;  %654 = vmatprep.subr.bf16.mxu1 %v3901_v14  ;;  %v3929_v35 = vld [vmem:[#allocation5] sm:$0xff]   ;;  %v4554_v37 = vld [vmem:[#allocation10 + $0x8] ss:$16 sps:$4 sm:$0xff]   ;;  %v4560_v39 = vld [vmem:[#allocation10 + $0x2c] ss:$16 sps:$4 sm:$0xff]   ;;  %v4341_v6 = vmov 0.0|0.0  }
  0x7b   : > { %v4552_v36 = vld [vmem:[#allocation10] ss:$16 sps:$4 sm:$0xff]   ;;  %v4558_v38 = vld [vmem:[#allocation10 + $0x24] ss:$16 sps:$4 sm:$0xff]   ;;  %v4566_v41 = vld [vmem:[#allocation10 + $0x28] ss:$16 sps:$4 sm:$0xff]  }
  0x7c   : > { %v4562_v40 = vld [vmem:[#allocation10 + $0x20] ss:$16 sps:$4 sm:$0xff]   ;;  %v4570_v42 = vld [vmem:[#allocation10 + $0x44] ss:$16 sps:$4 sm:$0xff]   ;;  %v4572_v43 = vld [vmem:[#allocation10 + $0x4c] ss:$16 sps:$4 sm:$0xff]  }
  0x7d   : > { %582 = vmatpush1.bf16.msra.mxu0 %v3903_v15  ;;  %655 = vmatpush1.bf16.msra.mxu1 %v3904_v16  ;;  %v4576_v45 = vld [vmem:[#allocation10 + $0x40] ss:$16 sps:$4 sm:$0xff]   ;;  %v4580_v46 = vld [vmem:[#allocation10 + $0x48] ss:$16 sps:$4 sm:$0xff]   ;;  %v4584_v47 = vld [vmem:[#allocation10 + $0x64] ss:$16 sps:$4 sm:$0xff]  }
  0x7e   : > { %583 = vmatprep.subr.bf16.mxu0 %v3905_v17  ;;  %656 = vmatprep.subr.bf16.mxu1 %v3907_v18  ;;  %v4586_v48 = vld [vmem:[#allocation10 + $0x6c] ss:$16 sps:$4 sm:$0xff]   ;;  %v4588_v49 = vld [vmem:[#allocation10 + $0x60] ss:$16 sps:$4 sm:$0xff]   ;;  %v4590_v50 = vld [vmem:[#allocation10 + $0x68] ss:$16 sps:$4 sm:$0xff]  }
  0x7f   : > { %v4594_v51 = vld [vmem:[#allocation10 + $0x84] ss:$16 sps:$4 sm:$0xff]   ;;  %v4598_v52 = vld [vmem:[#allocation10 + $0x8c] ss:$16 sps:$4 sm:$0xff]   ;;  %v4602_v54 = vld [vmem:[#allocation10 + $0x80] ss:$16 sps:$4 sm:$0xff]  }
  0x80   : > { %v3952_v53 = vld [vmem:[#allocation5 + $0x10] sm:$0xff]   ;;  %v4604_v55 = vld [vmem:[#allocation10 + $0x88] ss:$16 sps:$4 sm:$0xff]   ;;  %v4610_v57 = vld [vmem:[#allocation10 + $0xac] ss:$16 sps:$4 sm:$0xff]   ;;  %p313_p10 = scmp.lt.s32.totalorder %s4323_s18, 1 }
  0x81   : > { %584 = vmatpush1.bf16.msra.mxu0 %v3909_v19  ;;  %657 = vmatpush1.bf16.msra.mxu1 %v3910_v20  ;;  %v4606_v56 = vld [vmem:[#allocation10 + $0xa4] ss:$16 sps:$4 sm:$0xff]   ;;  %v4614_v58 = vld [vmem:[#allocation10 + $0xa0] ss:$16 sps:$4 sm:$0xff]   ;;  %v4616_v59 = vld [vmem:[#allocation10 + $0xa8] ss:$16 sps:$4 sm:$0xff]  }
  0x82   : > { %585 = vmatprep.subr.bf16.mxu0 %v3911_v21  ;;  %658 = vmatprep.subr.bf16.mxu1 %v3913_v22  ;;  %v4618_v60 = vld [vmem:[#allocation10 + $0xc4] ss:$16 sps:$4 sm:$0xff]   ;;  %v4620_v61 = vld [vmem:[#allocation10 + $0xcc] ss:$16 sps:$4 sm:$0xff]   ;;  %v4628_v63 = vld [vmem:[#allocation10 + $0xc0] ss:$16 sps:$4 sm:$0xff]  }
  0x83   : > { %v3965_v62 = vld [vmem:[#allocation5 + $0x18] sm:$0xff]   ;;  %v4632_v2 = vld [vmem:[#allocation10 + $0xe4] ss:$16 sps:$4 sm:$0xff]   ;;  %v4640_v4 = vld [vmem:[#allocation10 + $0xe0] ss:$16 sps:$4 sm:$0xff]   ;;  %s314_s25 = scalar_select %p313_p10, %s4323_s18, 1 }
  0x84   : > { %v4630_v1 = vld [vmem:[#allocation10 + $0xc8] ss:$16 sps:$4 sm:$0xff]   ;;  %v4636_v3 = vld [vmem:[#allocation10 + $0xec] ss:$16 sps:$4 sm:$0xff]   ;;  %v372_v8 = vshrl.u32 %v371_v7, 7  ;;  %s755_s12 = smul.u32 56, %s4323_s18 }
  0x85   : > { %586 = vmatpush1.bf16.msra.mxu0 %v3915_v23  ;;  %659 = vmatpush1.bf16.msra.mxu1 %v3916_v24  ;;  %v4642_v5 = vld [vmem:[#allocation10 + $0xe8] ss:$16 sps:$4 sm:$0xff]   ;;  %s3437_s26 = sshll.u32 %s314_s25, 2  ;;  %s305_s24 = sand.u32 1, %s4315_s16  }
  0x86   : > { %587 = vmatprep.subr.bf16.mxu0 %v3917_v25  ;;  %660 = vmatprep.subr.bf16.mxu1 %v3919_v26  ;;  %s316_s6 = scalar_lea.vmem %s5126_s3, %s3437_s26  ;;  %v373_v9 = vsub.s32 0, %v372_v8  ;;  %v381_v10 = vsub.s32 2, %v372_v8  ;;  %v377_v12 = vsub.s32 1, %v372_v8  ;;  %v385_v13 = vsub.s32 3, %v372_v8  ;;  %s4734_s13 = sshra.s32 %s755_s12, 3 }
  0x87   : > { %v369_v11 = vld [vmem:[%s316_s6] sm:$0xf]  ;;  %s3767_s21 = sshll.u32 %s4734_s13, 5  ;;  %s3436_s22 = sshll.u32 %s305_s24, 5 }
  0x88   : > { %v4693_v14 = vrot.slane %v369_v11, %v373_v9  ;;  %v4695_v15 = vrot.slane %v369_v11, %v381_v10  ;;  %v4697_v16 = vrot.slane %v369_v11, %v377_v12  ;;  %v4699_v17 = vrot.slane %v369_v11, %v385_v13  ;;  %s760_s14 = scalar_lea.vmem [#allocation2], %s3767_s21  ;;  %s3508_s27 = sshll.u32 %s4734_s13, 2 }
  0x89   : > { %588 = vmatpush1.bf16.msra.mxu0 %v3921_v27  ;;  %661 = vmatpush1.bf16.msra.mxu1 %v3922_v28  ;;  %s4744_s8 = scalar_lea.vmem [#allocation11], %s3436_s22  ;;  %s3787_s7 = smul.u32 40, %s4323_s18 }
  0x8a   : > { %589 = vmatprep.subr.bf16.mxu0 %v3923_v29  ;;  %662 = vmatprep.subr.bf16.mxu1 %v3925_v30  ;;  %s1064_s5 = scalar_lea.vmem %s4744_s8, %s3508_s27 [#allocation11]  ;;  %s3788_s12 = smul.u32 24, %s4323_s18 }
  0x8b   : > { %s4780_s10 = sadd.s32 8, %s3787_s7  ;;  %s3774_s7 = sshll.u32 %s4323_s18, 3 }
  0x8c   : > { %s1069_s25 = sshra.s32 %s4780_s10, 3  ;;  %s4893_s13 = sadd.s32 16, %s3788_s12 }
  0x8d   : > { %590 = vmatpush1.bf16.msra.mxu0 %v3927_v31  ;;  %663 = vmatpush1.bf16.msra.mxu1 %v3928_v32  ;;  %s3770_s26 = sshll.u32 %s1069_s25, 5  ;;  %s3544_s11 = sshll.u32 %s1069_s25, 2 }
  0x8e   : > { %958 = vmatprep.subr.bf16.mxu0 %v4548_v33  ;;  %999 = vmatprep.subr.bf16.mxu1 %v4550_v34  ;;  %s1073_s9 = scalar_lea.vmem [#allocation2], %s3770_s26  ;;  %s1376_s6 = scalar_lea.vmem %s4744_s8, %s3544_s11 [#allocation11] }
  0x8f   : > { %s1381_s21 = sshra.s32 %s4893_s13, 3  ;;  %s4940_s10 = sadd.s32 24, %s3774_s7 }
  0x90   : > { %608 = vmatmul.mubr.bf16.vlgmr.msra.gmra.mrb[0].mxu0 %v3929_v35  ;;  %681 = vmatmul.mubr.bf16.vlgmr.msra.gmra.mrb[0].mxu1 %v3929_v35  ;;  %s3580_s27 = sshll.u32 %s1381_s21, 2  ;;  %s1692_s25 = sshra.s32 %s4940_s10, 3 }
  0x91   : > { %959 = vmatpush1.bf16.msra.mxu0 %v4552_v36  ;;  %1000 = vmatpush1.bf16.msra.mxu1 %v4554_v37  ;;  %s3776_s26 = sshll.u32 %s1692_s25, 5  ;;  %s3616_s11 = sshll.u32 %s1692_s25, 2 }
  0x92   : > { %960 = vmatprep.subr.bf16.mxu0 %v4558_v38  ;;  %617 = vmatprep.mubr.bf16.mxu0 %v4340_v0  ;;  %s2001_s12 = ssub.s32 4, %s4323_s18  ;;  %s3789_s7 = smul.u32 4294967272, %s4323_s18 }
  0x93   : > { %690 = vmatprep.mubr.bf16.mxu1 %v4340_v0  ;;  %1001 = vmatprep.subr.bf16.mxu1 %v4560_v39  ;;  %s4987_s13 = sshll.u32 %s2001_s12, 3  ;;  %s3790_s12 = smul.u32 4294967256, %s4323_s18 }
  0x94   : > { %s5032_s10 = sadd.s32 40, %s3789_s7  ;;  %s3791_s7 = smul.u32 4294967240, %s4323_s18 }
  0x95   : > { %961 = vmatpush1.bf16.msra.mxu0 %v4562_v40  ;;  %1002 = vmatpush1.bf16.msra.mxu1 %v4566_v41  ;;  %s2315_s25 = sshra.s32 %s5032_s10, 3  ;;  %p5146_p7 = scmp.ne.s32.totalorder %s5136_s28, 0 }
  0x96   : > { %962 = vmatprep.subr.bf16.mxu0 %v4570_v42  ;;  %1003 = vmatprep.subr.bf16.mxu1 %v4572_v43  ;;  %s5057_s10 = sadd.s32 56, %s3791_s7 }
  0x98   : > { %618 = vmatmul.mubr.bf16.gmra.mrb[4].mxu0 %v3939_v44  ;;  %691 = vmatmul.mubr.bf16.gmra.mrb[4].mxu1 %v3939_v44 }
  0x99   : > { %963 = vmatpush1.bf16.msra.mxu0 %v4576_v45  ;;  %1004 = vmatpush1.bf16.msra.mxu1 %v4580_v46 }
  0x9a   : > { %964 = vmatprep.subr.bf16.mxu0 %v4584_v47  ;;  %627 = vmatprep.mubr.bf16.mxu0 %v4340_v0 }
  0x9b   : > { %700 = vmatprep.mubr.bf16.mxu1 %v4340_v0  ;;  %1005 = vmatprep.subr.bf16.mxu1 %v4586_v48 }
  0x9d   : > { %965 = vmatpush1.bf16.msra.mxu0 %v4588_v49  ;;  %1006 = vmatpush1.bf16.msra.mxu1 %v4590_v50 }
  0x9e   : > { %966 = vmatprep.subr.bf16.mxu0 %v4594_v51  ;;  %1007 = vmatprep.subr.bf16.mxu1 %v4598_v52 }
  0xa0   : > { %628 = vmatmul.mubr.bf16.gmra.mrb[8].mxu0 %v3952_v53  ;;  %701 = vmatmul.mubr.bf16.gmra.mrb[8].mxu1 %v3952_v53 }
  0xa1   : > { %967 = vmatpush1.bf16.msra.mxu0 %v4602_v54  ;;  %1008 = vmatpush1.bf16.msra.mxu1 %v4604_v55 }
  0xa2   : > { %968 = vmatprep.subr.bf16.mxu0 %v4606_v56  ;;  %637 = vmatprep.mubr.bf16.mxu0 %v4340_v0 }
  0xa3   : > { %710 = vmatprep.mubr.bf16.mxu1 %v4340_v0  ;;  %1009 = vmatprep.subr.bf16.mxu1 %v4610_v57 }
  0xa5   : > { %969 = vmatpush1.bf16.msra.mxu0 %v4614_v58  ;;  %1010 = vmatpush1.bf16.msra.mxu1 %v4616_v59 }
  0xa6   : > { %970 = vmatprep.subr.bf16.mxu0 %v4618_v60  ;;  %1011 = vmatprep.subr.bf16.mxu1 %v4620_v61 }
  0xa8   : > { %638 = vmatmul.mubr.bf16.gmra.mrb[12].mxu0 %v3965_v62  ;;  %711 = vmatmul.mubr.bf16.gmra.mrb[12].mxu1 %v3965_v62 }
  0xa9   : > { %971 = vmatpush1.bf16.msra.mxu0 %v4628_v63  ;;  %1012 = vmatpush1.bf16.msra.mxu1 %v4630_v1 }
  0xaa   : > { %972 = vmatprep.subr.bf16.mxu0 %v4632_v2  ;;  %990 = vmatprep.mubr.bf16.mxu0 %v4340_v0 }
  0xab   : > { %1013 = vmatprep.subr.bf16.mxu1 %v4636_v3  ;;  %1031 = vmatprep.mubr.bf16.mxu1 %v4340_v0 }
  0xad   : > { %973 = vmatpush1.bf16.msra.mxu0 %v4640_v4  ;;  %1014 = vmatpush1.bf16.msra.mxu1 %v4642_v5 }
  0xae   : > { %1270 = vmatprep.subr.bf16.mxu0 %v4548_v33  ;;  %1311 = vmatprep.subr.bf16.mxu1 %v4550_v34 }
  0xb0   : > { %991 = vmatmul.mubr.bf16.vlgmr.msra.gmra.mrb[16].mxu0 %v4341_v6  ;;  %1032 = vmatmul.mubr.bf16.vlgmr.msra.gmra.mrb[16].mxu1 %v4341_v6 }
  0xb1   : > { %1271 = vmatpush1.bf16.msra.mxu0 %v4552_v36  ;;  %1312 = vmatpush1.bf16.msra.mxu1 %v4554_v37 }
  0xb2   : > { %1272 = vmatprep.subr.bf16.mxu0 %v4558_v38  ;;  %1313 = vmatprep.subr.bf16.mxu1 %v4560_v39 }
  0xb3   : > { %1302 = vmatprep.mubr.bf16.mxu0 %v4340_v0  ;;  %1343 = vmatprep.mubr.bf16.mxu1 %v4340_v0 }
  0xb5   : > { %1273 = vmatpush1.bf16.msra.mxu0 %v4562_v40  ;;  %1314 = vmatpush1.bf16.msra.mxu1 %v4566_v41 }
  0xb6   : > { %1274 = vmatprep.subr.bf16.mxu0 %v4570_v42  ;;  %1315 = vmatprep.subr.bf16.mxu1 %v4572_v43 }
  0xb9   : > { %1275 = vmatpush1.bf16.msra.mxu0 %v4576_v45  ;;  %1316 = vmatpush1.bf16.msra.mxu1 %v4580_v46 }
  0xba   : > { %1276 = vmatprep.subr.bf16.mxu0 %v4584_v47  ;;  %1317 = vmatprep.subr.bf16.mxu1 %v4586_v48 }
  0xbd   : > { %1277 = vmatpush1.bf16.msra.mxu0 %v4588_v49  ;;  %1318 = vmatpush1.bf16.msra.mxu1 %v4590_v50 }
  0xbe   : > { %1278 = vmatprep.subr.bf16.mxu0 %v4594_v51  ;;  %1319 = vmatprep.subr.bf16.mxu1 %v4598_v52 }
  0xc1   : > { %1279 = vmatpush1.bf16.msra.mxu0 %v4602_v54  ;;  %1320 = vmatpush1.bf16.msra.mxu1 %v4604_v55 }
  0xc2   : > { %1280 = vmatprep.subr.bf16.mxu0 %v4606_v56  ;;  %1321 = vmatprep.subr.bf16.mxu1 %v4610_v57 }
  0xc5   : > { %1281 = vmatpush1.bf16.msra.mxu0 %v4614_v58  ;;  %1322 = vmatpush1.bf16.msra.mxu1 %v4616_v59 }
  0xc6   : > { %1282 = vmatprep.subr.bf16.mxu0 %v4618_v60  ;;  %1323 = vmatprep.subr.bf16.mxu1 %v4620_v61 }
  0xc9   : > { %1283 = vmatpush1.bf16.msra.mxu0 %v4628_v63  ;;  %1324 = vmatpush1.bf16.msra.mxu1 %v4630_v1 }
  0xca   : > { %1284 = vmatprep.subr.bf16.mxu0 %v4632_v2  ;;  %1325 = vmatprep.subr.bf16.mxu1 %v4636_v3 }
  0xcd   : > { %1285 = vmatpush1.bf16.msra.mxu0 %v4640_v4  ;;  %1326 = vmatpush1.bf16.msra.mxu1 %v4642_v5 }
  0xce   : > { %1582 = vmatprep.subr.bf16.mxu0 %v4548_v33  ;;  %1623 = vmatprep.subr.bf16.mxu1 %v4550_v34 }
 0x163   : > { %v609_v18 = vpop.f32.mrb[0].mxu0  ;;  %v682_v19 = vpop.f32.mrb[0].mxu1 }
 0x164   : > { %v610_v20 = vadd.f32 %v609_v18, %v4693_v14  ;;  %v683_v21 = vadd.f32 %v682_v19, %v4695_v15  ;;  %v611_v22 = vpop.f32.mrb[1].mxu0  ;;  %v684_v23 = vpop.f32.mrb[1].mxu1 }
 0x165   : > { %v612_v24 = vadd.f32 %v611_v22, %v4697_v16  ;;  %v685_v25 = vadd.f32 %v684_v23, %v4699_v17  ;;  %v613_v26 = vpop.f32.mrb[2].mxu0  ;;  %v686_v27 = vpop.f32.mrb[2].mxu1 }
 0x166   : > { %721 = vst [vmem:[#allocation2] sm:$0xff] %v610_v20  ;;  %723 = vst [vmem:[#allocation2 + $0x10] sm:$0xff] %v683_v21  ;;  %v614_v28 = vadd.f32 %v613_v26, %v4693_v14  ;;  %v687_v29 = vadd.f32 %v686_v27, %v4695_v15  ;;  %v615_v30 = vpop.f32.mrb[3].mxu0  ;;  %v688_v31 = vpop.f32.mrb[3].mxu1 }
 0x167   : > { %722 = vst [vmem:[#allocation2 + $0x8] sm:$0xff] %v612_v24  ;;  %724 = vst [vmem:[#allocation2 + $0x18] sm:$0xff] %v685_v25  ;;  %v616_v32 = vadd.f32 %v615_v30, %v4697_v16  ;;  %v689_v33 = vadd.f32 %v688_v31, %v4699_v17 }
 0x168   : > { %725 = vst [vmem:[#allocation2 + $0x20] sm:$0xff] %v614_v28  ;;  %727 = vst [vmem:[#allocation2 + $0x30] sm:$0xff] %v687_v29 }
 0x169   : > { %726 = vst [vmem:[#allocation2 + $0x28] sm:$0xff] %v616_v32  ;;  %728 = vst [vmem:[#allocation2 + $0x38] sm:$0xff] %v689_v33 }
 0x16b   : > { %v619_v34 = vpop.f32.mrb[4].mxu0  ;;  %v692_v35 = vpop.f32.mrb[4].mxu1 }
 0x16c   : > { %v620_v44 = vadd.f32 %v619_v34, %v4693_v14  ;;  %v693_v53 = vadd.f32 %v692_v35, %v4695_v15  ;;  %v621_v62 = vpop.f32.mrb[5].mxu0  ;;  %v694_v6 = vpop.f32.mrb[5].mxu1 }
 0x16d   : > { %v622_v7 = vadd.f32 %v621_v62, %v4697_v16  ;;  %v695_v8 = vadd.f32 %v694_v6, %v4699_v17  ;;  %v623_v9 = vpop.f32.mrb[6].mxu0  ;;  %v696_v10 = vpop.f32.mrb[6].mxu1 }
 0x16e   : > { %729 = vst [vmem:[#allocation2 + $0x40] sm:$0xff] %v620_v44  ;;  %731 = vst [vmem:[#allocation2 + $0x50] sm:$0xff] %v693_v53  ;;  %v624_v11 = vadd.f32 %v623_v9, %v4693_v14  ;;  %v697_v12 = vadd.f32 %v696_v10, %v4695_v15  ;;  %v625_v13 = vpop.f32.mrb[7].mxu0  ;;  %v698_v18 = vpop.f32.mrb[7].mxu1 }
 0x16f   : > { %730 = vst [vmem:[#allocation2 + $0x48] sm:$0xff] %v622_v7  ;;  %732 = vst [vmem:[#allocation2 + $0x58] sm:$0xff] %v695_v8  ;;  %v626_v19 = vadd.f32 %v625_v13, %v4697_v16  ;;  %v699_v20 = vadd.f32 %v698_v18, %v4699_v17 }
 0x170   : > { %733 = vst [vmem:[#allocation2 + $0x60] sm:$0xff] %v624_v11  ;;  %735 = vst [vmem:[#allocation2 + $0x70] sm:$0xff] %v697_v12 }
 0x171   : > { %734 = vst [vmem:[#allocation2 + $0x68] sm:$0xff] %v626_v19  ;;  %736 = vst [vmem:[#allocation2 + $0x78] sm:$0xff] %v699_v20 }
 0x173   : > { %v629_v21 = vpop.f32.mrb[8].mxu0  ;;  %v702_v22 = vpop.f32.mrb[8].mxu1 }
 0x174   : > { %v630_v23 = vadd.f32 %v629_v21, %v4693_v14  ;;  %v703_v24 = vadd.f32 %v702_v22, %v4695_v15  ;;  %v631_v25 = vpop.f32.mrb[9].mxu0  ;;  %v704_v26 = vpop.f32.mrb[9].mxu1 }
 0x175   : > { %v632_v27 = vadd.f32 %v631_v25, %v4697_v16  ;;  %v705_v28 = vadd.f32 %v704_v26, %v4699_v17  ;;  %v633_v29 = vpop.f32.mrb[10].mxu0  ;;  %v706_v30 = vpop.f32.mrb[10].mxu1 }
 0x176   : > { %737 = vst [vmem:[#allocation2 + $0x80] sm:$0xff] %v630_v23  ;;  %739 = vst [vmem:[#allocation2 + $0x90] sm:$0xff] %v703_v24  ;;  %v634_v31 = vadd.f32 %v633_v29, %v4693_v14  ;;  %v707_v32 = vadd.f32 %v706_v30, %v4695_v15  ;;  %v635_v33 = vpop.f32.mrb[11].mxu0  ;;  %v708_v34 = vpop.f32.mrb[11].mxu1 }
 0x177   : > { %738 = vst [vmem:[#allocation2 + $0x88] sm:$0xff] %v632_v27  ;;  %740 = vst [vmem:[#allocation2 + $0x98] sm:$0xff] %v705_v28  ;;  %v636_v35 = vadd.f32 %v635_v33, %v4697_v16  ;;  %v709_v44 = vadd.f32 %v708_v34, %v4699_v17 }
 0x178   : > { %741 = vst [vmem:[#allocation2 + $0xa0] sm:$0xff] %v634_v31  ;;  %743 = vst [vmem:[#allocation2 + $0xb0] sm:$0xff] %v707_v32 }
 0x179   : > { %742 = vst [vmem:[#allocation2 + $0xa8] sm:$0xff] %v636_v35  ;;  %744 = vst [vmem:[#allocation2 + $0xb8] sm:$0xff] %v709_v44 }
 0x17b   : > { %v639_v53 = vpop.f32.mrb[12].mxu0  ;;  %v712_v62 = vpop.f32.mrb[12].mxu1 }
 0x17c   : > { %v640_v6 = vadd.f32 %v639_v53, %v4693_v14  ;;  %v713_v7 = vadd.f32 %v712_v62, %v4695_v15  ;;  %v641_v8 = vpop.f32.mrb[13].mxu0  ;;  %v714_v9 = vpop.f32.mrb[13].mxu1 }
 0x17d   : > { %v642_v10 = vadd.f32 %v641_v8, %v4697_v16  ;;  %v715_v11 = vadd.f32 %v714_v9, %v4699_v17  ;;  %v643_v12 = vpop.f32.mrb[14].mxu0  ;;  %v716_v13 = vpop.f32.mrb[14].mxu1 }
 0x17e   : > { %745 = vst [vmem:[#allocation2 + $0xc0] sm:$0xff] %v640_v6  ;;  %747 = vst [vmem:[#allocation2 + $0xd0] sm:$0xff] %v713_v7  ;;  %v644_v18 = vadd.f32 %v643_v12, %v4693_v14  ;;  %v717_v19 = vadd.f32 %v716_v13, %v4695_v15  ;;  %v645_v20 = vpop.f32.mrb[15].mxu0  ;;  %v718_v21 = vpop.f32.mrb[15].mxu1 }
 0x17f   : > { %746 = vst [vmem:[#allocation2 + $0xc8] sm:$0xff] %v642_v10  ;;  %748 = vst [vmem:[#allocation2 + $0xd8] sm:$0xff] %v715_v11  ;;  %v646_v22 = vadd.f32 %v645_v20, %v4697_v16  ;;  %v719_v23 = vadd.f32 %v718_v21, %v4699_v17 }
 0x180   : > { %749 = vst [vmem:[#allocation2 + $0xe0] sm:$0xff] %v644_v18  ;;  %751 = vst [vmem:[#allocation2 + $0xf0] sm:$0xff] %v717_v19 }
 0x181   : > { %750 = vst [vmem:[#allocation2 + $0xe8] sm:$0xff] %v646_v22  ;;  %752 = vst [vmem:[#allocation2 + $0xf8] sm:$0xff] %v719_v23 }
 0x183   : > { %v992_v24 = vpop.f32.mrb[16].mxu0  ;;  %v1033_v14 = vpop.f32.mrb[16].mxu1 }
 0x184   : > { %v994_v25 = vpop.f32.mrb[17].mxu0  ;;  %v1035_v15 = vpop.f32.mrb[17].mxu1 }
 0x185   : > { %v996_v26 = vpop.f32.mrb[18].mxu0  ;;  %v1037_v27 = vpop.f32.mrb[18].mxu1 }
 0x186   : > { %v997_v28 = vpop.f32.mrb[19].mxu0  ;;  %v1038_v29 = vpop.f32.mrb[19].mxu1 }
 0x187   : > { %v4794_v29 = vld [vmem:[#allocation10 + $0x4] ss:$16 sps:$4 sm:$0xff]  }
 0x188   : > { %v761_v16 = vld [vmem:[%s760_s14] sm:$0xff]  ;;  %v762_v30 = vld [vmem:[%s760_s14 + $0x8] sm:$0xff]  ;;  %v763_v32 = vld [vmem:[%s760_s14 + $0x10] sm:$0xff] }
 0x189   : > { %v1040_v17 = vadd.f32 %v992_v24, %v761_v16  ;;  %v1041_v31 = vadd.f32 %v994_v25, %v762_v30  ;;  %v1042_v35 = vadd.f32 %v1033_v14, %v763_v32  ;;  %v764_v44 = vld [vmem:[%s760_s14 + $0x18] sm:$0xff]  ;;  %v4798_v30 = vld [vmem:[#allocation10] ss:$16 sps:$4 sm:$0xff]   ;;  %s3773_s14 = sshll.u32 %s1381_s21, 5  ;;  %s2003_s21 = sshra.s32 %s4987_s13, 3 }
 0x18a   : > { %v1043_v53 = vadd.f32 %v1035_v15, %v764_v44  ;;  %v4796_v16 = vld [vmem:[#allocation10 + $0xc] ss:$16 sps:$4 sm:$0xff]   ;;  %s1385_s22 = scalar_lea.vmem [#allocation2], %s3773_s14  ;;  %s3777_s14 = sshll.u32 %s2003_s21, 5 }
 0x18b   : > { %v1044_v33 = vmul.f32 0.5, %v1040_v17  ;;  %v1048_v34 = vmul.f32 0.5, %v1041_v31  ;;  %v4800_v17 = vld [vmem:[#allocation10 + $0x8] ss:$16 sps:$4 sm:$0xff]   ;;  %v4806_v31 = vld [vmem:[#allocation10 + $0x24] ss:$16 sps:$4 sm:$0xff]  }
 0x18c   : > { %v1053_v62 = vmul.f32 0.5, %v1043_v53  ;;  %v4808_v32 = vld [vmem:[#allocation10 + $0x2c] ss:$16 sps:$4 sm:$0xff]   ;;  %v4822_v53 = vld [vmem:[#allocation10 + $0x40] ss:$16 sps:$4 sm:$0xff]   ;;  %s5047_s13 = sadd.s32 48, %s3790_s12 }
 0x18d   : > { %4077 = vtanh.f32 %v1044_v33  ;;  %v4810_v33 = vld [vmem:[#allocation10 + $0x20] ss:$16 sps:$4 sm:$0xff]   ;;  %v4820_v44 = vld [vmem:[#allocation10 + $0x4c] ss:$16 sps:$4 sm:$0xff]   ;;  %s3762_s12 = sshll.u32 %s4323_s18, 6  ;;  %s4342_s18 = smov [#allocation11]  }
 0x18e   : > { %4079 = vtanh.f32 %v1048_v34  ;;  %v4812_v34 = vld [vmem:[#allocation10 + $0x28] ss:$16 sps:$4 sm:$0xff]  }
 0x18f   : > { %4081 = vtanh.f32 %v1042_v35  ;;  %v4818_v35 = vld [vmem:[#allocation10 + $0x44] ss:$16 sps:$4 sm:$0xff]  }
 0x190   : > { %4083 = vtanh.f32 %v1053_v62  ;;  %v4824_v62 = vld [vmem:[#allocation10 + $0x48] ss:$16 sps:$4 sm:$0xff]  }
 0x197   : > { %v4078_v6 = vpop.eup %4077 }
 0x198   : > { %v4080_v7 = vpop.eup %4079  ;;  %v1046_v8 = vmul.f32 0.5, %v4078_v6  ;;  %v4830_v6 = vld [vmem:[#allocation10 + $0x64] ss:$16 sps:$4 sm:$0xff]  }
 0x199   : > { %v1050_v9 = vmul.f32 0.5, %v4080_v7  ;;  %v4082_v11 = vpop.eup %4081  ;;  %v4832_v7 = vld [vmem:[#allocation10 + $0x6c] ss:$16 sps:$4 sm:$0xff]  }
 0x19a   : > { %v1047_v10 = vadd.f32 0.5, %v1046_v8  ;;  %v4084_v20 = vpop.eup %4083  ;;  %v4834_v8 = vld [vmem:[#allocation10 + $0x60] ss:$16 sps:$4 sm:$0xff]  }
 0x19b   : > { %v1051_v12 = vadd.f32 0.5, %v1050_v9  ;;  %v1055_v21 = vmul.f32 0.5, %v4084_v20  ;;  %v4836_v9 = vld [vmem:[#allocation10 + $0x68] ss:$16 sps:$4 sm:$0xff]   ;;  %v4858_v20 = vld [vmem:[#allocation10 + $0xa0] ss:$16 sps:$4 sm:$0xff]  }
 0x19c   : > { %v1058_v13 = vmul.f32 %v4082_v11, %v1047_v10  ;;  %v4842_v10 = vld [vmem:[#allocation10 + $0x84] ss:$16 sps:$4 sm:$0xff]   ;;  %v4844_v11 = vld [vmem:[#allocation10 + $0x8c] ss:$16 sps:$4 sm:$0xff]  }
 0x19d   : > { %v1057_v18 = vmul.f32 0.0, %v1051_v12  ;;  %v1056_v22 = vadd.f32 0.5, %v1055_v21  ;;  %v4846_v12 = vld [vmem:[#allocation10 + $0x80] ss:$16 sps:$4 sm:$0xff]   ;;  %v4860_v21 = vld [vmem:[#allocation10 + $0xa8] ss:$16 sps:$4 sm:$0xff]  }
 0x19f   : > { %v4737_v19 = vadd.f32 %v1058_v13, %v1057_v18  ;;  %v4848_v13 = vld [vmem:[#allocation10 + $0x88] ss:$16 sps:$4 sm:$0xff]   ;;  %v4854_v18 = vld [vmem:[#allocation10 + $0xa4] ss:$16 sps:$4 sm:$0xff]  }
 0x1a1   : > { %4085 = vtanh.f32 %v4737_v19 }
 0x1ab   : > { %v4086_v23 = vpop.eup %4085 }
 0x1ac   : > { %v1061_v24 = vmul.f32 %v4086_v23, %v1056_v22  ;;  %v4866_v22 = vld [vmem:[#allocation10 + $0xc4] ss:$16 sps:$4 sm:$0xff]   ;;  %v4868_v23 = vld [vmem:[#allocation10 + $0xcc] ss:$16 sps:$4 sm:$0xff]  }
 0x1ae   : > { %v1062_v14 = vpack.c.bf16 %v1061_v24, %v1061_v24  ;;  %v4870_v24 = vld [vmem:[#allocation10 + $0xc0] ss:$16 sps:$4 sm:$0xff]  }
 0x1b0   : > { %1065 = vst [vmem:[%s1064_s5] sm:$0xf] %v1062_v14  ;;  %1303 = vmatmul.mubr.bf16.vlgmr.msra.gmra.mrb[20].mxu0 %v1062_v14  ;;  %1344 = vmatmul.mubr.bf16.vlgmr.msra.gmra.mrb[20].mxu1 %v1062_v14  ;;  %v4872_v14 = vld [vmem:[#allocation10 + $0xc8] ss:$16 sps:$4 sm:$0xff]   ;;  %s1688_s5 = scalar_lea.vmem %s4744_s8, %s3580_s27 [#allocation11]  ;;  %s3652_s27 = sshll.u32 %s2003_s21, 2 }
 0x1b1   : > { %1583 = vmatpush1.bf16.msra.mxu0 %v4552_v36  ;;  %1624 = vmatpush1.bf16.msra.mxu1 %v4554_v37  ;;  %v1074_v36 = vld [vmem:[%s1073_s9] sm:$0xff]  ;;  %s2627_s21 = sshra.s32 %s5047_s13, 3 }
 0x1b2   : > { %1584 = vmatprep.subr.bf16.mxu0 %v4558_v38  ;;  %1625 = vmatprep.subr.bf16.mxu1 %v4560_v39 }
 0x1b3   : > { %1614 = vmatprep.mubr.bf16.mxu0 %v4340_v0  ;;  %1655 = vmatprep.mubr.bf16.mxu1 %v4340_v0 }
 0x1b5   : > { %1585 = vmatpush1.bf16.msra.mxu0 %v4562_v40  ;;  %1626 = vmatpush1.bf16.msra.mxu1 %v4566_v41  ;;  %v1075_v40 = vld [vmem:[%s1073_s9 + $0x8] sm:$0xff] }
 0x1b6   : > { %1586 = vmatprep.subr.bf16.mxu0 %v4570_v42  ;;  %1627 = vmatprep.subr.bf16.mxu1 %v4572_v43 }
 0x1b9   : > { %1587 = vmatpush1.bf16.msra.mxu0 %v4576_v45  ;;  %1628 = vmatpush1.bf16.msra.mxu1 %v4580_v46 }
 0x1ba   : > { %1588 = vmatprep.subr.bf16.mxu0 %v4584_v47  ;;  %1629 = vmatprep.subr.bf16.mxu1 %v4586_v48 }
 0x1bd   : > { %1589 = vmatpush1.bf16.msra.mxu0 %v4588_v49  ;;  %1630 = vmatpush1.bf16.msra.mxu1 %v4590_v50  ;;  %v1076_v50 = vld [vmem:[%s1073_s9 + $0x10] sm:$0xff] }
 0x1be   : > { %1590 = vmatprep.subr.bf16.mxu0 %v4594_v51  ;;  %1631 = vmatprep.subr.bf16.mxu1 %v4598_v52 }
 0x1c1   : > { %1591 = vmatpush1.bf16.msra.mxu0 %v4602_v54  ;;  %1632 = vmatpush1.bf16.msra.mxu1 %v4604_v55  ;;  %v1077_v54 = vld [vmem:[%s1073_s9 + $0x18] sm:$0xff]  ;;  %s1696_s9 = scalar_lea.vmem [#allocation2], %s3776_s26  ;;  %s3780_s26 = sshll.u32 %s2315_s25, 5 }
 0x1c2   : > { %1592 = vmatprep.subr.bf16.mxu0 %v4606_v56  ;;  %1633 = vmatprep.subr.bf16.mxu1 %v4610_v57 }
 0x1c5   : > { %1593 = vmatpush1.bf16.msra.mxu0 %v4614_v58  ;;  %1634 = vmatpush1.bf16.msra.mxu1 %v4616_v59 }
 0x1c6   : > { %1594 = vmatprep.subr.bf16.mxu0 %v4618_v60  ;;  %1635 = vmatprep.subr.bf16.mxu1 %v4620_v61 }
 0x1c9   : > { %1595 = vmatpush1.bf16.msra.mxu0 %v4628_v63  ;;  %1636 = vmatpush1.bf16.msra.mxu1 %v4630_v1 }
 0x1ca   : > { %1596 = vmatprep.subr.bf16.mxu0 %v4632_v2  ;;  %1637 = vmatprep.subr.bf16.mxu1 %v4636_v3 }
 0x1cd   : > { %1597 = vmatpush1.bf16.msra.mxu0 %v4640_v4  ;;  %1638 = vmatpush1.bf16.msra.mxu1 %v4642_v5 }
 0x1ce   : > { %1893 = vmatprep.subr.bf16.mxu0 %v4794_v29  ;;  %1934 = vmatprep.subr.bf16.mxu1 %v4796_v16 }
 0x283   : > { %v1304_v37 = vpop.f32.mrb[20].mxu0  ;;  %v1345_v38 = vpop.f32.mrb[20].mxu1 }
 0x284   : > { %v1352_v39 = vadd.f32 %v1304_v37, %v1074_v36  ;;  %v1306_v41 = vpop.f32.mrb[21].mxu0  ;;  %v1347_v42 = vpop.f32.mrb[21].mxu1  ;;  %v1354_v52 = vadd.f32 %v1345_v38, %v1076_v50  ;;  %v4878_v36 = vld [vmem:[#allocation10 + $0xe4] ss:$16 sps:$4 sm:$0xff]   ;;  %v4880_v37 = vld [vmem:[#allocation10 + $0xec] ss:$16 sps:$4 sm:$0xff]  }
 0x285   : > { %v1353_v43 = vadd.f32 %v1306_v41, %v1075_v40  ;;  %v1308_v45 = vpop.f32.mrb[22].mxu0  ;;  %v1349_v46 = vpop.f32.mrb[22].mxu1  ;;  %v1355_v55 = vadd.f32 %v1347_v42, %v1077_v54  ;;  %v4882_v38 = vld [vmem:[#allocation10 + $0xe0] ss:$16 sps:$4 sm:$0xff]  }
 0x286   : > { %v1356_v47 = vmul.f32 0.5, %v1352_v39  ;;  %v1309_v48 = vpop.f32.mrb[23].mxu0  ;;  %v1350_v49 = vpop.f32.mrb[23].mxu1  ;;  %v4884_v39 = vld [vmem:[#allocation10 + $0xe8] ss:$16 sps:$4 sm:$0xff]   ;;  %v1386_v40 = vld [vmem:[%s1385_s22] sm:$0xff] }
 0x287   : > { %v1360_v51 = vmul.f32 0.5, %v1353_v43  ;;  %v1365_v56 = vmul.f32 0.5, %v1355_v55  ;;  %v1387_v45 = vld [vmem:[%s1385_s22 + $0x8] sm:$0xff]  ;;  %v1388_v55 = vld [vmem:[%s1385_s22 + $0x10] sm:$0xff] }
 0x288   : > { %4087 = vtanh.f32 %v1356_v47 }
 0x289   : > { %4089 = vtanh.f32 %v1360_v51 }
 0x28a   : > { %4091 = vtanh.f32 %v1354_v52 }
 0x28b   : > { %4093 = vtanh.f32 %v1365_v56 }
 0x292   : > { %v4088_v57 = vpop.eup %4087 }
 0x293   : > { %v4090_v58 = vpop.eup %4089  ;;  %v1358_v59 = vmul.f32 0.5, %v4088_v57 }
 0x294   : > { %v1362_v60 = vmul.f32 0.5, %v4090_v58  ;;  %v4092_v63 = vpop.eup %4091  ;;  %v1389_v58 = vld [vmem:[%s1385_s22 + $0x18] sm:$0xff]  ;;  %s2007_s22 = scalar_lea.vmem [#allocation2], %s3777_s14  ;;  %s3783_s14 = sshll.u32 %s2627_s21, 5 }
 0x295   : > { %v1359_v61 = vadd.f32 0.5, %v1358_v59  ;;  %v4094_v5 = vpop.eup %4093 }
 0x296   : > { %v1363_v1 = vadd.f32 0.5, %v1362_v60  ;;  %v1367_v25 = vmul.f32 0.5, %v4094_v5 }
 0x297   : > { %v1370_v2 = vmul.f32 %v4092_v63, %v1359_v61 }
 0x298   : > { %v1369_v3 = vmul.f32 %v1363_v1, %v4737_v19  ;;  %v1368_v15 = vadd.f32 0.5, %v1367_v25  ;;  %v4856_v19 = vld [vmem:[#allocation10 + $0xac] ss:$16 sps:$4 sm:$0xff]  }
 0x29a   : > { %v4786_v4 = vadd.f32 %v1370_v2, %v1369_v3 }
 0x29c   : > { %4095 = vtanh.f32 %v4786_v4 }
 0x2a6   : > { %v4096_v26 = vpop.eup %4095 }
 0x2a7   : > { %v1373_v27 = vmul.f32 %v4096_v26, %v1368_v15 }
 0x2a9   : > { %v1374_v28 = vpack.c.bf16 %v1373_v27, %v1373_v27 }
 0x2ab   : > { %1377 = vst [vmem:[%s1376_s6] sm:$0xf] %v1374_v28  ;;  %1615 = vmatmul.mubr.bf16.vlgmr.msra.gmra.mrb[24].mxu0 %v1374_v28  ;;  %1656 = vmatmul.mubr.bf16.vlgmr.msra.gmra.mrb[24].mxu1 %v1374_v28  ;;  %s1999_s6 = scalar_lea.vmem %s4744_s8, %s3616_s11 [#allocation11]  ;;  %s3688_s11 = sshll.u32 %s2315_s25, 2 }
 0x2ac   : > { %1925 = vmatprep.mubr.bf16.mxu0 %v4340_v0  ;;  %1966 = vmatprep.mubr.bf16.mxu1 %v4340_v0  ;;  %s2939_s25 = sshra.s32 %s5057_s10, 3 }
 0x2ad   : > { %1894 = vmatpush1.bf16.msra.mxu0 %v4798_v30  ;;  %1935 = vmatpush1.bf16.msra.mxu1 %v4800_v17 }
 0x2ae   : > { %1895 = vmatprep.subr.bf16.mxu0 %v4806_v31  ;;  %1936 = vmatprep.subr.bf16.mxu1 %v4808_v32 }
 0x2b1   : > { %1896 = vmatpush1.bf16.msra.mxu0 %v4810_v33  ;;  %1937 = vmatpush1.bf16.msra.mxu1 %v4812_v34 }
 0x2b2   : > { %1897 = vmatprep.subr.bf16.mxu0 %v4818_v35  ;;  %1938 = vmatprep.subr.bf16.mxu1 %v4820_v44 }
 0x2b5   : > { %1898 = vmatpush1.bf16.msra.mxu0 %v4822_v53  ;;  %1939 = vmatpush1.bf16.msra.mxu1 %v4824_v62 }
 0x2b6   : > { %1899 = vmatprep.subr.bf16.mxu0 %v4830_v6  ;;  %1940 = vmatprep.subr.bf16.mxu1 %v4832_v7 }
 0x2b9   : > { %1900 = vmatpush1.bf16.msra.mxu0 %v4834_v8  ;;  %1941 = vmatpush1.bf16.msra.mxu1 %v4836_v9 }
 0x2ba   : > { %1901 = vmatprep.subr.bf16.mxu0 %v4842_v10  ;;  %1942 = vmatprep.subr.bf16.mxu1 %v4844_v11 }
 0x2bd   : > { %1902 = vmatpush1.bf16.msra.mxu0 %v4846_v12  ;;  %1943 = vmatpush1.bf16.msra.mxu1 %v4848_v13 }
 0x2be   : > { %1903 = vmatprep.subr.bf16.mxu0 %v4854_v18  ;;  %1944 = vmatprep.subr.bf16.mxu1 %v4856_v19 }
 0x2c1   : > { %1904 = vmatpush1.bf16.msra.mxu0 %v4858_v20  ;;  %1945 = vmatpush1.bf16.msra.mxu1 %v4860_v21 }
 0x2c2   : > { %1905 = vmatprep.subr.bf16.mxu0 %v4866_v22  ;;  %1946 = vmatprep.subr.bf16.mxu1 %v4868_v23 }
 0x2c5   : > { %1906 = vmatpush1.bf16.msra.mxu0 %v4870_v24  ;;  %1947 = vmatpush1.bf16.msra.mxu1 %v4872_v14 }
 0x2c6   : > { %1907 = vmatprep.subr.bf16.mxu0 %v4878_v36  ;;  %1948 = vmatprep.subr.bf16.mxu1 %v4880_v37 }
 0x2c9   : > { %1908 = vmatpush1.bf16.msra.mxu0 %v4882_v38  ;;  %1949 = vmatpush1.bf16.msra.mxu1 %v4884_v39 }
 0x2ca   : > { %2204 = vmatprep.subr.bf16.mxu0 %v4794_v29  ;;  %2245 = vmatprep.subr.bf16.mxu1 %v4796_v16 }
 0x37e   : > { %v1616_v41 = vpop.f32.mrb[24].mxu0  ;;  %v1657_v42 = vpop.f32.mrb[24].mxu1 }
 0x37f   : > { %v1664_v43 = vadd.f32 %v1616_v41, %v1386_v40  ;;  %v1618_v46 = vpop.f32.mrb[25].mxu0  ;;  %v1659_v47 = vpop.f32.mrb[25].mxu1  ;;  %v1666_v57 = vadd.f32 %v1657_v42, %v1388_v55 }
 0x380   : > { %v1665_v48 = vadd.f32 %v1618_v46, %v1387_v45  ;;  %v1620_v49 = vpop.f32.mrb[26].mxu0  ;;  %v1661_v50 = vpop.f32.mrb[26].mxu1  ;;  %v1667_v59 = vadd.f32 %v1659_v47, %v1389_v58 }
 0x381   : > { %v1668_v51 = vmul.f32 0.5, %v1664_v43  ;;  %v1621_v52 = vpop.f32.mrb[27].mxu0  ;;  %v1662_v54 = vpop.f32.mrb[27].mxu1  ;;  %v1698_v49 = vld [vmem:[%s1696_s9 + $0x8] sm:$0xff] }
 0x382   : > { %v1672_v56 = vmul.f32 0.5, %v1665_v48  ;;  %v1677_v60 = vmul.f32 0.5, %v1667_v59  ;;  %v1699_v59 = vld [vmem:[%s1696_s9 + $0x10] sm:$0xff] }
 0x383   : > { %4097 = vtanh.f32 %v1668_v51 }
 0x384   : > { %4099 = vtanh.f32 %v1672_v56 }
 0x385   : > { %4101 = vtanh.f32 %v1666_v57 }
 0x386   : > { %4103 = vtanh.f32 %v1677_v60 }
 0x38d   : > { %v4098_v61 = vpop.eup %4097 }
 0x38e   : > { %v4100_v63 = vpop.eup %4099  ;;  %v1670_v1 = vmul.f32 0.5, %v4098_v61 }
 0x38f   : > { %v1674_v2 = vmul.f32 0.5, %v4100_v63  ;;  %v4102_v5 = vpop.eup %4101  ;;  %v1700_v63 = vld [vmem:[%s1696_s9 + $0x18] sm:$0xff] }
 0x390   : > { %v1671_v3 = vadd.f32 0.5, %v1670_v1  ;;  %v4104_v28 = vpop.eup %4103 }
 0x391   : > { %v1675_v25 = vadd.f32 0.5, %v1674_v2  ;;  %v1679_v40 = vmul.f32 0.5, %v4104_v28 }
 0x392   : > { %v1682_v15 = vmul.f32 %v4102_v5, %v1671_v3 }
 0x393   : > { %v1681_v26 = vmul.f32 %v1675_v25, %v4786_v4  ;;  %v1680_v41 = vadd.f32 0.5, %v1679_v40  ;;  %v1697_v4 = vld [vmem:[%s1696_s9] sm:$0xff]  ;;  %s2319_s9 = scalar_lea.vmem [#allocation2], %s3780_s26  ;;  %s3786_s26 = sshll.u32 %s2939_s25, 5 }
 0x395   : > { %v4899_v27 = vadd.f32 %v1682_v15, %v1681_v26 }
 0x397   : > { %4105 = vtanh.f32 %v4899_v27 }
 0x3a1   : > { %v4106_v42 = vpop.eup %4105 }
 0x3a2   : > { %v1685_v43 = vmul.f32 %v4106_v42, %v1680_v41 }
 0x3a4   : > { %v1686_v45 = vpack.c.bf16 %v1685_v43, %v1685_v43 }
 0x3a6   : > { %1689 = vst [vmem:[%s1688_s5] sm:$0xf] %v1686_v45  ;;  %1926 = vmatmul.mubr.bf16.vlgmr.msra.gmra.mrb[28].mxu0 %v1686_v45  ;;  %1967 = vmatmul.mubr.bf16.vlgmr.msra.gmra.mrb[28].mxu1 %v1686_v45  ;;  %s2310_s5 = scalar_lea.vmem %s4744_s8, %s3652_s27 [#allocation11]  ;;  %s3724_s27 = sshll.u32 %s2627_s21, 2 }
 0x3a7   : > { %2205 = vmatpush1.bf16.msra.mxu0 %v4798_v30  ;;  %2246 = vmatpush1.bf16.msra.mxu1 %v4800_v17 }
 0x3a8   : > { %2206 = vmatprep.subr.bf16.mxu0 %v4806_v31  ;;  %2247 = vmatprep.subr.bf16.mxu1 %v4808_v32 }
 0x3a9   : > { %2236 = vmatprep.mubr.bf16.mxu0 %v4340_v0  ;;  %2277 = vmatprep.mubr.bf16.mxu1 %v4340_v0 }
 0x3ab   : > { %2207 = vmatpush1.bf16.msra.mxu0 %v4810_v33  ;;  %2248 = vmatpush1.bf16.msra.mxu1 %v4812_v34 }
 0x3ac   : > { %2208 = vmatprep.subr.bf16.mxu0 %v4818_v35  ;;  %2249 = vmatprep.subr.bf16.mxu1 %v4820_v44 }
 0x3af   : > { %2209 = vmatpush1.bf16.msra.mxu0 %v4822_v53  ;;  %2250 = vmatpush1.bf16.msra.mxu1 %v4824_v62 }
 0x3b0   : > { %2210 = vmatprep.subr.bf16.mxu0 %v4830_v6  ;;  %2251 = vmatprep.subr.bf16.mxu1 %v4832_v7 }
 0x3b3   : > { %2211 = vmatpush1.bf16.msra.mxu0 %v4834_v8  ;;  %2252 = vmatpush1.bf16.msra.mxu1 %v4836_v9 }
 0x3b4   : > { %2212 = vmatprep.subr.bf16.mxu0 %v4842_v10  ;;  %2253 = vmatprep.subr.bf16.mxu1 %v4844_v11 }
 0x3b7   : > { %2213 = vmatpush1.bf16.msra.mxu0 %v4846_v12  ;;  %2254 = vmatpush1.bf16.msra.mxu1 %v4848_v13 }
 0x3b8   : > { %2214 = vmatprep.subr.bf16.mxu0 %v4854_v18  ;;  %2255 = vmatprep.subr.bf16.mxu1 %v4856_v19 }
 0x3bb   : > { %2215 = vmatpush1.bf16.msra.mxu0 %v4858_v20  ;;  %2256 = vmatpush1.bf16.msra.mxu1 %v4860_v21 }
 0x3bc   : > { %2216 = vmatprep.subr.bf16.mxu0 %v4866_v22  ;;  %2257 = vmatprep.subr.bf16.mxu1 %v4868_v23 }
 0x3bf   : > { %2217 = vmatpush1.bf16.msra.mxu0 %v4870_v24  ;;  %2258 = vmatpush1.bf16.msra.mxu1 %v4872_v14 }
 0x3c0   : > { %2218 = vmatprep.subr.bf16.mxu0 %v4878_v36  ;;  %2259 = vmatprep.subr.bf16.mxu1 %v4880_v37 }
 0x3c3   : > { %2219 = vmatpush1.bf16.msra.mxu0 %v4882_v38  ;;  %2260 = vmatpush1.bf16.msra.mxu1 %v4884_v39 }
 0x3c4   : > { %2516 = vmatprep.subr.bf16.mxu0 %v4794_v29  ;;  %2557 = vmatprep.subr.bf16.mxu1 %v4796_v16 }
 0x479   : > { %v1927_v46 = vpop.f32.mrb[28].mxu0  ;;  %v1968_v47 = vpop.f32.mrb[28].mxu1 }
 0x47a   : > { %v1975_v48 = vadd.f32 %v1927_v46, %v1697_v4  ;;  %v1929_v50 = vpop.f32.mrb[29].mxu0  ;;  %v1970_v51 = vpop.f32.mrb[29].mxu1  ;;  %v1977_v61 = vadd.f32 %v1968_v47, %v1699_v59 }
 0x47b   : > { %v1976_v52 = vadd.f32 %v1929_v50, %v1698_v49  ;;  %v1931_v54 = vpop.f32.mrb[30].mxu0  ;;  %v1972_v55 = vpop.f32.mrb[30].mxu1  ;;  %v1978_v1 = vadd.f32 %v1970_v51, %v1700_v63 }
 0x47c   : > { %v1979_v56 = vmul.f32 0.5, %v1975_v48  ;;  %v1932_v57 = vpop.f32.mrb[31].mxu0  ;;  %v1973_v58 = vpop.f32.mrb[31].mxu1  ;;  %v2009_v54 = vld [vmem:[%s2007_s22 + $0x8] sm:$0xff] }
 0x47d   : > { %v1983_v60 = vmul.f32 0.5, %v1976_v52  ;;  %v1988_v2 = vmul.f32 0.5, %v1978_v1 }
 0x47e   : > { %4107 = vtanh.f32 %v1979_v56 }
 0x47f   : > { %4109 = vtanh.f32 %v1983_v60 }
 0x480   : > { %4111 = vtanh.f32 %v1977_v61  ;;  %v2010_v61 = vld [vmem:[%s2007_s22 + $0x10] sm:$0xff] }
 0x481   : > { %4113 = vtanh.f32 %v1988_v2  ;;  %v2011_v2 = vld [vmem:[%s2007_s22 + $0x18] sm:$0xff] }
 0x488   : > { %v4108_v3 = vpop.eup %4107 }
 0x489   : > { %v4110_v5 = vpop.eup %4109  ;;  %v1981_v25 = vmul.f32 0.5, %v4108_v3 }
 0x48a   : > { %v1985_v15 = vmul.f32 0.5, %v4110_v5  ;;  %v4112_v28 = vpop.eup %4111 }
 0x48b   : > { %v1982_v26 = vadd.f32 0.5, %v1981_v25  ;;  %v4114_v45 = vpop.eup %4113 }
 0x48c   : > { %v1986_v40 = vadd.f32 0.5, %v1985_v15  ;;  %v1990_v4 = vmul.f32 0.5, %v4114_v45 }
 0x48d   : > { %v1993_v41 = vmul.f32 %v4112_v28, %v1982_v26 }
 0x48e   : > { %v1992_v42 = vmul.f32 %v1986_v40, %v4899_v27  ;;  %v1991_v46 = vadd.f32 0.5, %v1990_v4  ;;  %v2008_v27 = vld [vmem:[%s2007_s22] sm:$0xff]  ;;  %s2631_s22 = scalar_lea.vmem [#allocation2], %s3783_s14 }
 0x490   : > { %v4946_v43 = vadd.f32 %v1993_v41, %v1992_v42 }
 0x492   : > { %4115 = vtanh.f32 %v4946_v43 }
 0x49c   : > { %v4116_v47 = vpop.eup %4115 }
 0x49d   : > { %v1996_v48 = vmul.f32 %v4116_v47, %v1991_v46 }
 0x49f   : > { %v1997_v49 = vpack.c.bf16 %v1996_v48, %v1996_v48 }
 0x4a1   : > { %2000 = vst [vmem:[%s1999_s6] sm:$0xf] %v1997_v49  ;;  %2237 = vmatmul.mubr.bf16.vlgmr.msra.gmra.mrb[32].mxu0 %v1997_v49  ;;  %2278 = vmatmul.mubr.bf16.vlgmr.msra.gmra.mrb[32].mxu1 %v1997_v49  ;;  %s2622_s6 = scalar_lea.vmem %s4744_s8, %s3688_s11 [#allocation11]  ;;  %s3760_s11 = sshll.u32 %s2939_s25, 2 }
 0x4a2   : > { %2517 = vmatpush1.bf16.msra.mxu0 %v4798_v30  ;;  %2558 = vmatpush1.bf16.msra.mxu1 %v4800_v17  ;;  %s3246_s13 = scalar_lea.vmem %s4744_s8, %s3760_s11 [#allocation11] }
 0x4a3   : > { %2518 = vmatprep.subr.bf16.mxu0 %v4806_v31  ;;  %2559 = vmatprep.subr.bf16.mxu1 %v4808_v32 }
 0x4a4   : > { %2548 = vmatprep.mubr.bf16.mxu0 %v4340_v0  ;;  %2589 = vmatprep.mubr.bf16.mxu1 %v4340_v0 }
 0x4a6   : > { %2519 = vmatpush1.bf16.msra.mxu0 %v4810_v33  ;;  %2560 = vmatpush1.bf16.msra.mxu1 %v4812_v34 }
 0x4a7   : > { %2520 = vmatprep.subr.bf16.mxu0 %v4818_v35  ;;  %2561 = vmatprep.subr.bf16.mxu1 %v4820_v44 }
 0x4aa   : > { %2521 = vmatpush1.bf16.msra.mxu0 %v4822_v53  ;;  %2562 = vmatpush1.bf16.msra.mxu1 %v4824_v62 }
 0x4ab   : > { %2522 = vmatprep.subr.bf16.mxu0 %v4830_v6  ;;  %2563 = vmatprep.subr.bf16.mxu1 %v4832_v7 }
 0x4ae   : > { %2523 = vmatpush1.bf16.msra.mxu0 %v4834_v8  ;;  %2564 = vmatpush1.bf16.msra.mxu1 %v4836_v9 }
 0x4af   : > { %2524 = vmatprep.subr.bf16.mxu0 %v4842_v10  ;;  %2565 = vmatprep.subr.bf16.mxu1 %v4844_v11 }
 0x4b2   : > { %2525 = vmatpush1.bf16.msra.mxu0 %v4846_v12  ;;  %2566 = vmatpush1.bf16.msra.mxu1 %v4848_v13 }
 0x4b3   : > { %2526 = vmatprep.subr.bf16.mxu0 %v4854_v18  ;;  %2567 = vmatprep.subr.bf16.mxu1 %v4856_v19 }
 0x4b6   : > { %2527 = vmatpush1.bf16.msra.mxu0 %v4858_v20  ;;  %2568 = vmatpush1.bf16.msra.mxu1 %v4860_v21 }
 0x4b7   : > { %2528 = vmatprep.subr.bf16.mxu0 %v4866_v22  ;;  %2569 = vmatprep.subr.bf16.mxu1 %v4868_v23 }
 0x4ba   : > { %2529 = vmatpush1.bf16.msra.mxu0 %v4870_v24  ;;  %2570 = vmatpush1.bf16.msra.mxu1 %v4872_v14 }
 0x4bb   : > { %2530 = vmatprep.subr.bf16.mxu0 %v4878_v36  ;;  %2571 = vmatprep.subr.bf16.mxu1 %v4880_v37 }
 0x4be   : > { %2531 = vmatpush1.bf16.msra.mxu0 %v4882_v38  ;;  %2572 = vmatpush1.bf16.msra.mxu1 %v4884_v39 }
 0x4bf   : > { %2828 = vmatprep.subr.bf16.mxu0 %v4794_v29  ;;  %2869 = vmatprep.subr.bf16.mxu1 %v4796_v16 }
 0x574   : > { %v2238_v50 = vpop.f32.mrb[32].mxu0  ;;  %v2279_v51 = vpop.f32.mrb[32].mxu1 }
 0x575   : > { %v2286_v52 = vadd.f32 %v2238_v50, %v2008_v27  ;;  %v2240_v55 = vpop.f32.mrb[33].mxu0  ;;  %v2281_v56 = vpop.f32.mrb[33].mxu1  ;;  %v2288_v1 = vadd.f32 %v2279_v51, %v2010_v61  ;;  %v4035_v61 = vld [vmem:[#allocation10 + $0x20] ss:$16 sps:$4 sm:$0xff]  }
 0x576   : > { %v2287_v57 = vadd.f32 %v2240_v55, %v2009_v54  ;;  %v2242_v29 = vpop.f32.mrb[34].mxu0  ;;  %v2283_v58 = vpop.f32.mrb[34].mxu1  ;;  %v2289_v3 = vadd.f32 %v2281_v56, %v2011_v2  ;;  %v4046_v2 = vld [vmem:[#allocation10 + $0x4c] ss:$16 sps:$4 sm:$0xff]  }
 0x577   : > { %v2290_v16 = vmul.f32 0.5, %v2286_v52  ;;  %v2243_v59 = vpop.f32.mrb[35].mxu0  ;;  %v2284_v60 = vpop.f32.mrb[35].mxu1  ;;  %v4034_v29 = vld [vmem:[#allocation10 + $0xc] ss:$16 sps:$4 sm:$0xff]  }
 0x578   : > { %v2294_v63 = vmul.f32 0.5, %v2287_v57  ;;  %v2299_v5 = vmul.f32 0.5, %v2289_v3  ;;  %v4031_v57 = vld [vmem:[#allocation10 + $0x4] ss:$16 sps:$4 sm:$0xff]   ;;  %v4029_v58 = vld [vmem:[#allocation10] ss:$16 sps:$4 sm:$0xff]  }
 0x579   : > { %4117 = vtanh.f32 %v2290_v16  ;;  %v4032_v16 = vld [vmem:[#allocation10 + $0x8] ss:$16 sps:$4 sm:$0xff]   ;;  %v4037_v59 = vld [vmem:[#allocation10 + $0x24] ss:$16 sps:$4 sm:$0xff]   ;;  %v4040_v60 = vld [vmem:[#allocation10 + $0x2c] ss:$16 sps:$4 sm:$0xff]  }
 0x57a   : > { %4119 = vtanh.f32 %v2294_v63  ;;  %v4038_v63 = vld [vmem:[#allocation10 + $0x28] ss:$16 sps:$4 sm:$0xff]   ;;  %v4041_v3 = vld [vmem:[#allocation10 + $0x40] ss:$16 sps:$4 sm:$0xff]  }
 0x57b   : > { %4121 = vtanh.f32 %v2288_v1  ;;  %v4043_v1 = vld [vmem:[#allocation10 + $0x44] ss:$16 sps:$4 sm:$0xff]  }
 0x57c   : > { %4123 = vtanh.f32 %v2299_v5  ;;  %v4049_v5 = vld [vmem:[#allocation10 + $0x64] ss:$16 sps:$4 sm:$0xff]  }
 0x583   : > { %v4118_v25 = vpop.eup %4117 }
 0x584   : > { %v4120_v15 = vpop.eup %4119  ;;  %v2292_v26 = vmul.f32 0.5, %v4118_v25  ;;  %v4052_v25 = vld [vmem:[#allocation10 + $0x6c] ss:$16 sps:$4 sm:$0xff]  }
 0x585   : > { %v2296_v28 = vmul.f32 0.5, %v4120_v15  ;;  %v4122_v41 = vpop.eup %4121  ;;  %v4047_v15 = vld [vmem:[#allocation10 + $0x60] ss:$16 sps:$4 sm:$0xff]  }
 0x586   : > { %v2293_v40 = vadd.f32 0.5, %v2292_v26  ;;  %v4124_v47 = vpop.eup %4123  ;;  %v4050_v26 = vld [vmem:[#allocation10 + $0x68] ss:$16 sps:$4 sm:$0xff]  }
 0x587   : > { %v2297_v42 = vadd.f32 0.5, %v2296_v28  ;;  %v2301_v48 = vmul.f32 0.5, %v4124_v47  ;;  %v4055_v28 = vld [vmem:[#allocation10 + $0x84] ss:$16 sps:$4 sm:$0xff]   ;;  %v4062_v47 = vld [vmem:[#allocation10 + $0xa8] ss:$16 sps:$4 sm:$0xff]  }
 0x588   : > { %v2304_v45 = vmul.f32 %v4122_v41, %v2293_v40  ;;  %v4058_v40 = vld [vmem:[#allocation10 + $0x8c] ss:$16 sps:$4 sm:$0xff]   ;;  %v4053_v41 = vld [vmem:[#allocation10 + $0x80] ss:$16 sps:$4 sm:$0xff]  }
 0x589   : > { %v2303_v4 = vmul.f32 %v2297_v42, %v4946_v43  ;;  %v2302_v49 = vadd.f32 0.5, %v2301_v48  ;;  %v4056_v42 = vld [vmem:[#allocation10 + $0x88] ss:$16 sps:$4 sm:$0xff]   ;;  %v4067_v48 = vld [vmem:[#allocation10 + $0xc4] ss:$16 sps:$4 sm:$0xff]  }
 0x58b   : > { %v4993_v46 = vadd.f32 %v2304_v45, %v2303_v4  ;;  %v4061_v45 = vld [vmem:[#allocation10 + $0xa4] ss:$16 sps:$4 sm:$0xff]   ;;  %v4064_v4 = vld [vmem:[#allocation10 + $0xac] ss:$16 sps:$4 sm:$0xff]  }
 0x58d   : > { %4125 = vtanh.f32 %v4993_v46 }
 0x597   : > { %v4126_v27 = vpop.eup %4125 }
 0x598   : > { %v2307_v50 = vmul.f32 %v4126_v27, %v2302_v49  ;;  %v4070_v49 = vld [vmem:[#allocation10 + $0xcc] ss:$16 sps:$4 sm:$0xff]   ;;  %v4065_v27 = vld [vmem:[#allocation10 + $0xc0] ss:$16 sps:$4 sm:$0xff]  }
 0x59a   : > { %v2308_v51 = vpack.c.bf16 %v2307_v50, %v2307_v50  ;;  %v4068_v50 = vld [vmem:[#allocation10 + $0xc8] ss:$16 sps:$4 sm:$0xff]  }
 0x59c   : > { %2311 = vst [vmem:[%s2310_s5] sm:$0xf] %v2308_v51  ;;  %2549 = vmatmul.mubr.bf16.vlgmr.msra.gmra.mrb[36].mxu0 %v2308_v51  ;;  %2590 = vmatmul.mubr.bf16.vlgmr.msra.gmra.mrb[36].mxu1 %v2308_v51  ;;  %v4073_v51 = vld [vmem:[#allocation10 + $0xe4] ss:$16 sps:$4 sm:$0xff]   ;;  %s2934_s5 = scalar_lea.vmem %s4744_s8, %s3724_s27 [#allocation11]  ;;  %s5076_s27 = scalar_lea.sflag [#allocation7], %s305_s24 }
 0x59d   : > { %2829 = vmatpush1.bf16.msra.mxu0 %v4798_v30  ;;  %2870 = vmatpush1.bf16.msra.mxu1 %v4800_v17  ;;  %v2320_v30 = vld [vmem:[%s2319_s9] sm:$0xff] }
 0x59e   : > { %2830 = vmatprep.subr.bf16.mxu0 %v4806_v31  ;;  %2871 = vmatprep.subr.bf16.mxu1 %v4808_v32 }
 0x59f   : > { %2860 = vmatprep.mubr.bf16.mxu0 %v4340_v0  ;;  %2901 = vmatprep.mubr.bf16.mxu1 %v4340_v0 }
 0x5a1   : > { %2831 = vmatpush1.bf16.msra.mxu0 %v4810_v33  ;;  %2872 = vmatpush1.bf16.msra.mxu1 %v4812_v34  ;;  %v2321_v33 = vld [vmem:[%s2319_s9 + $0x8] sm:$0xff] }
 0x5a2   : > { %2832 = vmatprep.subr.bf16.mxu0 %v4818_v35  ;;  %2873 = vmatprep.subr.bf16.mxu1 %v4820_v44 }
 0x5a5   : > { %2833 = vmatpush1.bf16.msra.mxu0 %v4822_v53  ;;  %2874 = vmatpush1.bf16.msra.mxu1 %v4824_v62 }
 0x5a6   : > { %2834 = vmatprep.subr.bf16.mxu0 %v4830_v6  ;;  %2875 = vmatprep.subr.bf16.mxu1 %v4832_v7 }
 0x5a9   : > { %2835 = vmatpush1.bf16.msra.mxu0 %v4834_v8  ;;  %2876 = vmatpush1.bf16.msra.mxu1 %v4836_v9  ;;  %v2322_v9 = vld [vmem:[%s2319_s9 + $0x10] sm:$0xff] }
 0x5aa   : > { %2836 = vmatprep.subr.bf16.mxu0 %v4842_v10  ;;  %2877 = vmatprep.subr.bf16.mxu1 %v4844_v11 }
 0x5ad   : > { %2837 = vmatpush1.bf16.msra.mxu0 %v4846_v12  ;;  %2878 = vmatpush1.bf16.msra.mxu1 %v4848_v13  ;;  %v2323_v12 = vld [vmem:[%s2319_s9 + $0x18] sm:$0xff]  ;;  %s2943_s9 = scalar_lea.vmem [#allocation2], %s3786_s26 }
 0x5ae   : > { %2838 = vmatprep.subr.bf16.mxu0 %v4854_v18  ;;  %2879 = vmatprep.subr.bf16.mxu1 %v4856_v19 }
 0x5b1   : > { %2839 = vmatpush1.bf16.msra.mxu0 %v4858_v20  ;;  %2880 = vmatpush1.bf16.msra.mxu1 %v4860_v21 }
 0x5b2   : > { %2840 = vmatprep.subr.bf16.mxu0 %v4866_v22  ;;  %2881 = vmatprep.subr.bf16.mxu1 %v4868_v23 }
 0x5b5   : > { %2841 = vmatpush1.bf16.msra.mxu0 %v4870_v24  ;;  %2882 = vmatpush1.bf16.msra.mxu1 %v4872_v14 }
 0x5b6   : > { %2842 = vmatprep.subr.bf16.mxu0 %v4878_v36  ;;  %2883 = vmatprep.subr.bf16.mxu1 %v4880_v37 }
 0x5b9   : > { %2843 = vmatpush1.bf16.msra.mxu0 %v4882_v38  ;;  %2884 = vmatpush1.bf16.msra.mxu1 %v4884_v39 }
 0x5ba   : > { %3140 = vmatprep.subr.bf16.mxu0 %v4031_v57  ;;  %3181 = vmatprep.subr.bf16.mxu1 %v4034_v29 }
 0x66f   : > { %v2550_v17 = vpop.f32.mrb[36].mxu0  ;;  %v2591_v31 = vpop.f32.mrb[36].mxu1 }
 0x670   : > { %v2598_v32 = vadd.f32 %v2550_v17, %v2320_v30  ;;  %v2552_v34 = vpop.f32.mrb[37].mxu0  ;;  %v2593_v35 = vpop.f32.mrb[37].mxu1  ;;  %v2600_v11 = vadd.f32 %v2591_v31, %v2322_v9  ;;  %v4071_v30 = vld [vmem:[#allocation10 + $0xe0] ss:$16 sps:$4 sm:$0xff]   ;;  %v4074_v17 = vld [vmem:[#allocation10 + $0xe8] ss:$16 sps:$4 sm:$0xff]  }
 0x671   : > { %v2599_v44 = vadd.f32 %v2552_v34, %v2321_v33  ;;  %v2554_v53 = vpop.f32.mrb[38].mxu0  ;;  %v2595_v62 = vpop.f32.mrb[38].mxu1  ;;  %v2601_v13 = vadd.f32 %v2593_v35, %v2323_v12  ;;  %v4076_v31 = vld [vmem:[#allocation10 + $0xec] ss:$16 sps:$4 sm:$0xff]   ;;  %v2634_v12 = vld [vmem:[%s2631_s22 + $0x10] sm:$0xff] }
 0x672   : > { %v2602_v6 = vmul.f32 0.5, %v2598_v32  ;;  %v2555_v7 = vpop.f32.mrb[39].mxu0  ;;  %v2596_v8 = vpop.f32.mrb[39].mxu1  ;;  %v2632_v32 = vld [vmem:[%s2631_s22] sm:$0xff] }
 0x673   : > { %v2606_v10 = vmul.f32 0.5, %v2599_v44  ;;  %v2611_v18 = vmul.f32 0.5, %v2601_v13  ;;  %v2633_v44 = vld [vmem:[%s2631_s22 + $0x8] sm:$0xff] }
 0x674   : > { %4127 = vtanh.f32 %v2602_v6 }
 0x675   : > { %4129 = vtanh.f32 %v2606_v10 }
 0x676   : > { %4131 = vtanh.f32 %v2600_v11 }
 0x677   : > { %4133 = vtanh.f32 %v2611_v18 }
 0x67e   : > { %v4128_v19 = vpop.eup %4127 }
 0x67f   : > { %v4130_v20 = vpop.eup %4129  ;;  %v2604_v21 = vmul.f32 0.5, %v4128_v19  ;;  %v2635_v19 = vld [vmem:[%s2631_s22 + $0x18] sm:$0xff]  ;;  %s5072_s22 = scalar_lea.hbm %s5127_s4, %s3762_s12 }
 0x680   : > { %v2608_v22 = vmul.f32 0.5, %v4130_v20  ;;  %v4132_v24 = vpop.eup %4131 }
 0x681   : > { %v2605_v23 = vadd.f32 0.5, %v2604_v21  ;;  %v4134_v39 = vpop.eup %4133 }
 0x682   : > { %v2609_v14 = vadd.f32 0.5, %v2608_v22  ;;  %v2613_v43 = vmul.f32 0.5, %v4134_v39 }
 0x683   : > { %v2616_v36 = vmul.f32 %v4132_v24, %v2605_v23 }
 0x684   : > { %v2615_v37 = vmul.f32 %v2609_v14, %v4993_v46  ;;  %v2614_v52 = vadd.f32 0.5, %v2613_v43  ;;  %v4059_v46 = vld [vmem:[#allocation10 + $0xa0] ss:$16 sps:$4 sm:$0xff]  }
 0x686   : > { %v5038_v38 = vadd.f32 %v2616_v36, %v2615_v37 }
 0x688   : > { %4135 = vtanh.f32 %v5038_v38 }
 0x692   : > { %v4136_v54 = vpop.eup %4135 }
 0x693   : > { %v2619_v55 = vmul.f32 %v4136_v54, %v2614_v52 }
 0x695   : > { %v2620_v56 = vpack.c.bf16 %v2619_v55, %v2619_v55 }
 0x697   : > { %2623 = vst [vmem:[%s2622_s6] sm:$0xf] %v2620_v56  ;;  %2861 = vmatmul.mubr.bf16.vlgmr.msra.gmra.mrb[40].mxu0 %v2620_v56  ;;  %2902 = vmatmul.mubr.bf16.vlgmr.msra.gmra.mrb[40].mxu1 %v2620_v56  ;;  %s3270_s6 = sshll.u32 %s4744_s8, 4  ;;  %s4249_s8 = sshll.u32 %s4342_s18, 4  ;;  %s5067_s6 = int_to_ptr.vmem [resolvable:$true] %s3270_s6  ;;  %s4250_s8 = int_to_ptr.vmem [resolvable:$false] %s4249_s8 }
 0x698   : > { %3172 = vmatprep.mubr.bf16.mxu0 %v4340_v0  ;;  %3213 = vmatprep.mubr.bf16.mxu1 %v4340_v0  ;;  %v4044_v0 = vld [vmem:[#allocation10 + $0x48] ss:$16 sps:$4 sm:$0xff]   ;;  %s4251_s7 = scalar_lea.vmem %s4250_s8, 1024  ;;  %p4252_p2 = scmp.lt.s32.totalorder %s5067_s6, %s4250_s8 }
 0x699   : > { %3141 = vmatpush1.bf16.msra.mxu0 %v4029_v58  ;;  %3182 = vmatpush1.bf16.msra.mxu1 %v4032_v16 }
 0x69a   : > { %3142 = vmatprep.subr.bf16.mxu0 %v4037_v59  ;;  %3183 = vmatprep.subr.bf16.mxu1 %v4040_v60 }
 0x69d   : > { %3143 = vmatpush1.bf16.msra.mxu0 %v4035_v61  ;;  %3184 = vmatpush1.bf16.msra.mxu1 %v4038_v63  ;;  %v2945_v63 = vld [vmem:[%s2943_s9 + $0x8] sm:$0xff] }
 0x69e   : > { %3144 = vmatprep.subr.bf16.mxu0 %v4043_v1  ;;  %3185 = vmatprep.subr.bf16.mxu1 %v4046_v2 }
 0x6a1   : > { %3145 = vmatpush1.bf16.msra.mxu0 %v4041_v3  ;;  %3186 = vmatpush1.bf16.msra.mxu1 %v4044_v0 }
 0x6a2   : > { %3146 = vmatprep.subr.bf16.mxu0 %v4049_v5  ;;  %3187 = vmatprep.subr.bf16.mxu1 %v4052_v25 }
 0x6a5   : > { %3147 = vmatpush1.bf16.msra.mxu0 %v4047_v15  ;;  %3188 = vmatpush1.bf16.msra.mxu1 %v4050_v26 }
 0x6a6   : > { %3148 = vmatprep.subr.bf16.mxu0 %v4055_v28  ;;  %3189 = vmatprep.subr.bf16.mxu1 %v4058_v40  ;;  %v2946_v28 = vld [vmem:[%s2943_s9 + $0x10] sm:$0xff] }
 0x6a9   : > { %3149 = vmatpush1.bf16.msra.mxu0 %v4053_v41  ;;  %3190 = vmatpush1.bf16.msra.mxu1 %v4056_v42  ;;  %v2947_v42 = vld [vmem:[%s2943_s9 + $0x18] sm:$0xff] }
 0x6aa   : > { %3150 = vmatprep.subr.bf16.mxu0 %v4061_v45  ;;  %3191 = vmatprep.subr.bf16.mxu1 %v4064_v4 }
 0x6ad   : > { %3151 = vmatpush1.bf16.msra.mxu0 %v4059_v46  ;;  %3192 = vmatpush1.bf16.msra.mxu1 %v4062_v47 }
 0x6ae   : > { %3152 = vmatprep.subr.bf16.mxu0 %v4067_v48  ;;  %3193 = vmatprep.subr.bf16.mxu1 %v4070_v49 }
 0x6b1   : > { %3153 = vmatpush1.bf16.msra.mxu0 %v4065_v27  ;;  %3194 = vmatpush1.bf16.msra.mxu1 %v4068_v50 }
 0x6b2   : > { %3154 = vmatprep.subr.bf16.mxu0 %v4073_v51  ;;  %3195 = vmatprep.subr.bf16.mxu1 %v4076_v31 }
 0x6b5   : > { %3155 = vmatpush1.bf16.msra.mxu0 %v4071_v30  ;;  %3196 = vmatpush1.bf16.msra.mxu1 %v4074_v17 }
 0x76a   : > { %v2862_v33 = vpop.f32.mrb[40].mxu0  ;;  %v2903_v34 = vpop.f32.mrb[40].mxu1 }
 0x76b   : > { %v2910_v35 = vadd.f32 %v2862_v33, %v2632_v32  ;;  %v2864_v53 = vpop.f32.mrb[41].mxu0  ;;  %v2905_v62 = vpop.f32.mrb[41].mxu1  ;;  %v2912_v18 = vadd.f32 %v2903_v34, %v2634_v12 }
 0x76c   : > { %v2911_v6 = vadd.f32 %v2864_v53, %v2633_v44  ;;  %v2866_v7 = vpop.f32.mrb[42].mxu0  ;;  %v2907_v8 = vpop.f32.mrb[42].mxu1  ;;  %v2913_v20 = vadd.f32 %v2905_v62, %v2635_v19 }
 0x76d   : > { %v2914_v9 = vmul.f32 0.5, %v2910_v35  ;;  %v2867_v10 = vpop.f32.mrb[43].mxu0  ;;  %v2908_v11 = vpop.f32.mrb[43].mxu1 }
 0x76e   : > { %v2918_v13 = vmul.f32 0.5, %v2911_v6  ;;  %v2923_v21 = vmul.f32 0.5, %v2913_v20 }
 0x76f   : > { %4137 = vtanh.f32 %v2914_v9 }
 0x770   : > { %4139 = vtanh.f32 %v2918_v13 }
 0x771   : > { %4141 = vtanh.f32 %v2912_v18 }
 0x772   : > { %4143 = vtanh.f32 %v2923_v21 }
 0x779   : > { %v4138_v22 = vpop.eup %4137 }
 0x77a   : > { %v4140_v23 = vpop.eup %4139  ;;  %v2916_v24 = vmul.f32 0.5, %v4138_v22 }
 0x77b   : > { %v2920_v14 = vmul.f32 0.5, %v4140_v23  ;;  %v4142_v37 = vpop.eup %4141 }
 0x77c   : > { %v2917_v36 = vadd.f32 0.5, %v2916_v24  ;;  %v4144_v55 = vpop.eup %4143 }
 0x77d   : > { %v2921_v39 = vadd.f32 0.5, %v2920_v14  ;;  %v2925_v56 = vmul.f32 0.5, %v4144_v55 }
 0x77e   : > { %v2928_v43 = vmul.f32 %v4142_v37, %v2917_v36 }
 0x77f   : > { %v2927_v52 = vmul.f32 %v2921_v39, %v5038_v38  ;;  %v2926_v57 = vadd.f32 0.5, %v2925_v56  ;;  %v2944_v38 = vld [vmem:[%s2943_s9] sm:$0xff] }
 0x781   : > { %v2929_v54 = vadd.f32 %v2928_v43, %v2927_v52 }
 0x783   : > { %4145 = vtanh.f32 %v2929_v54 }
 0x78d   : > { %v4146_v29 = vpop.eup %4145 }
 0x78e   : > { %v2931_v58 = vmul.f32 %v4146_v29, %v2926_v57 }
 0x790   : > { %v2932_v16 = vpack.c.bf16 %v2931_v58, %v2931_v58 }
 0x792   : > { %2935 = vst [vmem:[%s2934_s5] sm:$0xf] %v2932_v16  ;;  %3173 = vmatmul.mubr.bf16.vlgmr.msra.gmra.mrb[44].mxu0 %v2932_v16  ;;  %3214 = vmatmul.mubr.bf16.vlgmr.msra.gmra.mrb[44].mxu1 %v2932_v16  ;;  %s4245_s5 = scalar_lea.vmem %s5067_s6, 512 }
 0x793   : > { %p4246_p5 = scmp.ne.s32.totalorder %s5067_s6, %s4245_s5  ;;  %p4253_p4 = scmp.lt.s32.totalorder %s4251_s7, %s4245_s5 }
 0x795   : > { %p4247_p11 = pnand %p4246_p5, %p5146_p7  ;;  %p4254_p0 = por %p4253_p4, %p4252_p2 }
 0x797   : > { %p4248_p13 = pneg %p4247_p11 }
 0x799   : > { %p4255_p12 = pnand %p4254_p0, %p4248_p13 }
 0x865   : > { %v3174_v59 = vpop.f32.mrb[44].mxu0  ;;  %v3215_v60 = vpop.f32.mrb[44].mxu1 }
 0x866   : > { %v3222_v61 = vadd.f32 %v3174_v59, %v2944_v38  ;;  %v3176_v1 = vpop.f32.mrb[45].mxu0  ;;  %v3217_v2 = vpop.f32.mrb[45].mxu1  ;;  %v3224_v41 = vadd.f32 %v3215_v60, %v2946_v28 }
 0x867   : > { %v3223_v3 = vadd.f32 %v3176_v1, %v2945_v63  ;;  %v3178_v0 = vpop.f32.mrb[46].mxu0  ;;  %v3219_v5 = vpop.f32.mrb[46].mxu1  ;;  %v3225_v45 = vadd.f32 %v3217_v2, %v2947_v42 }
 0x868   : > { %v3226_v25 = vmul.f32 0.5, %v3222_v61  ;;  %v3179_v15 = vpop.f32.mrb[47].mxu0  ;;  %v3220_v26 = vpop.f32.mrb[47].mxu1 }
 0x869   : > { %v3230_v40 = vmul.f32 0.5, %v3223_v3  ;;  %v3235_v4 = vmul.f32 0.5, %v3225_v45 }
 0x86a   : > { %4147 = vtanh.f32 %v3226_v25 }
 0x86b   : > { %4149 = vtanh.f32 %v3230_v40 }
 0x86c   : > { %4151 = vtanh.f32 %v3224_v41 }
 0x86d   : > { %4153 = vtanh.f32 %v3235_v4 }
 0x874   : > { %v4148_v46 = vpop.eup %4147 }
 0x875   : > { %v4150_v47 = vpop.eup %4149  ;;  %v3228_v48 = vmul.f32 0.5, %v4148_v46 }
 0x876   : > { %v3232_v49 = vmul.f32 0.5, %v4150_v47  ;;  %v4152_v50 = vpop.eup %4151 }
 0x877   : > { %v3229_v27 = vadd.f32 0.5, %v3228_v48  ;;  %v4154_v32 = vpop.eup %4153 }
 0x878   : > { %v3233_v51 = vadd.f32 0.5, %v3232_v49  ;;  %v3237_v33 = vmul.f32 0.5, %v4154_v32 }
 0x879   : > { %v3240_v30 = vmul.f32 %v4152_v50, %v3229_v27 }
 0x87a   : > { %v3239_v17 = vmul.f32 %v3233_v51, %v2929_v54  ;;  %v3238_v34 = vadd.f32 0.5, %v3237_v33 }
 0x87c   : > { %v3241_v31 = vadd.f32 %v3240_v30, %v3239_v17 }
 0x87e   : > { %4155 = vtanh.f32 %v3241_v31 }
 0x888   : > { %v4156_v35 = vpop.eup %4155 }
 0x889   : > { %v3243_v44 = vmul.f32 %v4156_v35, %v3238_v34 }
 0x88b   : > { %v3244_v53 = vpack.c.bf16 %v3243_v44, %v3243_v44 }
 0x88d   : > { %3247 = vst [vmem:[%s3246_s13] sm:$0xf] %v3244_v53 }
 0x88e   : > { %4258 = shalt.err (!%p4255_p12)
}
 0x88f   : > { %s4259_s24 = scalar_lea.hbm %s5072_s22, 512  ;;  %s4263_s26 = scalar_lea.hbm %s5127_s4, 1024 }
 0x890   : > { %p4260_p9 = scmp.ne.s32.totalorder %s5072_s22, %s4259_s24  ;;  %p4264_p1 = scmp.lt.u32.totalorder %s5072_s22, %s5127_s4 }
 0x891   : > { %p4265_p8 = scmp.lt.u32.totalorder %s4263_s26, %s4259_s24  ;;  %p4267_p5 = scmp.lt.u32.totalorder %s4259_s24, %s5072_s22 }
 0x892   : > { %p4261_p3 = pnand %p4260_p9, %p5146_p7 }
 0x893   : > { %p4266_p10 = por %p4265_p8, %p4264_p1 }
 0x894   : > { %p4262_p6 = pneg %p4261_p3 }
 0x895   : > { %p4268_p11 = por %p4267_p5, %p4266_p10 }
 0x897   : > { %p4269_p13 = pnand %p4268_p11, %p4262_p6 }
 0x899   : > { %4272 = shalt.err (!%p4269_p13)
}
 0x89a   : > { %s4343_s12 = smov 64   ;;  %s4344_s13 = smov 128  }
 0x89b   : > { %s4345_s21 = smov 4  }
 0x89c   : > { %3800 = dma.vmem_to_hbm [thread:$0]  (%p5146_p7), %s5067_s6, 512, %s5072_s22, %s5076_s27, %s4343_s12, %s4344_s13, %s4345_s21  }
 0x89d PF: > { %s3285_s14 = sand.u32 1, %s4311_s15   ;;  %p5147_p2 = scmp.ne.s32.totalorder %s5137_s29, 0 }
 0x89e   : > { %p5148_p4 = scmp.ge.s32.totalorder %s4331_s20, 2  ;;  %s3286_s5 = scalar_lea.sflag [#allocation7], %s3285_s14 }
 0x8a0   : > { %p3814_p0 = pnand %p5148_p4, %p5147_p2 }
 0x8a2   : > { %4306 = dma.done.wait (!%p3814_p0), %s3286_s5, 512  }
 0x8a3   : > { %4308 = vsyncadd (!%p3814_p0), %s3286_s5, 4294966784  ;;  %s21_s20 = sadd.s32 1, %s4331_s20   ;;  %s5149_s15 = smov %s4315_s16 }
 0x8a4   : > { %p18_p12 = scmp.ge.s32.totalorder %s21_s20, 4   ;;  %s5150_s16 = smov %s4319_s17 }
 0x8a5   : > { %s5151_s17 = smov %s4433_s30  ;;  %s5152_s18 = smov %s4327_s19 }
 0x8a6   : > { %s5153_s19 = smov %s5155_s23  ;;  %20 = sbr.rel (!%p18_p12) target bundleno = 7 (0x7), region = 114 }
 0x8ad   :  { %3291 = vsyncpa [#allocation6], 1 }
 0x8ae   :  { %3293 = vsyncpa [#allocation6 + $0x1], 1 }
 0x8af   :  { %3294 = vsyncpa [#allocation9], 1 }
 0x8b0   :  { %3295 = vsyncpa [#allocation7], 1 }
 0x8b1   :  { %3297 = vsyncpa [#allocation7 + $0x1], 1 }

// kernel: tpu_custom_call.1
= control target key start
LH: loop header
LB: loop body
LE: loop exit
PB: predicated region body
PF: predicated region fallthrough
CT: control target
= control target key end

     0   :  { %s5338_s0 = inlined_call_operand.hbm [shape: bf16[64,128], index: 0, kind: input, shape index: {}]   ;;  %s5339_s1 = inlined_call_operand.hbm [shape: bf16[2,128,512], index: 1, kind: input, shape index: {}]   ;;  %s5340_s2 = inlined_call_operand.hbm [shape: bf16[2,128,512], index: 2, kind: input, shape index: {}]   ;;  %s5341_s3 = inlined_call_operand.vmem [shape: f32[2,1,512], index: 3, kind: input, shape index: {}]   ;;  %s5342_s4 = inlined_call_operand.hbm [shape: bf16[64,256], index: 4, kind: output, shape index: {}]  }
   0x1   :  { %5355 = sst [smem:[#allocation17_spill]] %s5339_s1 }
   0x2   :  { %9 = vsyncpa [#allocation6], 0 }
   0x3   :  { %11 = vsyncpa [#allocation6 + $0x1], 0 }
   0x4   :  { %12 = vsyncpa [#allocation9], 0 }
   0x5   :  { %14 = vsyncpa [#allocation9 + $0x1], 0 }
   0x6   :  { %15 = vsyncpa [#allocation7], 0 }
   0x7   :  { %17 = vsyncpa [#allocation7 + $0x1], 0  ;;  %s4421_s15 = smov 0   ;;  %s4423_s16 = smov 0  }
   0x8   :  { %s4425_s17 = smov 0   ;;  %s4427_s18 = smov 0  }
   0x9   :  { %s4429_s19 = smov 0   ;;  %s4431_s20 = smov 0  }
   0xa LB: > { %5356 = sst [smem:[#allocation15_spill]] %s4377_s19  ;;  %s4452_s21 = sadd.s32 4294967295, %s4381_s20   ;;  %s4381_s20 = sphi %s4431_s20, %s23_s20   ;;  %s4377_s19 = sphi %s4429_s19, %s5381_s19   ;;  %s4373_s18 = sphi %s4427_s18, %s5380_s18   ;;  %s4369_s17 = sphi %s4425_s17, %s5384_s17   ;;  %s4365_s16 = sphi %s4423_s16, %s5383_s16   ;;  %s4361_s15 = sphi %s4421_s15, %s5382_s15  }
   0xb   : > { %s3475_s22 = sadd.s32 4294967294, %s4381_s20   ;;  %s35_s23 = sadd.s32 1, %s4377_s19 }
   0xc   : > { %s76_s24 = sadd.s32 1, %s4369_s17  ;;  %p37_p0 = scmp.ge.s32.totalorder %s35_s23, 2 }
   0xd   : > { %p83_p1 = scmp.ne.s32.totalorder %s4369_s17, %s4365_s16  ;;  %p5345_p2 = scmp.eq.s32.totalorder %s4381_s20, 0 }
   0xe   : > { %p89_p3 = scmp.ne.s32.totalorder %s4365_s16, %s4361_s15  ;;  %s5386_s23 = smov (%p37_p0, %s35_s23), 0 }
   0xf   : > { %5357 = sst [smem:[#allocation16_spill]] %s5386_s23  ;;  %p4466_p4 = por %p5345_p2, %p83_p1 }
  0x10   : > { %p5343_p5 = scmp.eq.s32.totalorder %s4452_s21, 0  ;;  %s73_s26 = ssub.s32 %s4377_s19, %s5386_s23 }
  0x11   : > { %p175_p6 = scmp.eq.s32.totalorder %s4452_s21, 1  ;;  %p74_p7 = scmp.eq.s32.totalorder %s73_s26, 0 }
  0x12   : > { %p4476_p8 = por %p5343_p5, %p89_p3  ;;  %p181_p10 = scmp.eq.s32.totalorder %s3475_s22, 1 }
  0x13   : > { %p4480_p9 = por %p175_p6, %p83_p1  ;;  %p5344_p13 = scmp.lt.s32.totalorder %s4381_s20, 2 }
  0x14   : > { %s5359_s27 = scalar_select %p4476_p8, 1, 0 }
  0x15   : > { %s5360_s28 = scalar_select %p4480_p9, 1, 0 }
  0x16   : > { %s4485_s29 = scalar_select %p74_p7, %s4369_s17, %s76_s24  }
  0x17   : > { %p4487_p11 = por %p181_p10, %p89_p3  ;;  %s226_s5 = sand.u32 1, %s4381_s20  }
  0x18   : > { %s228_s6 = sand.u32 1, %s4369_s17   ;;  %s3818_s8 = sshll.u32 %s4377_s19, 12 }
  0x19   : > { %s5361_s30 = scalar_select %p4487_p11, 1, 0 }
  0x1a   : > { %s4495_s7 = sshll.u32 %s228_s6, 8  ;;  %s5362_s1 = sld [smem:[#allocation17_spill]] }
  0x1b   : > { %s230_s12 = scalar_lea.vmem [#allocation8], %s4495_s7  ;;  %p4512_p0 = pnand %p5344_p13, %p4466_p4 }
  0x1c   : > { %s237_s13 = sshll.u32 %s230_s12, 4  ;;  %s4516_s22 = scalar_lea.sflag [#allocation9], %s226_s5  ;;  %s4506_s13 = int_to_ptr.vmem [resolvable:$true] %s237_s13 }
  0x1d   : > { %s5363_s14 = scalar_select %p4512_p0, 1, 0 }
  0x1e   : > { %p5349_p3 = pneg %p4512_p0 }
  0x20   : > { %s4503_s11 = scalar_lea.hbm %s5362_s1, %s3818_s8  ;;  %s4212_s25 = scalar_lea.hbm %s5362_s1, 8192 }
  0x21   : > { %s4207_s24 = scalar_lea.hbm %s4503_s11, 4096  ;;  %p4213_p4 = scmp.lt.u32.totalorder %s4503_s11, %s5362_s1 }
  0x22   : > { %p4208_p1 = scmp.ne.s32.totalorder %s4503_s11, %s4207_s24  ;;  %p4214_p10 = scmp.lt.u32.totalorder %s4212_s25, %s4207_s24 }
  0x23   : > { %p4216_p5 = scmp.lt.u32.totalorder %s4207_s24, %s4503_s11 }
  0x24   : > { %p4210_p6 = pnand %p5349_p3, %p4208_p1  ;;  %p4215_p12 = por %p4214_p10, %p4213_p4 }
  0x26   : > { %p4211_p7 = pneg %p4210_p6  ;;  %p4217_p13 = por %p4216_p5, %p4215_p12 }
  0x28   : > { %p4218_p2 = pnand %p4217_p13, %p4211_p7 }
  0x2a   : > { %4221 = shalt.err (!%p4218_p2)
}
  0x2b   : > { %s4222_s5 = scalar_lea.vmem %s4506_s13, 4096  ;;  %s4383_s12 = smov [#allocation8]  }
  0x2c   : > { %p4223_p1 = scmp.ne.s32.totalorder %s4506_s13, %s4222_s5  ;;  %s4227_s26 = sshll.u32 %s4383_s12, 4  ;;  %s4228_s26 = int_to_ptr.vmem [resolvable:$false] %s4227_s26 }
  0x2d   : > { %s4229_s6 = scalar_lea.vmem %s4228_s26, 8192  ;;  %p4230_p9 = scmp.lt.s32.totalorder %s4506_s13, %s4228_s26 }
  0x2e   : > { %p4225_p6 = pnand %p4223_p1, %p5349_p3  ;;  %p4231_p4 = scmp.lt.s32.totalorder %s4229_s6, %s4222_s5 }
  0x30   : > { %p4226_p11 = pneg %p4225_p6  ;;  %p4232_p10 = por %p4231_p4, %p4230_p9 }
  0x32   : > { %p4233_p5 = pnand %p4232_p10, %p4226_p11 }
  0x34   : > { %4236 = shalt.err (!%p4233_p5)
}
  0x35   : > { %s5348_s24 = smov 256   ;;  %s5353_s25 = smov 16  }
  0x36   : > { %3861 = dma.hbm_to_vmem [thread:$0]  (!%p4512_p0), %s4503_s11, 4096, %s4506_s13, %s4516_s22, %s5348_s24, %s5348_s24, %s5353_s25  }
  0x37   : > { %s4552_s5 = scalar_lea.hbm %s5340_s2, %s3818_s8  ;;  %s251_s12 = scalar_lea.vmem [#allocation10], %s4495_s7 }
  0x38   : > { %s258_s26 = sshll.u32 %s251_s12, 4  ;;  %p3485_p2 = scmp.ge.s32.totalorder %s4381_s20, 1  ;;  %s4555_s26 = int_to_ptr.vmem [resolvable:$true] %s258_s26 }
  0x39   : > { %p273_p9 = scmp.lt.s32.totalorder %s4381_s20, 3  ;;  %s4386_s1 = smov [#allocation5]  }
  0x3a   : > { %s216_s23 = sshll.u32 %s4386_s1, 4  ;;  %p5365_p12 = scmp.eq.s32.totalorder %s4381_s20, 0  ;;  %s217_s23 = int_to_ptr.vmem [resolvable:$true] %s216_s23 }
  0x3b   : > { %p4559_p11 = pnand %p3485_p2, %p273_p9  ;;  %p5366_p13 = scmp.lt.s32.totalorder %s4381_s20, 2 }
  0x3c   : > { %s4237_s13 = scalar_lea.hbm %s5338_s0, 512 }
  0x3d   : > { %s5364_s6 = scalar_select %p4559_p11, 1, 0 }
  0x3e   : > { %p4567_p7 = pnand %p5366_p13, %p5365_p12  ;;  %p4238_p1 = scmp.ne.s32.totalorder %s5338_s0, %s4237_s13 }
  0x3f   : > { %p4244_p5 = scmp.lt.u32.totalorder %s4237_s13, %s5338_s0 }
  0x40   : > { %p4239_p6 = pneg %p4567_p7 }
  0x42   : > { %p4240_p4 = pnand %p4239_p6, %p4238_p1 }
  0x44   : > { %p4241_p10 = pneg %p4240_p4 }
  0x46   : > { %p4246_p2 = pnand %p4244_p5, %p4241_p10 }
  0x48   : > { %4249 = shalt.err (!%p4246_p2)
}
  0x49   : > { %s4250_s24 = scalar_lea.vmem %s217_s23, 512  ;;  %s4257_s8 = scalar_lea.vmem %s217_s23, 1024 }
  0x4a   : > { %p4251_p9 = scmp.ne.s32.totalorder %s217_s23, %s4250_s24  ;;  %p4258_p3 = scmp.lt.s32.totalorder %s217_s23, %s217_s23 }
  0x4b   : > { %p4259_p8 = scmp.lt.s32.totalorder %s4257_s8, %s4250_s24 }
  0x4c   : > { %p4253_p12 = pnand %p4251_p9, %p4239_p6 }
  0x4d   : > { %p4260_p11 = por %p4259_p8, %p4258_p3 }
  0x4e   : > { %p4254_p13 = pneg %p4253_p12 }
  0x50   : > { %p4261_p0 = pnand %p4260_p11, %p4254_p13 }
  0x52   : > { %4264 = shalt.err (!%p4261_p0)
}
  0x53   : > { %s4387_s7 = smov 64   ;;  %s4388_s13 = smov 4  }
  0x54   : > { %3858 = dma.hbm_to_vmem [thread:$0]  (!%p4567_p7), %s5338_s0, 512, %s217_s23, [#allocation6], %s4387_s7, %s4387_s7, %s4388_s13  }
  0x55   : > { %s4265_s1 = scalar_lea.hbm %s4552_s5, 4096  ;;  %p5368_p6 = scmp.ne.s32.totalorder %s5363_s14, 0 }
  0x56   : > { %p4266_p1 = scmp.ne.s32.totalorder %s4552_s5, %s4265_s1  ;;  %s4270_s8 = scalar_lea.hbm %s5340_s2, 8192 }
  0x57   : > { %p5369_p4 = pneg %p5368_p6  ;;  %p4271_p0 = scmp.lt.u32.totalorder %s4552_s5, %s5340_s2 }
  0x58   : > { %p4272_p11 = scmp.lt.u32.totalorder %s4270_s8, %s4265_s1  ;;  %p4274_p5 = scmp.lt.u32.totalorder %s4265_s1, %s4552_s5 }
  0x59   : > { %p4268_p8 = pnand %p4266_p1, %p5369_p4 }
  0x5a   : > { %p4273_p10 = por %p4272_p11, %p4271_p0 }
  0x5b   : > { %p4269_p3 = pneg %p4268_p8 }
  0x5c   : > { %p4275_p2 = por %p4274_p5, %p4273_p10 }
  0x5e   : > { %p4276_p9 = pnand %p4275_p2, %p4269_p3 }
  0x60   : > { %4279 = shalt.err (!%p4276_p9)
}
  0x61   : > { %s4280_s23 = scalar_lea.vmem %s4555_s26, 4096  ;;  %p5370_p12 = pmov %p5369_p4 }
  0x62   : > { %p4281_p7 = scmp.ne.s32.totalorder %s4555_s26, %s4280_s23  ;;  %s4389_s11 = smov [#allocation10]  }
  0x63   : > { %s4285_s7 = sshll.u32 %s4389_s11, 4  ;;  %s4286_s7 = int_to_ptr.vmem [resolvable:$false] %s4285_s7 }
  0x64   : > { %p4283_p13 = pnand %p4281_p7, %p5370_p12  ;;  %s4287_s19 = scalar_lea.vmem %s4286_s7, 8192 }
  0x65   : > { %p4288_p4 = scmp.lt.s32.totalorder %s4555_s26, %s4286_s7  ;;  %p4289_p8 = scmp.lt.s32.totalorder %s4287_s19, %s4280_s23 }
  0x66   : > { %p4284_p1 = pneg %p4283_p13 }
  0x67   : > { %p4290_p0 = por %p4289_p8, %p4288_p4 }
  0x69   : > { %p4291_p11 = pnand %p4290_p0, %p4284_p1 }
  0x6b   : > { %4294 = shalt.err (!%p4291_p11)
}
  0x6c   : > { %s5371_s25 = smov 16   ;;  %s5372_s13 = smov 256  }
  0x6d   : > { %3864 = dma.hbm_to_vmem [thread:$0]  (!%p5368_p6), %s4552_s5, 4096, %s4555_s26, %s4516_s22, %s5372_s13, %s5372_s13, %s5371_s25  }
  0x6e   : > { %p5373_p3 = scmp.ne.s32.totalorder %s5364_s6, 0 }
  0x6f   : > { %p5374_p10 = scmp.eq.s32.totalorder (!%p5373_p3), %s4452_s21, 0 }
  0x70   : > { %277 = sbr.rel (%p5373_p3) target bundleno = 2220 (0x8ac), region = 36 }
  0x77   : > { %4348 = dma.done.wait (%p5374_p10), [#allocation6], 512   ;;  %p5375_p5 = pmov %p5374_p10 }
  0x78   : > { %s288_s14 = sand.u32 1, %s4452_s21   ;;  %s4622_s9 = sand.u32 1, %s4365_s16  }
  0x79   : > { %4350 = vsyncadd (%p5375_p5), [#allocation6], 4294966784  ;;  %s3487_s10 = sshll.u32 %s4622_s9, 8  ;;  %s289_s1 = scalar_lea.sflag [#allocation9], %s288_s14 }
  0x7a   : > { %s4627_s22 = scalar_lea.vmem [#allocation8], %s3487_s10  ;;  %p5376_p6 = scmp.ne.s32.totalorder %s5359_s27, 0 }
  0x7c   : > { %4352 = dma.done.wait (%p5376_p6), %s289_s1, 8192  }
  0x7d   : > { %4354 = vsyncadd (%p5376_p6), %s289_s1, 4294959104  ;;  %v4390_v0 = vmov 0   ;;  %v3931_v1 = vld [vmem:[%s4627_s22 + $0x4] ss:$16 sps:$4 sm:$0xff]   ;;  %v3933_v2 = vld [vmem:[%s4627_s22 + $0xc] ss:$16 sps:$4 sm:$0xff]  }
  0x7e   : > { %639 = vmatprep.mubr.bf16.mxu0 %v4390_v0  ;;  %712 = vmatprep.mubr.bf16.mxu1 %v4390_v0  ;;  %v3935_v3 = vld [vmem:[%s4627_s22] ss:$16 sps:$4 sm:$0xff]   ;;  %v3936_v4 = vld [vmem:[%s4627_s22 + $0x8] ss:$16 sps:$4 sm:$0xff]   ;;  %v3937_v5 = vld [vmem:[%s4627_s22 + $0x24] ss:$16 sps:$4 sm:$0xff]  }
  0x7f   : > { %607 = vmatprep.subr.bf16.mxu0 %v3931_v1  ;;  %680 = vmatprep.subr.bf16.mxu1 %v3933_v2  ;;  %v3939_v6 = vld [vmem:[%s4627_s22 + $0x2c] ss:$16 sps:$4 sm:$0xff]   ;;  %v3941_v7 = vld [vmem:[%s4627_s22 + $0x20] ss:$16 sps:$4 sm:$0xff]   ;;  %v3942_v8 = vld [vmem:[%s4627_s22 + $0x28] ss:$16 sps:$4 sm:$0xff]  }
  0x80   : > { %608 = vmatpush1.bf16.msra.mxu0 %v3935_v3  ;;  %681 = vmatpush1.bf16.msra.mxu1 %v3936_v4  ;;  %v3943_v9 = vld [vmem:[%s4627_s22 + $0x44] ss:$16 sps:$4 sm:$0xff]   ;;  %v3945_v10 = vld [vmem:[%s4627_s22 + $0x4c] ss:$16 sps:$4 sm:$0xff]   ;;  %v3947_v11 = vld [vmem:[%s4627_s22 + $0x40] ss:$16 sps:$4 sm:$0xff]  }
  0x81   : > { %609 = vmatprep.subr.bf16.mxu0 %v3937_v5  ;;  %682 = vmatprep.subr.bf16.mxu1 %v3939_v6  ;;  %v3948_v12 = vld [vmem:[%s4627_s22 + $0x48] ss:$16 sps:$4 sm:$0xff]   ;;  %v3949_v13 = vld [vmem:[%s4627_s22 + $0x64] ss:$16 sps:$4 sm:$0xff]   ;;  %v3951_v14 = vld [vmem:[%s4627_s22 + $0x6c] ss:$16 sps:$4 sm:$0xff]  }
  0x82   : > { %v3953_v15 = vld [vmem:[%s4627_s22 + $0x60] ss:$16 sps:$4 sm:$0xff]   ;;  %v3954_v16 = vld [vmem:[%s4627_s22 + $0x68] ss:$16 sps:$4 sm:$0xff]   ;;  %v3955_v17 = vld [vmem:[%s4627_s22 + $0x84] ss:$16 sps:$4 sm:$0xff]  }
  0x83   : > { %v3957_v18 = vld [vmem:[%s4627_s22 + $0x8c] ss:$16 sps:$4 sm:$0xff]   ;;  %v3959_v19 = vld [vmem:[%s4627_s22 + $0x80] ss:$16 sps:$4 sm:$0xff]   ;;  %v3960_v20 = vld [vmem:[%s4627_s22 + $0x88] ss:$16 sps:$4 sm:$0xff]  }
  0x84   : > { %610 = vmatpush1.bf16.msra.mxu0 %v3941_v7  ;;  %683 = vmatpush1.bf16.msra.mxu1 %v3942_v8  ;;  %v3961_v21 = vld [vmem:[%s4627_s22 + $0xa4] ss:$16 sps:$4 sm:$0xff]   ;;  %v3963_v22 = vld [vmem:[%s4627_s22 + $0xac] ss:$16 sps:$4 sm:$0xff]   ;;  %v3965_v23 = vld [vmem:[%s4627_s22 + $0xa0] ss:$16 sps:$4 sm:$0xff]   ;;  %v403_v7 = vlaneseq }
  0x85   : > { %611 = vmatprep.subr.bf16.mxu0 %v3943_v9  ;;  %684 = vmatprep.subr.bf16.mxu1 %v3945_v10  ;;  %v3966_v24 = vld [vmem:[%s4627_s22 + $0xa8] ss:$16 sps:$4 sm:$0xff]   ;;  %v3967_v25 = vld [vmem:[%s4627_s22 + $0xc4] ss:$16 sps:$4 sm:$0xff]   ;;  %v3969_v26 = vld [vmem:[%s4627_s22 + $0xcc] ss:$16 sps:$4 sm:$0xff]  }
  0x86   : > { %s4663_s21 = scalar_lea.vmem [#allocation10], %s3487_s10  ;;  %v3971_v27 = vld [vmem:[%s4627_s22 + $0xc0] ss:$16 sps:$4 sm:$0xff]   ;;  %v3972_v28 = vld [vmem:[%s4627_s22 + $0xc8] ss:$16 sps:$4 sm:$0xff]   ;;  %v4391_v6 = vmov 0.0|0.0  }
  0x87   : > { %v3973_v29 = vld [vmem:[%s4627_s22 + $0xe4] ss:$16 sps:$4 sm:$0xff]   ;;  %v3975_v30 = vld [vmem:[%s4627_s22 + $0xec] ss:$16 sps:$4 sm:$0xff]   ;;  %v3977_v31 = vld [vmem:[%s4627_s22 + $0xe0] ss:$16 sps:$4 sm:$0xff]  }
  0x88   : > { %612 = vmatpush1.bf16.msra.mxu0 %v3947_v11  ;;  %685 = vmatpush1.bf16.msra.mxu1 %v3948_v12  ;;  %v3978_v32 = vld [vmem:[%s4627_s22 + $0xe8] ss:$16 sps:$4 sm:$0xff]   ;;  %v4672_v33 = vld [vmem:[%s4663_s21 + $0x4] ss:$16 sps:$4 sm:$0xff]   ;;  %v4675_v34 = vld [vmem:[%s4663_s21 + $0xc] ss:$16 sps:$4 sm:$0xff]  }
  0x89   : > { %613 = vmatprep.subr.bf16.mxu0 %v3949_v13  ;;  %686 = vmatprep.subr.bf16.mxu1 %v3951_v14  ;;  %v3979_v35 = vld [vmem:[#allocation5] sm:$0xff]   ;;  %v4681_v37 = vld [vmem:[%s4663_s21 + $0x8] ss:$16 sps:$4 sm:$0xff]   ;;  %v4689_v39 = vld [vmem:[%s4663_s21 + $0x2c] ss:$16 sps:$4 sm:$0xff]   ;;  %p345_p2 = scmp.lt.s32.totalorder %s4373_s18, 1 }
  0x8a   : > { %v4678_v36 = vld [vmem:[%s4663_s21] ss:$16 sps:$4 sm:$0xff]   ;;  %v4686_v38 = vld [vmem:[%s4663_s21 + $0x24] ss:$16 sps:$4 sm:$0xff]   ;;  %v4697_v41 = vld [vmem:[%s4663_s21 + $0x28] ss:$16 sps:$4 sm:$0xff]  }
  0x8b   : > { %v4692_v40 = vld [vmem:[%s4663_s21 + $0x20] ss:$16 sps:$4 sm:$0xff]   ;;  %v4702_v42 = vld [vmem:[%s4663_s21 + $0x44] ss:$16 sps:$4 sm:$0xff]   ;;  %v4705_v43 = vld [vmem:[%s4663_s21 + $0x4c] ss:$16 sps:$4 sm:$0xff]  }
  0x8c   : > { %614 = vmatpush1.bf16.msra.mxu0 %v3953_v15  ;;  %687 = vmatpush1.bf16.msra.mxu1 %v3954_v16  ;;  %v3989_v44 = vld [vmem:[#allocation5 + $0x8] sm:$0xff]   ;;  %v4710_v45 = vld [vmem:[%s4663_s21 + $0x40] ss:$16 sps:$4 sm:$0xff]   ;;  %v4720_v47 = vld [vmem:[%s4663_s21 + $0x64] ss:$16 sps:$4 sm:$0xff]   ;;  %s346_s27 = scalar_select %p345_p2, %s4373_s18, 1 }
  0x8d   : > { %615 = vmatprep.subr.bf16.mxu0 %v3955_v17  ;;  %688 = vmatprep.subr.bf16.mxu1 %v3957_v18  ;;  %v4715_v46 = vld [vmem:[%s4663_s21 + $0x48] ss:$16 sps:$4 sm:$0xff]   ;;  %v4723_v48 = vld [vmem:[%s4663_s21 + $0x6c] ss:$16 sps:$4 sm:$0xff]   ;;  %v4726_v49 = vld [vmem:[%s4663_s21 + $0x60] ss:$16 sps:$4 sm:$0xff]  }
  0x8e   : > { %v4729_v50 = vld [vmem:[%s4663_s21 + $0x68] ss:$16 sps:$4 sm:$0xff]   ;;  %v4734_v51 = vld [vmem:[%s4663_s21 + $0x84] ss:$16 sps:$4 sm:$0xff]   ;;  %v4739_v52 = vld [vmem:[%s4663_s21 + $0x8c] ss:$16 sps:$4 sm:$0xff]  }
  0x8f   : > { %v4002_v53 = vld [vmem:[#allocation5 + $0x10] sm:$0xff]   ;;  %v4747_v55 = vld [vmem:[%s4663_s21 + $0x88] ss:$16 sps:$4 sm:$0xff]   ;;  %v4755_v57 = vld [vmem:[%s4663_s21 + $0xac] ss:$16 sps:$4 sm:$0xff]   ;;  %s3490_s5 = sshll.u32 %s346_s27, 2 }
  0x90   : > { %616 = vmatpush1.bf16.msra.mxu0 %v3959_v19  ;;  %689 = vmatpush1.bf16.msra.mxu1 %v3960_v20  ;;  %v4744_v54 = vld [vmem:[%s4663_s21 + $0x80] ss:$16 sps:$4 sm:$0xff]   ;;  %v4750_v56 = vld [vmem:[%s4663_s21 + $0xa4] ss:$16 sps:$4 sm:$0xff]   ;;  %v4763_v59 = vld [vmem:[%s4663_s21 + $0xa8] ss:$16 sps:$4 sm:$0xff]   ;;  %s348_s24 = scalar_lea.vmem %s5341_s3, %s3490_s5 }
  0x91   : > { %617 = vmatprep.subr.bf16.mxu0 %v3961_v21  ;;  %690 = vmatprep.subr.bf16.mxu1 %v3963_v22  ;;  %v4760_v58 = vld [vmem:[%s4663_s21 + $0xa0] ss:$16 sps:$4 sm:$0xff]   ;;  %v4766_v60 = vld [vmem:[%s4663_s21 + $0xc4] ss:$16 sps:$4 sm:$0xff]   ;;  %v4769_v61 = vld [vmem:[%s4663_s21 + $0xcc] ss:$16 sps:$4 sm:$0xff]  }
  0x92   : > { %v4015_v62 = vld [vmem:[#allocation5 + $0x18] sm:$0xff]   ;;  %v4778_v63 = vld [vmem:[%s4663_s21 + $0xc0] ss:$16 sps:$4 sm:$0xff]   ;;  %v4784_v2 = vld [vmem:[%s4663_s21 + $0xe4] ss:$16 sps:$4 sm:$0xff]   ;;  %v404_v8 = vshrl.u32 %v403_v7, 7 }
  0x93   : > { %v4781_v1 = vld [vmem:[%s4663_s21 + $0xc8] ss:$16 sps:$4 sm:$0xff]   ;;  %v4789_v3 = vld [vmem:[%s4663_s21 + $0xec] ss:$16 sps:$4 sm:$0xff]   ;;  %v4794_v4 = vld [vmem:[%s4663_s21 + $0xe0] ss:$16 sps:$4 sm:$0xff]  }
  0x94   : > { %618 = vmatpush1.bf16.msra.mxu0 %v3965_v23  ;;  %691 = vmatpush1.bf16.msra.mxu1 %v3966_v24  ;;  %v4797_v5 = vld [vmem:[%s4663_s21 + $0xe8] ss:$16 sps:$4 sm:$0xff]   ;;  %v405_v9 = vsub.s32 0, %v404_v8  ;;  %v413_v10 = vsub.s32 2, %v404_v8  ;;  %v401_v11 = vld [vmem:[%s348_s24] sm:$0xf] }
  0x95   : > { %619 = vmatprep.subr.bf16.mxu0 %v3967_v25  ;;  %692 = vmatprep.subr.bf16.mxu1 %v3969_v26  ;;  %v409_v12 = vsub.s32 1, %v404_v8  ;;  %v417_v13 = vsub.s32 3, %v404_v8  ;;  %s787_s12 = smul.u32 56, %s4373_s18  ;;  %s3489_s7 = sshll.u32 %s4622_s9, 5 }
  0x96   : > { %v4848_v14 = vrot.slane %v401_v11, %v405_v9  ;;  %v4850_v15 = vrot.slane %v401_v11, %v413_v10  ;;  %s4897_s25 = scalar_lea.vmem [#allocation11], %s3489_s7  ;;  %s3840_s14 = smul.u32 40, %s4373_s18 }
  0x97   : > { %v4852_v16 = vrot.slane %v401_v11, %v409_v12  ;;  %v4854_v17 = vrot.slane %v401_v11, %v417_v13  ;;  %s4889_s8 = sshra.s32 %s787_s12, 3  ;;  %s3841_s6 = smul.u32 24, %s4373_s18 }
  0x98   : > { %620 = vmatpush1.bf16.msra.mxu0 %v3971_v27  ;;  %693 = vmatpush1.bf16.msra.mxu1 %v3972_v28  ;;  %s3820_s23 = sshll.u32 %s4889_s8, 5  ;;  %s3561_s19 = sshll.u32 %s4889_s8, 2 }
  0x99   : > { %621 = vmatprep.subr.bf16.mxu0 %v3973_v29  ;;  %694 = vmatprep.subr.bf16.mxu1 %v3975_v30  ;;  %s792_s11 = scalar_lea.vmem [#allocation2], %s3820_s23  ;;  %s1096_s13 = scalar_lea.vmem %s4897_s25, %s3561_s19 [#allocation11] }
  0x9a   : > { %s4933_s10 = sadd.s32 8, %s3840_s14  ;;  %s5078_s24 = sadd.s32 16, %s3841_s6 }
  0x9b   : > { %s1101_s1 = sshra.s32 %s4933_s10, 3  ;;  %s1413_s12 = sshra.s32 %s5078_s24, 3 }
  0x9c   : > { %622 = vmatpush1.bf16.msra.mxu0 %v3977_v31  ;;  %695 = vmatpush1.bf16.msra.mxu1 %v3978_v32  ;;  %s3823_s22 = sshll.u32 %s1101_s1, 5  ;;  %s3597_s5 = sshll.u32 %s1101_s1, 2 }
  0x9d   : > { %990 = vmatprep.subr.bf16.mxu0 %v4672_v33  ;;  %1031 = vmatprep.subr.bf16.mxu1 %v4675_v34  ;;  %s1105_s27 = scalar_lea.vmem [#allocation2], %s3823_s22  ;;  %s1408_s26 = scalar_lea.vmem %s4897_s25, %s3597_s5 [#allocation11] }
  0x9e   : > { %s3826_s8 = sshll.u32 %s1413_s12, 5  ;;  %s3827_s19 = sshll.u32 %s4373_s18, 3 }
  0x9f   : > { %640 = vmatmul.mubr.bf16.vlgmr.msra.gmra.mrb[0].mxu0 %v3979_v35  ;;  %713 = vmatmul.mubr.bf16.vlgmr.msra.gmra.mrb[0].mxu1 %v3979_v35  ;;  %s1417_s23 = scalar_lea.vmem [#allocation2], %s3826_s8  ;;  %s2033_s5 = ssub.s32 4, %s4373_s18 }
  0xa0   : > { %991 = vmatpush1.bf16.msra.mxu0 %v4678_v36  ;;  %1032 = vmatpush1.bf16.msra.mxu1 %v4681_v37  ;;  %p5377_p7 = scmp.ne.s32.totalorder %s5360_s28, 0 }
  0xa1   : > { %992 = vmatprep.subr.bf16.mxu0 %v4686_v38  ;;  %649 = vmatprep.mubr.bf16.mxu0 %v4390_v0 }
  0xa2   : > { %722 = vmatprep.mubr.bf16.mxu1 %v4390_v0  ;;  %1033 = vmatprep.subr.bf16.mxu1 %v4689_v39 }
  0xa4   : > { %993 = vmatpush1.bf16.msra.mxu0 %v4692_v40  ;;  %1034 = vmatpush1.bf16.msra.mxu1 %v4697_v41 }
  0xa5   : > { %994 = vmatprep.subr.bf16.mxu0 %v4702_v42  ;;  %1035 = vmatprep.subr.bf16.mxu1 %v4705_v43 }
  0xa7   : > { %650 = vmatmul.mubr.bf16.gmra.mrb[4].mxu0 %v3989_v44  ;;  %723 = vmatmul.mubr.bf16.gmra.mrb[4].mxu1 %v3989_v44 }
  0xa8   : > { %995 = vmatpush1.bf16.msra.mxu0 %v4710_v45  ;;  %1036 = vmatpush1.bf16.msra.mxu1 %v4715_v46 }
  0xa9   : > { %996 = vmatprep.subr.bf16.mxu0 %v4720_v47  ;;  %659 = vmatprep.mubr.bf16.mxu0 %v4390_v0 }
  0xaa   : > { %732 = vmatprep.mubr.bf16.mxu1 %v4390_v0  ;;  %1037 = vmatprep.subr.bf16.mxu1 %v4723_v48 }
  0xac   : > { %997 = vmatpush1.bf16.msra.mxu0 %v4726_v49  ;;  %1038 = vmatpush1.bf16.msra.mxu1 %v4729_v50 }
  0xad   : > { %998 = vmatprep.subr.bf16.mxu0 %v4734_v51  ;;  %1039 = vmatprep.subr.bf16.mxu1 %v4739_v52 }
  0xaf   : > { %660 = vmatmul.mubr.bf16.gmra.mrb[8].mxu0 %v4002_v53  ;;  %733 = vmatmul.mubr.bf16.gmra.mrb[8].mxu1 %v4002_v53 }
  0xb0   : > { %999 = vmatpush1.bf16.msra.mxu0 %v4744_v54  ;;  %1040 = vmatpush1.bf16.msra.mxu1 %v4747_v55 }
  0xb1   : > { %1000 = vmatprep.subr.bf16.mxu0 %v4750_v56  ;;  %669 = vmatprep.mubr.bf16.mxu0 %v4390_v0 }
  0xb2   : > { %742 = vmatprep.mubr.bf16.mxu1 %v4390_v0  ;;  %1041 = vmatprep.subr.bf16.mxu1 %v4755_v57 }
  0xb4   : > { %1001 = vmatpush1.bf16.msra.mxu0 %v4760_v58  ;;  %1042 = vmatpush1.bf16.msra.mxu1 %v4763_v59 }
  0xb5   : > { %1002 = vmatprep.subr.bf16.mxu0 %v4766_v60  ;;  %1043 = vmatprep.subr.bf16.mxu1 %v4769_v61 }
  0xb7   : > { %670 = vmatmul.mubr.bf16.gmra.mrb[12].mxu0 %v4015_v62  ;;  %743 = vmatmul.mubr.bf16.gmra.mrb[12].mxu1 %v4015_v62 }
  0xb8   : > { %1003 = vmatpush1.bf16.msra.mxu0 %v4778_v63  ;;  %1044 = vmatpush1.bf16.msra.mxu1 %v4781_v1 }
  0xb9   : > { %1004 = vmatprep.subr.bf16.mxu0 %v4784_v2  ;;  %1022 = vmatprep.mubr.bf16.mxu0 %v4390_v0 }
  0xba   : > { %1045 = vmatprep.subr.bf16.mxu1 %v4789_v3  ;;  %1063 = vmatprep.mubr.bf16.mxu1 %v4390_v0 }
  0xbc   : > { %1005 = vmatpush1.bf16.msra.mxu0 %v4794_v4  ;;  %1046 = vmatpush1.bf16.msra.mxu1 %v4797_v5 }
  0xbd   : > { %1302 = vmatprep.subr.bf16.mxu0 %v4672_v33  ;;  %1343 = vmatprep.subr.bf16.mxu1 %v4675_v34 }
  0xbf   : > { %1023 = vmatmul.mubr.bf16.vlgmr.msra.gmra.mrb[16].mxu0 %v4391_v6  ;;  %1064 = vmatmul.mubr.bf16.vlgmr.msra.gmra.mrb[16].mxu1 %v4391_v6 }
  0xc0   : > { %1303 = vmatpush1.bf16.msra.mxu0 %v4678_v36  ;;  %1344 = vmatpush1.bf16.msra.mxu1 %v4681_v37 }
  0xc1   : > { %1304 = vmatprep.subr.bf16.mxu0 %v4686_v38  ;;  %1345 = vmatprep.subr.bf16.mxu1 %v4689_v39 }
  0xc2   : > { %1334 = vmatprep.mubr.bf16.mxu0 %v4390_v0  ;;  %1375 = vmatprep.mubr.bf16.mxu1 %v4390_v0 }
  0xc4   : > { %1305 = vmatpush1.bf16.msra.mxu0 %v4692_v40  ;;  %1346 = vmatpush1.bf16.msra.mxu1 %v4697_v41 }
  0xc5   : > { %1306 = vmatprep.subr.bf16.mxu0 %v4702_v42  ;;  %1347 = vmatprep.subr.bf16.mxu1 %v4705_v43 }
  0xc8   : > { %1307 = vmatpush1.bf16.msra.mxu0 %v4710_v45  ;;  %1348 = vmatpush1.bf16.msra.mxu1 %v4715_v46 }
  0xc9   : > { %1308 = vmatprep.subr.bf16.mxu0 %v4720_v47  ;;  %1349 = vmatprep.subr.bf16.mxu1 %v4723_v48 }
  0xcc   : > { %1309 = vmatpush1.bf16.msra.mxu0 %v4726_v49  ;;  %1350 = vmatpush1.bf16.msra.mxu1 %v4729_v50 }
  0xcd   : > { %1310 = vmatprep.subr.bf16.mxu0 %v4734_v51  ;;  %1351 = vmatprep.subr.bf16.mxu1 %v4739_v52 }
  0xd0   : > { %1311 = vmatpush1.bf16.msra.mxu0 %v4744_v54  ;;  %1352 = vmatpush1.bf16.msra.mxu1 %v4747_v55 }
  0xd1   : > { %1312 = vmatprep.subr.bf16.mxu0 %v4750_v56  ;;  %1353 = vmatprep.subr.bf16.mxu1 %v4755_v57 }
  0xd4   : > { %1313 = vmatpush1.bf16.msra.mxu0 %v4760_v58  ;;  %1354 = vmatpush1.bf16.msra.mxu1 %v4763_v59 }
  0xd5   : > { %1314 = vmatprep.subr.bf16.mxu0 %v4766_v60  ;;  %1355 = vmatprep.subr.bf16.mxu1 %v4769_v61 }
  0xd8   : > { %1315 = vmatpush1.bf16.msra.mxu0 %v4778_v63  ;;  %1356 = vmatpush1.bf16.msra.mxu1 %v4781_v1 }
  0xd9   : > { %1316 = vmatprep.subr.bf16.mxu0 %v4784_v2  ;;  %1357 = vmatprep.subr.bf16.mxu1 %v4789_v3 }
  0xdc   : > { %1317 = vmatpush1.bf16.msra.mxu0 %v4794_v4  ;;  %1358 = vmatpush1.bf16.msra.mxu1 %v4797_v5 }
  0xdd   : > { %1614 = vmatprep.subr.bf16.mxu0 %v4672_v33  ;;  %1655 = vmatprep.subr.bf16.mxu1 %v4675_v34 }
 0x172   : > { %v641_v18 = vpop.f32.mrb[0].mxu0  ;;  %v714_v19 = vpop.f32.mrb[0].mxu1 }
 0x173   : > { %v642_v20 = vadd.f32 %v641_v18, %v4848_v14  ;;  %v715_v21 = vadd.f32 %v714_v19, %v4850_v15  ;;  %v643_v22 = vpop.f32.mrb[1].mxu0  ;;  %v716_v23 = vpop.f32.mrb[1].mxu1 }
 0x174   : > { %v644_v24 = vadd.f32 %v643_v22, %v4852_v16  ;;  %v717_v25 = vadd.f32 %v716_v23, %v4854_v17  ;;  %v645_v26 = vpop.f32.mrb[2].mxu0  ;;  %v718_v27 = vpop.f32.mrb[2].mxu1 }
 0x175   : > { %753 = vst [vmem:[#allocation2] sm:$0xff] %v642_v20  ;;  %755 = vst [vmem:[#allocation2 + $0x10] sm:$0xff] %v715_v21  ;;  %v646_v28 = vadd.f32 %v645_v26, %v4848_v14  ;;  %v719_v29 = vadd.f32 %v718_v27, %v4850_v15  ;;  %v647_v30 = vpop.f32.mrb[3].mxu0  ;;  %v720_v31 = vpop.f32.mrb[3].mxu1 }
 0x176   : > { %754 = vst [vmem:[#allocation2 + $0x8] sm:$0xff] %v644_v24  ;;  %756 = vst [vmem:[#allocation2 + $0x18] sm:$0xff] %v717_v25  ;;  %v648_v32 = vadd.f32 %v647_v30, %v4852_v16  ;;  %v721_v33 = vadd.f32 %v720_v31, %v4854_v17 }
 0x177   : > { %757 = vst [vmem:[#allocation2 + $0x20] sm:$0xff] %v646_v28  ;;  %759 = vst [vmem:[#allocation2 + $0x30] sm:$0xff] %v719_v29 }
 0x178   : > { %758 = vst [vmem:[#allocation2 + $0x28] sm:$0xff] %v648_v32  ;;  %760 = vst [vmem:[#allocation2 + $0x38] sm:$0xff] %v721_v33 }
 0x17a   : > { %v651_v34 = vpop.f32.mrb[4].mxu0  ;;  %v724_v35 = vpop.f32.mrb[4].mxu1 }
 0x17b   : > { %v652_v44 = vadd.f32 %v651_v34, %v4848_v14  ;;  %v725_v53 = vadd.f32 %v724_v35, %v4850_v15  ;;  %v653_v62 = vpop.f32.mrb[5].mxu0  ;;  %v726_v6 = vpop.f32.mrb[5].mxu1 }
 0x17c   : > { %v654_v7 = vadd.f32 %v653_v62, %v4852_v16  ;;  %v727_v8 = vadd.f32 %v726_v6, %v4854_v17  ;;  %v655_v9 = vpop.f32.mrb[6].mxu0  ;;  %v728_v10 = vpop.f32.mrb[6].mxu1 }
 0x17d   : > { %761 = vst [vmem:[#allocation2 + $0x40] sm:$0xff] %v652_v44  ;;  %763 = vst [vmem:[#allocation2 + $0x50] sm:$0xff] %v725_v53  ;;  %v656_v11 = vadd.f32 %v655_v9, %v4848_v14  ;;  %v729_v12 = vadd.f32 %v728_v10, %v4850_v15  ;;  %v657_v13 = vpop.f32.mrb[7].mxu0  ;;  %v730_v18 = vpop.f32.mrb[7].mxu1 }
 0x17e   : > { %762 = vst [vmem:[#allocation2 + $0x48] sm:$0xff] %v654_v7  ;;  %764 = vst [vmem:[#allocation2 + $0x58] sm:$0xff] %v727_v8  ;;  %v658_v19 = vadd.f32 %v657_v13, %v4852_v16  ;;  %v731_v20 = vadd.f32 %v730_v18, %v4854_v17 }
 0x17f   : > { %765 = vst [vmem:[#allocation2 + $0x60] sm:$0xff] %v656_v11  ;;  %767 = vst [vmem:[#allocation2 + $0x70] sm:$0xff] %v729_v12 }
 0x180   : > { %766 = vst [vmem:[#allocation2 + $0x68] sm:$0xff] %v658_v19  ;;  %768 = vst [vmem:[#allocation2 + $0x78] sm:$0xff] %v731_v20 }
 0x182   : > { %v661_v21 = vpop.f32.mrb[8].mxu0  ;;  %v734_v22 = vpop.f32.mrb[8].mxu1 }
 0x183   : > { %v662_v23 = vadd.f32 %v661_v21, %v4848_v14  ;;  %v735_v24 = vadd.f32 %v734_v22, %v4850_v15  ;;  %v663_v25 = vpop.f32.mrb[9].mxu0  ;;  %v736_v26 = vpop.f32.mrb[9].mxu1 }
 0x184   : > { %v664_v27 = vadd.f32 %v663_v25, %v4852_v16  ;;  %v737_v28 = vadd.f32 %v736_v26, %v4854_v17  ;;  %v665_v29 = vpop.f32.mrb[10].mxu0  ;;  %v738_v30 = vpop.f32.mrb[10].mxu1 }
 0x185   : > { %769 = vst [vmem:[#allocation2 + $0x80] sm:$0xff] %v662_v23  ;;  %771 = vst [vmem:[#allocation2 + $0x90] sm:$0xff] %v735_v24  ;;  %v666_v31 = vadd.f32 %v665_v29, %v4848_v14  ;;  %v739_v32 = vadd.f32 %v738_v30, %v4850_v15  ;;  %v667_v33 = vpop.f32.mrb[11].mxu0  ;;  %v740_v34 = vpop.f32.mrb[11].mxu1 }
 0x186   : > { %770 = vst [vmem:[#allocation2 + $0x88] sm:$0xff] %v664_v27  ;;  %772 = vst [vmem:[#allocation2 + $0x98] sm:$0xff] %v737_v28  ;;  %v668_v35 = vadd.f32 %v667_v33, %v4852_v16  ;;  %v741_v44 = vadd.f32 %v740_v34, %v4854_v17 }
 0x187   : > { %773 = vst [vmem:[#allocation2 + $0xa0] sm:$0xff] %v666_v31  ;;  %775 = vst [vmem:[#allocation2 + $0xb0] sm:$0xff] %v739_v32 }
 0x188   : > { %774 = vst [vmem:[#allocation2 + $0xa8] sm:$0xff] %v668_v35  ;;  %776 = vst [vmem:[#allocation2 + $0xb8] sm:$0xff] %v741_v44 }
 0x18a   : > { %v671_v53 = vpop.f32.mrb[12].mxu0  ;;  %v744_v62 = vpop.f32.mrb[12].mxu1 }
 0x18b   : > { %v672_v6 = vadd.f32 %v671_v53, %v4848_v14  ;;  %v745_v7 = vadd.f32 %v744_v62, %v4850_v15  ;;  %v673_v8 = vpop.f32.mrb[13].mxu0  ;;  %v746_v9 = vpop.f32.mrb[13].mxu1 }
 0x18c   : > { %v674_v10 = vadd.f32 %v673_v8, %v4852_v16  ;;  %v747_v11 = vadd.f32 %v746_v9, %v4854_v17  ;;  %v675_v12 = vpop.f32.mrb[14].mxu0  ;;  %v748_v13 = vpop.f32.mrb[14].mxu1 }
 0x18d   : > { %777 = vst [vmem:[#allocation2 + $0xc0] sm:$0xff] %v672_v6  ;;  %779 = vst [vmem:[#allocation2 + $0xd0] sm:$0xff] %v745_v7  ;;  %v676_v18 = vadd.f32 %v675_v12, %v4848_v14  ;;  %v749_v19 = vadd.f32 %v748_v13, %v4850_v15  ;;  %v677_v20 = vpop.f32.mrb[15].mxu0  ;;  %v750_v21 = vpop.f32.mrb[15].mxu1 }
 0x18e   : > { %778 = vst [vmem:[#allocation2 + $0xc8] sm:$0xff] %v674_v10  ;;  %780 = vst [vmem:[#allocation2 + $0xd8] sm:$0xff] %v747_v11  ;;  %v678_v22 = vadd.f32 %v677_v20, %v4852_v16  ;;  %v751_v23 = vadd.f32 %v750_v21, %v4854_v17 }
 0x18f   : > { %781 = vst [vmem:[#allocation2 + $0xe0] sm:$0xff] %v676_v18  ;;  %783 = vst [vmem:[#allocation2 + $0xf0] sm:$0xff] %v749_v19 }
 0x190   : > { %782 = vst [vmem:[#allocation2 + $0xe8] sm:$0xff] %v678_v22  ;;  %784 = vst [vmem:[#allocation2 + $0xf8] sm:$0xff] %v751_v23 }
 0x192   : > { %v1024_v24 = vpop.f32.mrb[16].mxu0  ;;  %v1065_v14 = vpop.f32.mrb[16].mxu1 }
 0x193   : > { %v1026_v25 = vpop.f32.mrb[17].mxu0  ;;  %v1067_v15 = vpop.f32.mrb[17].mxu1 }
 0x194   : > { %v1028_v26 = vpop.f32.mrb[18].mxu0  ;;  %v1069_v27 = vpop.f32.mrb[18].mxu1 }
 0x195   : > { %v1029_v28 = vpop.f32.mrb[19].mxu0  ;;  %v1070_v29 = vpop.f32.mrb[19].mxu1 }
 0x196   : > { %v4948_v29 = vld [vmem:[%s4663_s21 + $0x4] ss:$16 sps:$4 sm:$0xff]  }
 0x197   : > { %v793_v16 = vld [vmem:[%s792_s11] sm:$0xff]  ;;  %v794_v30 = vld [vmem:[%s792_s11 + $0x8] sm:$0xff]  ;;  %v795_v32 = vld [vmem:[%s792_s11 + $0x10] sm:$0xff] }
 0x198   : > { %v1072_v17 = vadd.f32 %v1024_v24, %v793_v16  ;;  %v1073_v31 = vadd.f32 %v1026_v25, %v794_v30  ;;  %v1074_v35 = vadd.f32 %v1065_v14, %v795_v32  ;;  %v796_v44 = vld [vmem:[%s792_s11 + $0x18] sm:$0xff]  ;;  %v4954_v30 = vld [vmem:[%s4663_s21] ss:$16 sps:$4 sm:$0xff]   ;;  %s3633_s11 = sshll.u32 %s1413_s12, 2 }
 0x199   : > { %v1075_v53 = vadd.f32 %v1067_v15, %v796_v44  ;;  %v4951_v16 = vld [vmem:[%s4663_s21 + $0xc] ss:$16 sps:$4 sm:$0xff]   ;;  %s1720_s7 = scalar_lea.vmem %s4897_s25, %s3633_s11 [#allocation11]  ;;  %s3842_s11 = smul.u32 4294967272, %s4373_s18 }
 0x19a   : > { %v1076_v33 = vmul.f32 0.5, %v1072_v17  ;;  %v1080_v34 = vmul.f32 0.5, %v1073_v31  ;;  %v4957_v17 = vld [vmem:[%s4663_s21 + $0x8] ss:$16 sps:$4 sm:$0xff]   ;;  %v4964_v31 = vld [vmem:[%s4663_s21 + $0x24] ss:$16 sps:$4 sm:$0xff]  }
 0x19b   : > { %v1085_v62 = vmul.f32 0.5, %v1075_v53  ;;  %v4967_v32 = vld [vmem:[%s4663_s21 + $0x2c] ss:$16 sps:$4 sm:$0xff]   ;;  %v4986_v53 = vld [vmem:[%s4663_s21 + $0x40] ss:$16 sps:$4 sm:$0xff]  }
 0x19c   : > { %4127 = vtanh.f32 %v1076_v33  ;;  %v4970_v33 = vld [vmem:[%s4663_s21 + $0x20] ss:$16 sps:$4 sm:$0xff]   ;;  %v4983_v44 = vld [vmem:[%s4663_s21 + $0x4c] ss:$16 sps:$4 sm:$0xff]  }
 0x19d   : > { %4129 = vtanh.f32 %v1080_v34  ;;  %v4973_v34 = vld [vmem:[%s4663_s21 + $0x28] ss:$16 sps:$4 sm:$0xff]  }
 0x19e   : > { %4131 = vtanh.f32 %v1074_v35  ;;  %v4980_v35 = vld [vmem:[%s4663_s21 + $0x44] ss:$16 sps:$4 sm:$0xff]  }
 0x19f   : > { %4133 = vtanh.f32 %v1085_v62  ;;  %v4989_v62 = vld [vmem:[%s4663_s21 + $0x48] ss:$16 sps:$4 sm:$0xff]  }
 0x1a6   : > { %v4128_v6 = vpop.eup %4127 }
 0x1a7   : > { %v4130_v7 = vpop.eup %4129  ;;  %v1078_v8 = vmul.f32 0.5, %v4128_v6  ;;  %v4996_v6 = vld [vmem:[%s4663_s21 + $0x64] ss:$16 sps:$4 sm:$0xff]  }
 0x1a8   : > { %v1082_v9 = vmul.f32 0.5, %v4130_v7  ;;  %v4132_v11 = vpop.eup %4131  ;;  %v4999_v7 = vld [vmem:[%s4663_s21 + $0x6c] ss:$16 sps:$4 sm:$0xff]  }
 0x1a9   : > { %v1079_v10 = vadd.f32 0.5, %v1078_v8  ;;  %v4134_v20 = vpop.eup %4133  ;;  %v5002_v8 = vld [vmem:[%s4663_s21 + $0x60] ss:$16 sps:$4 sm:$0xff]  }
 0x1aa   : > { %v1083_v12 = vadd.f32 0.5, %v1082_v9  ;;  %v1087_v21 = vmul.f32 0.5, %v4134_v20  ;;  %v5005_v9 = vld [vmem:[%s4663_s21 + $0x68] ss:$16 sps:$4 sm:$0xff]   ;;  %v5034_v20 = vld [vmem:[%s4663_s21 + $0xa0] ss:$16 sps:$4 sm:$0xff]  }
 0x1ab   : > { %v1090_v13 = vmul.f32 %v4132_v11, %v1079_v10  ;;  %v5012_v10 = vld [vmem:[%s4663_s21 + $0x84] ss:$16 sps:$4 sm:$0xff]   ;;  %v5015_v11 = vld [vmem:[%s4663_s21 + $0x8c] ss:$16 sps:$4 sm:$0xff]  }
 0x1ac   : > { %v1089_v18 = vmul.f32 0.0, %v1083_v12  ;;  %v1088_v22 = vadd.f32 0.5, %v1087_v21  ;;  %v5018_v12 = vld [vmem:[%s4663_s21 + $0x80] ss:$16 sps:$4 sm:$0xff]   ;;  %v5037_v21 = vld [vmem:[%s4663_s21 + $0xa8] ss:$16 sps:$4 sm:$0xff]  }
 0x1ae   : > { %v4892_v19 = vadd.f32 %v1090_v13, %v1089_v18  ;;  %v5021_v13 = vld [vmem:[%s4663_s21 + $0x88] ss:$16 sps:$4 sm:$0xff]   ;;  %v5028_v18 = vld [vmem:[%s4663_s21 + $0xa4] ss:$16 sps:$4 sm:$0xff]  }
 0x1b0   : > { %4135 = vtanh.f32 %v4892_v19 }
 0x1ba   : > { %v4136_v23 = vpop.eup %4135 }
 0x1bb   : > { %v1093_v24 = vmul.f32 %v4136_v23, %v1088_v22  ;;  %v5044_v22 = vld [vmem:[%s4663_s21 + $0xc4] ss:$16 sps:$4 sm:$0xff]   ;;  %v5047_v23 = vld [vmem:[%s4663_s21 + $0xcc] ss:$16 sps:$4 sm:$0xff]  }
 0x1bd   : > { %v1094_v14 = vpack.c.bf16 %v1093_v24, %v1093_v24  ;;  %v5050_v24 = vld [vmem:[%s4663_s21 + $0xc0] ss:$16 sps:$4 sm:$0xff]  }
 0x1bf   : > { %1097 = vst [vmem:[%s1096_s13] sm:$0xf] %v1094_v14  ;;  %1335 = vmatmul.mubr.bf16.vlgmr.msra.gmra.mrb[20].mxu0 %v1094_v14  ;;  %1376 = vmatmul.mubr.bf16.vlgmr.msra.gmra.mrb[20].mxu1 %v1094_v14  ;;  %v5053_v14 = vld [vmem:[%s4663_s21 + $0xc8] ss:$16 sps:$4 sm:$0xff]   ;;  %s5125_s13 = sadd.s32 24, %s3827_s19 }
 0x1c0   : > { %1615 = vmatpush1.bf16.msra.mxu0 %v4678_v36  ;;  %1656 = vmatpush1.bf16.msra.mxu1 %v4681_v37  ;;  %v1106_v36 = vld [vmem:[%s1105_s27] sm:$0xff]  ;;  %s1724_s14 = sshra.s32 %s5125_s13, 3 }
 0x1c1   : > { %1616 = vmatprep.subr.bf16.mxu0 %v4686_v38  ;;  %1657 = vmatprep.subr.bf16.mxu1 %v4689_v39  ;;  %s3829_s10 = sshll.u32 %s1724_s14, 5  ;;  %s3669_s22 = sshll.u32 %s1724_s14, 2 }
 0x1c2   : > { %1646 = vmatprep.mubr.bf16.mxu0 %v4390_v0  ;;  %1687 = vmatprep.mubr.bf16.mxu1 %v4390_v0  ;;  %s1728_s1 = scalar_lea.vmem [#allocation2], %s3829_s10 }
 0x1c4   : > { %1617 = vmatpush1.bf16.msra.mxu0 %v4692_v40  ;;  %1658 = vmatpush1.bf16.msra.mxu1 %v4697_v41  ;;  %v1107_v40 = vld [vmem:[%s1105_s27 + $0x8] sm:$0xff] }
 0x1c5   : > { %1618 = vmatprep.subr.bf16.mxu0 %v4702_v42  ;;  %1659 = vmatprep.subr.bf16.mxu1 %v4705_v43 }
 0x1c8   : > { %1619 = vmatpush1.bf16.msra.mxu0 %v4710_v45  ;;  %1660 = vmatpush1.bf16.msra.mxu1 %v4715_v46 }
 0x1c9   : > { %1620 = vmatprep.subr.bf16.mxu0 %v4720_v47  ;;  %1661 = vmatprep.subr.bf16.mxu1 %v4723_v48 }
 0x1cc   : > { %1621 = vmatpush1.bf16.msra.mxu0 %v4726_v49  ;;  %1662 = vmatpush1.bf16.msra.mxu1 %v4729_v50  ;;  %v1108_v50 = vld [vmem:[%s1105_s27 + $0x10] sm:$0xff] }
 0x1cd   : > { %1622 = vmatprep.subr.bf16.mxu0 %v4734_v51  ;;  %1663 = vmatprep.subr.bf16.mxu1 %v4739_v52 }
 0x1d0   : > { %1623 = vmatpush1.bf16.msra.mxu0 %v4744_v54  ;;  %1664 = vmatpush1.bf16.msra.mxu1 %v4747_v55  ;;  %v1109_v54 = vld [vmem:[%s1105_s27 + $0x18] sm:$0xff]  ;;  %s2031_s27 = scalar_lea.vmem %s4897_s25, %s3669_s22 [#allocation11]  ;;  %s3843_s22 = smul.u32 4294967256, %s4373_s18 }
 0x1d1   : > { %1624 = vmatprep.subr.bf16.mxu0 %v4750_v56  ;;  %1665 = vmatprep.subr.bf16.mxu1 %v4755_v57 }
 0x1d4   : > { %1625 = vmatpush1.bf16.msra.mxu0 %v4760_v58  ;;  %1666 = vmatpush1.bf16.msra.mxu1 %v4763_v59 }
 0x1d5   : > { %1626 = vmatprep.subr.bf16.mxu0 %v4766_v60  ;;  %1667 = vmatprep.subr.bf16.mxu1 %v4769_v61 }
 0x1d8   : > { %1627 = vmatpush1.bf16.msra.mxu0 %v4778_v63  ;;  %1668 = vmatpush1.bf16.msra.mxu1 %v4781_v1 }
 0x1d9   : > { %1628 = vmatprep.subr.bf16.mxu0 %v4784_v2  ;;  %1669 = vmatprep.subr.bf16.mxu1 %v4789_v3 }
 0x1dc   : > { %1629 = vmatpush1.bf16.msra.mxu0 %v4794_v4  ;;  %1670 = vmatpush1.bf16.msra.mxu1 %v4797_v5 }
 0x1dd   : > { %1925 = vmatprep.subr.bf16.mxu0 %v4948_v29  ;;  %1966 = vmatprep.subr.bf16.mxu1 %v4951_v16 }
 0x292   : > { %v1336_v37 = vpop.f32.mrb[20].mxu0  ;;  %v1377_v38 = vpop.f32.mrb[20].mxu1 }
 0x293   : > { %v1384_v39 = vadd.f32 %v1336_v37, %v1106_v36  ;;  %v1338_v41 = vpop.f32.mrb[21].mxu0  ;;  %v1379_v42 = vpop.f32.mrb[21].mxu1  ;;  %v1386_v52 = vadd.f32 %v1377_v38, %v1108_v50  ;;  %v5060_v36 = vld [vmem:[%s4663_s21 + $0xe4] ss:$16 sps:$4 sm:$0xff]   ;;  %v5063_v37 = vld [vmem:[%s4663_s21 + $0xec] ss:$16 sps:$4 sm:$0xff]  }
 0x294   : > { %v1385_v43 = vadd.f32 %v1338_v41, %v1107_v40  ;;  %v1340_v45 = vpop.f32.mrb[22].mxu0  ;;  %v1381_v46 = vpop.f32.mrb[22].mxu1  ;;  %v1387_v55 = vadd.f32 %v1379_v42, %v1109_v54  ;;  %v5066_v38 = vld [vmem:[%s4663_s21 + $0xe0] ss:$16 sps:$4 sm:$0xff]  }
 0x295   : > { %v1388_v47 = vmul.f32 0.5, %v1384_v39  ;;  %v1341_v48 = vpop.f32.mrb[23].mxu0  ;;  %v1382_v49 = vpop.f32.mrb[23].mxu1  ;;  %v5069_v39 = vld [vmem:[%s4663_s21 + $0xe8] ss:$16 sps:$4 sm:$0xff]   ;;  %v1418_v40 = vld [vmem:[%s1417_s23] sm:$0xff] }
 0x296   : > { %v1392_v51 = vmul.f32 0.5, %v1385_v43  ;;  %v1397_v56 = vmul.f32 0.5, %v1387_v55  ;;  %v1419_v45 = vld [vmem:[%s1417_s23 + $0x8] sm:$0xff]  ;;  %v1420_v55 = vld [vmem:[%s1417_s23 + $0x10] sm:$0xff] }
 0x297   : > { %4137 = vtanh.f32 %v1388_v47 }
 0x298   : > { %4139 = vtanh.f32 %v1392_v51 }
 0x299   : > { %4141 = vtanh.f32 %v1386_v52 }
 0x29a   : > { %4143 = vtanh.f32 %v1397_v56 }
 0x2a1   : > { %v4138_v57 = vpop.eup %4137 }
 0x2a2   : > { %v4140_v58 = vpop.eup %4139  ;;  %v1390_v59 = vmul.f32 0.5, %v4138_v57 }
 0x2a3   : > { %v1394_v60 = vmul.f32 0.5, %v4140_v58  ;;  %v4142_v63 = vpop.eup %4141  ;;  %v1421_v58 = vld [vmem:[%s1417_s23 + $0x18] sm:$0xff] }
 0x2a4   : > { %v1391_v61 = vadd.f32 0.5, %v1390_v59  ;;  %v4144_v5 = vpop.eup %4143 }
 0x2a5   : > { %v1395_v1 = vadd.f32 0.5, %v1394_v60  ;;  %v1399_v25 = vmul.f32 0.5, %v4144_v5 }
 0x2a6   : > { %v1402_v2 = vmul.f32 %v4142_v63, %v1391_v61 }
 0x2a7   : > { %v1401_v3 = vmul.f32 %v1395_v1, %v4892_v19  ;;  %v1400_v15 = vadd.f32 0.5, %v1399_v25  ;;  %v5031_v19 = vld [vmem:[%s4663_s21 + $0xac] ss:$16 sps:$4 sm:$0xff]  }
 0x2a9   : > { %v4939_v4 = vadd.f32 %v1402_v2, %v1401_v3 }
 0x2ab   : > { %4145 = vtanh.f32 %v4939_v4 }
 0x2b5   : > { %v4146_v26 = vpop.eup %4145 }
 0x2b6   : > { %v1405_v27 = vmul.f32 %v4146_v26, %v1400_v15 }
 0x2b8   : > { %v1406_v28 = vpack.c.bf16 %v1405_v27, %v1405_v27 }
 0x2ba   : > { %1409 = vst [vmem:[%s1408_s26] sm:$0xf] %v1406_v28  ;;  %1647 = vmatmul.mubr.bf16.vlgmr.msra.gmra.mrb[24].mxu0 %v1406_v28  ;;  %1688 = vmatmul.mubr.bf16.vlgmr.msra.gmra.mrb[24].mxu1 %v1406_v28  ;;  %s5172_s26 = sshll.u32 %s2033_s5, 3 }
 0x2bb   : > { %1957 = vmatprep.mubr.bf16.mxu0 %v4390_v0  ;;  %1998 = vmatprep.mubr.bf16.mxu1 %v4390_v0  ;;  %s2035_s6 = sshra.s32 %s5172_s26, 3 }
 0x2bc   : > { %1926 = vmatpush1.bf16.msra.mxu0 %v4954_v30  ;;  %1967 = vmatpush1.bf16.msra.mxu1 %v4957_v17  ;;  %s3830_s24 = sshll.u32 %s2035_s6, 5  ;;  %s3705_s8 = sshll.u32 %s2035_s6, 2 }
 0x2bd   : > { %1927 = vmatprep.subr.bf16.mxu0 %v4964_v31  ;;  %1968 = vmatprep.subr.bf16.mxu1 %v4967_v32  ;;  %s2039_s12 = scalar_lea.vmem [#allocation2], %s3830_s24  ;;  %s2342_s23 = scalar_lea.vmem %s4897_s25, %s3705_s8 [#allocation11] }
 0x2c0   : > { %1928 = vmatpush1.bf16.msra.mxu0 %v4970_v33  ;;  %1969 = vmatpush1.bf16.msra.mxu1 %v4973_v34 }
 0x2c1   : > { %1929 = vmatprep.subr.bf16.mxu0 %v4980_v35  ;;  %1970 = vmatprep.subr.bf16.mxu1 %v4983_v44 }
 0x2c4   : > { %1930 = vmatpush1.bf16.msra.mxu0 %v4986_v53  ;;  %1971 = vmatpush1.bf16.msra.mxu1 %v4989_v62 }
 0x2c5   : > { %1931 = vmatprep.subr.bf16.mxu0 %v4996_v6  ;;  %1972 = vmatprep.subr.bf16.mxu1 %v4999_v7 }
 0x2c8   : > { %1932 = vmatpush1.bf16.msra.mxu0 %v5002_v8  ;;  %1973 = vmatpush1.bf16.msra.mxu1 %v5005_v9 }
 0x2c9   : > { %1933 = vmatprep.subr.bf16.mxu0 %v5012_v10  ;;  %1974 = vmatprep.subr.bf16.mxu1 %v5015_v11 }
 0x2cc   : > { %1934 = vmatpush1.bf16.msra.mxu0 %v5018_v12  ;;  %1975 = vmatpush1.bf16.msra.mxu1 %v5021_v13 }
 0x2cd   : > { %1935 = vmatprep.subr.bf16.mxu0 %v5028_v18  ;;  %1976 = vmatprep.subr.bf16.mxu1 %v5031_v19 }
 0x2d0   : > { %1936 = vmatpush1.bf16.msra.mxu0 %v5034_v20  ;;  %1977 = vmatpush1.bf16.msra.mxu1 %v5037_v21 }
 0x2d1   : > { %1937 = vmatprep.subr.bf16.mxu0 %v5044_v22  ;;  %1978 = vmatprep.subr.bf16.mxu1 %v5047_v23 }
 0x2d4   : > { %1938 = vmatpush1.bf16.msra.mxu0 %v5050_v24  ;;  %1979 = vmatpush1.bf16.msra.mxu1 %v5053_v14 }
 0x2d5   : > { %1939 = vmatprep.subr.bf16.mxu0 %v5060_v36  ;;  %1980 = vmatprep.subr.bf16.mxu1 %v5063_v37 }
 0x2d8   : > { %1940 = vmatpush1.bf16.msra.mxu0 %v5066_v38  ;;  %1981 = vmatpush1.bf16.msra.mxu1 %v5069_v39 }
 0x2d9   : > { %2236 = vmatprep.subr.bf16.mxu0 %v4948_v29  ;;  %2277 = vmatprep.subr.bf16.mxu1 %v4951_v16 }
 0x38d   : > { %v1648_v41 = vpop.f32.mrb[24].mxu0  ;;  %v1689_v42 = vpop.f32.mrb[24].mxu1 }
 0x38e   : > { %v1696_v43 = vadd.f32 %v1648_v41, %v1418_v40  ;;  %v1650_v46 = vpop.f32.mrb[25].mxu0  ;;  %v1691_v47 = vpop.f32.mrb[25].mxu1  ;;  %v1698_v57 = vadd.f32 %v1689_v42, %v1420_v55 }
 0x38f   : > { %v1697_v48 = vadd.f32 %v1650_v46, %v1419_v45  ;;  %v1652_v49 = vpop.f32.mrb[26].mxu0  ;;  %v1693_v50 = vpop.f32.mrb[26].mxu1  ;;  %v1699_v59 = vadd.f32 %v1691_v47, %v1421_v58 }
 0x390   : > { %v1700_v51 = vmul.f32 0.5, %v1696_v43  ;;  %v1653_v52 = vpop.f32.mrb[27].mxu0  ;;  %v1694_v54 = vpop.f32.mrb[27].mxu1  ;;  %v1730_v49 = vld [vmem:[%s1728_s1 + $0x8] sm:$0xff] }
 0x391   : > { %v1704_v56 = vmul.f32 0.5, %v1697_v48  ;;  %v1709_v60 = vmul.f32 0.5, %v1699_v59  ;;  %v1731_v59 = vld [vmem:[%s1728_s1 + $0x10] sm:$0xff] }
 0x392   : > { %4147 = vtanh.f32 %v1700_v51 }
 0x393   : > { %4149 = vtanh.f32 %v1704_v56 }
 0x394   : > { %4151 = vtanh.f32 %v1698_v57 }
 0x395   : > { %4153 = vtanh.f32 %v1709_v60 }
 0x39c   : > { %v4148_v61 = vpop.eup %4147 }
 0x39d   : > { %v4150_v63 = vpop.eup %4149  ;;  %v1702_v1 = vmul.f32 0.5, %v4148_v61 }
 0x39e   : > { %v1706_v2 = vmul.f32 0.5, %v4150_v63  ;;  %v4152_v5 = vpop.eup %4151  ;;  %v1732_v63 = vld [vmem:[%s1728_s1 + $0x18] sm:$0xff] }
 0x39f   : > { %v1703_v3 = vadd.f32 0.5, %v1702_v1  ;;  %v4154_v28 = vpop.eup %4153 }
 0x3a0   : > { %v1707_v25 = vadd.f32 0.5, %v1706_v2  ;;  %v1711_v40 = vmul.f32 0.5, %v4154_v28 }
 0x3a1   : > { %v1714_v15 = vmul.f32 %v4152_v5, %v1703_v3 }
 0x3a2   : > { %v1713_v26 = vmul.f32 %v1707_v25, %v4939_v4  ;;  %v1712_v41 = vadd.f32 0.5, %v1711_v40  ;;  %v1729_v4 = vld [vmem:[%s1728_s1] sm:$0xff] }
 0x3a4   : > { %v5084_v27 = vadd.f32 %v1714_v15, %v1713_v26 }
 0x3a6   : > { %4155 = vtanh.f32 %v5084_v27 }
 0x3b0   : > { %v4156_v42 = vpop.eup %4155 }
 0x3b1   : > { %v1717_v43 = vmul.f32 %v4156_v42, %v1712_v41 }
 0x3b3   : > { %v1718_v45 = vpack.c.bf16 %v1717_v43, %v1717_v43 }
 0x3b5   : > { %1721 = vst [vmem:[%s1720_s7] sm:$0xf] %v1718_v45  ;;  %1958 = vmatmul.mubr.bf16.vlgmr.msra.gmra.mrb[28].mxu0 %v1718_v45  ;;  %1999 = vmatmul.mubr.bf16.vlgmr.msra.gmra.mrb[28].mxu1 %v1718_v45  ;;  %s5217_s7 = sadd.s32 40, %s3842_s11 }
 0x3b6   : > { %2237 = vmatpush1.bf16.msra.mxu0 %v4954_v30  ;;  %2278 = vmatpush1.bf16.msra.mxu1 %v4957_v17  ;;  %s2347_s19 = sshra.s32 %s5217_s7, 3 }
 0x3b7   : > { %2238 = vmatprep.subr.bf16.mxu0 %v4964_v31  ;;  %2279 = vmatprep.subr.bf16.mxu1 %v4967_v32  ;;  %s3833_s13 = sshll.u32 %s2347_s19, 5  ;;  %s3741_s10 = sshll.u32 %s2347_s19, 2 }
 0x3b8   : > { %2268 = vmatprep.mubr.bf16.mxu0 %v4390_v0  ;;  %2309 = vmatprep.mubr.bf16.mxu1 %v4390_v0  ;;  %s2351_s14 = scalar_lea.vmem [#allocation2], %s3833_s13  ;;  %s2654_s1 = scalar_lea.vmem %s4897_s25, %s3741_s10 [#allocation11] }
 0x3b9   : > { %s3302_s13 = sshll.u32 %s4897_s25, 4  ;;  %s5284_s13 = int_to_ptr.vmem [resolvable:$true] %s3302_s13 }
 0x3ba   : > { %2239 = vmatpush1.bf16.msra.mxu0 %v4970_v33  ;;  %2280 = vmatpush1.bf16.msra.mxu1 %v4973_v34 }
 0x3bb   : > { %2240 = vmatprep.subr.bf16.mxu0 %v4980_v35  ;;  %2281 = vmatprep.subr.bf16.mxu1 %v4983_v44 }
 0x3be   : > { %2241 = vmatpush1.bf16.msra.mxu0 %v4986_v53  ;;  %2282 = vmatpush1.bf16.msra.mxu1 %v4989_v62 }
 0x3bf   : > { %2242 = vmatprep.subr.bf16.mxu0 %v4996_v6  ;;  %2283 = vmatprep.subr.bf16.mxu1 %v4999_v7 }
 0x3c2   : > { %2243 = vmatpush1.bf16.msra.mxu0 %v5002_v8  ;;  %2284 = vmatpush1.bf16.msra.mxu1 %v5005_v9 }
 0x3c3   : > { %2244 = vmatprep.subr.bf16.mxu0 %v5012_v10  ;;  %2285 = vmatprep.subr.bf16.mxu1 %v5015_v11 }
 0x3c6   : > { %2245 = vmatpush1.bf16.msra.mxu0 %v5018_v12  ;;  %2286 = vmatpush1.bf16.msra.mxu1 %v5021_v13 }
 0x3c7   : > { %2246 = vmatprep.subr.bf16.mxu0 %v5028_v18  ;;  %2287 = vmatprep.subr.bf16.mxu1 %v5031_v19 }
 0x3ca   : > { %2247 = vmatpush1.bf16.msra.mxu0 %v5034_v20  ;;  %2288 = vmatpush1.bf16.msra.mxu1 %v5037_v21 }
 0x3cb   : > { %2248 = vmatprep.subr.bf16.mxu0 %v5044_v22  ;;  %2289 = vmatprep.subr.bf16.mxu1 %v5047_v23 }
 0x3ce   : > { %2249 = vmatpush1.bf16.msra.mxu0 %v5050_v24  ;;  %2290 = vmatpush1.bf16.msra.mxu1 %v5053_v14 }
 0x3cf   : > { %2250 = vmatprep.subr.bf16.mxu0 %v5060_v36  ;;  %2291 = vmatprep.subr.bf16.mxu1 %v5063_v37 }
 0x3d2   : > { %2251 = vmatpush1.bf16.msra.mxu0 %v5066_v38  ;;  %2292 = vmatpush1.bf16.msra.mxu1 %v5069_v39 }
 0x3d3   : > { %2548 = vmatprep.subr.bf16.mxu0 %v4948_v29  ;;  %2589 = vmatprep.subr.bf16.mxu1 %v4951_v16 }
 0x488   : > { %v1959_v46 = vpop.f32.mrb[28].mxu0  ;;  %v2000_v47 = vpop.f32.mrb[28].mxu1 }
 0x489   : > { %v2007_v48 = vadd.f32 %v1959_v46, %v1729_v4  ;;  %v1961_v50 = vpop.f32.mrb[29].mxu0  ;;  %v2002_v51 = vpop.f32.mrb[29].mxu1  ;;  %v2009_v61 = vadd.f32 %v2000_v47, %v1731_v59 }
 0x48a   : > { %v2008_v52 = vadd.f32 %v1961_v50, %v1730_v49  ;;  %v1963_v54 = vpop.f32.mrb[30].mxu0  ;;  %v2004_v55 = vpop.f32.mrb[30].mxu1  ;;  %v2010_v1 = vadd.f32 %v2002_v51, %v1732_v63 }
 0x48b   : > { %v2011_v56 = vmul.f32 0.5, %v2007_v48  ;;  %v1964_v57 = vpop.f32.mrb[31].mxu0  ;;  %v2005_v58 = vpop.f32.mrb[31].mxu1  ;;  %v2041_v54 = vld [vmem:[%s2039_s12 + $0x8] sm:$0xff] }
 0x48c   : > { %v2015_v60 = vmul.f32 0.5, %v2008_v52  ;;  %v2020_v2 = vmul.f32 0.5, %v2010_v1 }
 0x48d   : > { %4157 = vtanh.f32 %v2011_v56 }
 0x48e   : > { %4159 = vtanh.f32 %v2015_v60 }
 0x48f   : > { %4161 = vtanh.f32 %v2009_v61  ;;  %v2042_v61 = vld [vmem:[%s2039_s12 + $0x10] sm:$0xff] }
 0x490   : > { %4163 = vtanh.f32 %v2020_v2  ;;  %v2043_v2 = vld [vmem:[%s2039_s12 + $0x18] sm:$0xff] }
 0x497   : > { %v4158_v3 = vpop.eup %4157 }
 0x498   : > { %v4160_v5 = vpop.eup %4159  ;;  %v2013_v25 = vmul.f32 0.5, %v4158_v3 }
 0x499   : > { %v2017_v15 = vmul.f32 0.5, %v4160_v5  ;;  %v4162_v28 = vpop.eup %4161 }
 0x49a   : > { %v2014_v26 = vadd.f32 0.5, %v2013_v25  ;;  %v4164_v45 = vpop.eup %4163 }
 0x49b   : > { %v2018_v40 = vadd.f32 0.5, %v2017_v15  ;;  %v2022_v4 = vmul.f32 0.5, %v4164_v45 }
 0x49c   : > { %v2025_v41 = vmul.f32 %v4162_v28, %v2014_v26 }
 0x49d   : > { %v2024_v42 = vmul.f32 %v2018_v40, %v5084_v27  ;;  %v2023_v46 = vadd.f32 0.5, %v2022_v4  ;;  %v2040_v27 = vld [vmem:[%s2039_s12] sm:$0xff]  ;;  %s3844_s12 = smul.u32 4294967240, %s4373_s18 }
 0x49f   : > { %v5131_v43 = vadd.f32 %v2025_v41, %v2024_v42  ;;  %s5274_s8 = sadd.s32 56, %s3844_s12 }
 0x4a1   : > { %4165 = vtanh.f32 %v5131_v43 }
 0x4ab   : > { %v4166_v47 = vpop.eup %4165 }
 0x4ac   : > { %v2028_v48 = vmul.f32 %v4166_v47, %v2023_v46 }
 0x4ae   : > { %v2029_v49 = vpack.c.bf16 %v2028_v48, %v2028_v48 }
 0x4b0   : > { %2032 = vst [vmem:[%s2031_s27] sm:$0xf] %v2029_v49  ;;  %2269 = vmatmul.mubr.bf16.vlgmr.msra.gmra.mrb[32].mxu0 %v2029_v49  ;;  %2310 = vmatmul.mubr.bf16.vlgmr.msra.gmra.mrb[32].mxu1 %v2029_v49  ;;  %s5264_s27 = sadd.s32 48, %s3843_s22 }
 0x4b1   : > { %2549 = vmatpush1.bf16.msra.mxu0 %v4954_v30  ;;  %2590 = vmatpush1.bf16.msra.mxu1 %v4957_v17  ;;  %s2659_s5 = sshra.s32 %s5264_s27, 3 }
 0x4b2   : > { %2550 = vmatprep.subr.bf16.mxu0 %v4964_v31  ;;  %2591 = vmatprep.subr.bf16.mxu1 %v4967_v32  ;;  %s3836_s26 = sshll.u32 %s2659_s5, 5 }
 0x4b3   : > { %2580 = vmatprep.mubr.bf16.mxu0 %v4390_v0  ;;  %2621 = vmatprep.mubr.bf16.mxu1 %v4390_v0  ;;  %s2663_s6 = scalar_lea.vmem [#allocation2], %s3836_s26  ;;  %s4295_s26 = scalar_lea.vmem %s5284_s13, 512 }
 0x4b4   : > { %p4296_p9 = scmp.ne.s32.totalorder %s5284_s13, %s4295_s26 }
 0x4b5   : > { %2551 = vmatpush1.bf16.msra.mxu0 %v4970_v33  ;;  %2592 = vmatpush1.bf16.msra.mxu1 %v4973_v34 }
 0x4b6   : > { %2552 = vmatprep.subr.bf16.mxu0 %v4980_v35  ;;  %2593 = vmatprep.subr.bf16.mxu1 %v4983_v44  ;;  %p4297_p12 = pnand %p4296_p9, %p5377_p7 }
 0x4b8   : > { %p4298_p13 = pneg %p4297_p12 }
 0x4b9   : > { %2553 = vmatpush1.bf16.msra.mxu0 %v4986_v53  ;;  %2594 = vmatpush1.bf16.msra.mxu1 %v4989_v62 }
 0x4ba   : > { %2554 = vmatprep.subr.bf16.mxu0 %v4996_v6  ;;  %2595 = vmatprep.subr.bf16.mxu1 %v4999_v7 }
 0x4bd   : > { %2555 = vmatpush1.bf16.msra.mxu0 %v5002_v8  ;;  %2596 = vmatpush1.bf16.msra.mxu1 %v5005_v9 }
 0x4be   : > { %2556 = vmatprep.subr.bf16.mxu0 %v5012_v10  ;;  %2597 = vmatprep.subr.bf16.mxu1 %v5015_v11 }
 0x4c1   : > { %2557 = vmatpush1.bf16.msra.mxu0 %v5018_v12  ;;  %2598 = vmatpush1.bf16.msra.mxu1 %v5021_v13 }
 0x4c2   : > { %2558 = vmatprep.subr.bf16.mxu0 %v5028_v18  ;;  %2599 = vmatprep.subr.bf16.mxu1 %v5031_v19 }
 0x4c5   : > { %2559 = vmatpush1.bf16.msra.mxu0 %v5034_v20  ;;  %2600 = vmatpush1.bf16.msra.mxu1 %v5037_v21 }
 0x4c6   : > { %2560 = vmatprep.subr.bf16.mxu0 %v5044_v22  ;;  %2601 = vmatprep.subr.bf16.mxu1 %v5047_v23 }
 0x4c9   : > { %2561 = vmatpush1.bf16.msra.mxu0 %v5050_v24  ;;  %2602 = vmatpush1.bf16.msra.mxu1 %v5053_v14 }
 0x4ca   : > { %2562 = vmatprep.subr.bf16.mxu0 %v5060_v36  ;;  %2603 = vmatprep.subr.bf16.mxu1 %v5063_v37 }
 0x4cd   : > { %2563 = vmatpush1.bf16.msra.mxu0 %v5066_v38  ;;  %2604 = vmatpush1.bf16.msra.mxu1 %v5069_v39 }
 0x4ce   : > { %2860 = vmatprep.subr.bf16.mxu0 %v4948_v29  ;;  %2901 = vmatprep.subr.bf16.mxu1 %v4951_v16 }
 0x583   : > { %v2270_v50 = vpop.f32.mrb[32].mxu0  ;;  %v2311_v51 = vpop.f32.mrb[32].mxu1 }
 0x584   : > { %v2318_v52 = vadd.f32 %v2270_v50, %v2040_v27  ;;  %v2272_v55 = vpop.f32.mrb[33].mxu0  ;;  %v2313_v56 = vpop.f32.mrb[33].mxu1  ;;  %v2320_v1 = vadd.f32 %v2311_v51, %v2042_v61  ;;  %v4085_v61 = vld [vmem:[%s4663_s21 + $0x20] ss:$16 sps:$4 sm:$0xff]  }
 0x585   : > { %v2319_v57 = vadd.f32 %v2272_v55, %v2041_v54  ;;  %v2274_v29 = vpop.f32.mrb[34].mxu0  ;;  %v2315_v58 = vpop.f32.mrb[34].mxu1  ;;  %v2321_v3 = vadd.f32 %v2313_v56, %v2043_v2  ;;  %v4091_v2 = vld [vmem:[%s4663_s21 + $0x40] ss:$16 sps:$4 sm:$0xff]  }
 0x586   : > { %v2322_v16 = vmul.f32 0.5, %v2318_v52  ;;  %v2275_v59 = vpop.f32.mrb[35].mxu0  ;;  %v2316_v60 = vpop.f32.mrb[35].mxu1  ;;  %v4084_v29 = vld [vmem:[%s4663_s21 + $0xc] ss:$16 sps:$4 sm:$0xff]  }
 0x587   : > { %v2326_v63 = vmul.f32 0.5, %v2319_v57  ;;  %v2331_v5 = vmul.f32 0.5, %v2321_v3  ;;  %v4081_v57 = vld [vmem:[%s4663_s21 + $0x4] ss:$16 sps:$4 sm:$0xff]   ;;  %v4079_v58 = vld [vmem:[%s4663_s21] ss:$16 sps:$4 sm:$0xff]  }
 0x588   : > { %4167 = vtanh.f32 %v2322_v16  ;;  %v4082_v16 = vld [vmem:[%s4663_s21 + $0x8] ss:$16 sps:$4 sm:$0xff]   ;;  %v4087_v59 = vld [vmem:[%s4663_s21 + $0x24] ss:$16 sps:$4 sm:$0xff]   ;;  %v4090_v60 = vld [vmem:[%s4663_s21 + $0x2c] ss:$16 sps:$4 sm:$0xff]  }
 0x589   : > { %4169 = vtanh.f32 %v2326_v63  ;;  %v4088_v63 = vld [vmem:[%s4663_s21 + $0x28] ss:$16 sps:$4 sm:$0xff]  }
 0x58a   : > { %4171 = vtanh.f32 %v2320_v1  ;;  %v4096_v1 = vld [vmem:[%s4663_s21 + $0x4c] ss:$16 sps:$4 sm:$0xff]   ;;  %v4094_v3 = vld [vmem:[%s4663_s21 + $0x48] ss:$16 sps:$4 sm:$0xff]  }
 0x58b   : > { %4173 = vtanh.f32 %v2331_v5  ;;  %v4099_v5 = vld [vmem:[%s4663_s21 + $0x64] ss:$16 sps:$4 sm:$0xff]  }
 0x592   : > { %v4168_v25 = vpop.eup %4167 }
 0x593   : > { %v4170_v15 = vpop.eup %4169  ;;  %v2324_v26 = vmul.f32 0.5, %v4168_v25  ;;  %v4102_v25 = vld [vmem:[%s4663_s21 + $0x6c] ss:$16 sps:$4 sm:$0xff]  }
 0x594   : > { %v2328_v28 = vmul.f32 0.5, %v4170_v15  ;;  %v4172_v41 = vpop.eup %4171  ;;  %v4097_v15 = vld [vmem:[%s4663_s21 + $0x60] ss:$16 sps:$4 sm:$0xff]  }
 0x595   : > { %v2325_v40 = vadd.f32 0.5, %v2324_v26  ;;  %v4174_v47 = vpop.eup %4173  ;;  %v4100_v26 = vld [vmem:[%s4663_s21 + $0x68] ss:$16 sps:$4 sm:$0xff]  }
 0x596   : > { %v2329_v42 = vadd.f32 0.5, %v2328_v28  ;;  %v2333_v48 = vmul.f32 0.5, %v4174_v47  ;;  %v4105_v28 = vld [vmem:[%s4663_s21 + $0x84] ss:$16 sps:$4 sm:$0xff]   ;;  %v4112_v47 = vld [vmem:[%s4663_s21 + $0xa8] ss:$16 sps:$4 sm:$0xff]  }
 0x597   : > { %v2336_v45 = vmul.f32 %v4172_v41, %v2325_v40  ;;  %v4108_v40 = vld [vmem:[%s4663_s21 + $0x8c] ss:$16 sps:$4 sm:$0xff]   ;;  %v4103_v41 = vld [vmem:[%s4663_s21 + $0x80] ss:$16 sps:$4 sm:$0xff]  }
 0x598   : > { %v2335_v4 = vmul.f32 %v2329_v42, %v5131_v43  ;;  %v2334_v49 = vadd.f32 0.5, %v2333_v48  ;;  %v4106_v42 = vld [vmem:[%s4663_s21 + $0x88] ss:$16 sps:$4 sm:$0xff]   ;;  %v4117_v48 = vld [vmem:[%s4663_s21 + $0xc4] ss:$16 sps:$4 sm:$0xff]  }
 0x59a   : > { %v5178_v46 = vadd.f32 %v2336_v45, %v2335_v4  ;;  %v4111_v45 = vld [vmem:[%s4663_s21 + $0xa4] ss:$16 sps:$4 sm:$0xff]   ;;  %v4114_v4 = vld [vmem:[%s4663_s21 + $0xac] ss:$16 sps:$4 sm:$0xff]  }
 0x59c   : > { %4175 = vtanh.f32 %v5178_v46 }
 0x5a6   : > { %v4176_v27 = vpop.eup %4175 }
 0x5a7   : > { %v2339_v50 = vmul.f32 %v4176_v27, %v2334_v49  ;;  %v4120_v49 = vld [vmem:[%s4663_s21 + $0xcc] ss:$16 sps:$4 sm:$0xff]   ;;  %v4115_v27 = vld [vmem:[%s4663_s21 + $0xc0] ss:$16 sps:$4 sm:$0xff]  }
 0x5a9   : > { %v2340_v51 = vpack.c.bf16 %v2339_v50, %v2339_v50  ;;  %v4118_v50 = vld [vmem:[%s4663_s21 + $0xc8] ss:$16 sps:$4 sm:$0xff]  }
 0x5ab   : > { %2343 = vst [vmem:[%s2342_s23] sm:$0xf] %v2340_v51  ;;  %2581 = vmatmul.mubr.bf16.vlgmr.msra.gmra.mrb[36].mxu0 %v2340_v51  ;;  %2622 = vmatmul.mubr.bf16.vlgmr.msra.gmra.mrb[36].mxu1 %v2340_v51  ;;  %v4123_v51 = vld [vmem:[%s4663_s21 + $0xe4] ss:$16 sps:$4 sm:$0xff]   ;;  %s2971_s23 = sshra.s32 %s5274_s8, 3 }
 0x5ac   : > { %2861 = vmatpush1.bf16.msra.mxu0 %v4954_v30  ;;  %2902 = vmatpush1.bf16.msra.mxu1 %v4957_v17  ;;  %v2352_v30 = vld [vmem:[%s2351_s14] sm:$0xff]  ;;  %s3839_s11 = sshll.u32 %s2971_s23, 5  ;;  %s3813_s19 = sshll.u32 %s2971_s23, 2 }
 0x5ad   : > { %2862 = vmatprep.subr.bf16.mxu0 %v4964_v31  ;;  %2903 = vmatprep.subr.bf16.mxu1 %v4967_v32  ;;  %s2975_s7 = scalar_lea.vmem [#allocation2], %s3839_s11  ;;  %s3278_s10 = scalar_lea.vmem %s4897_s25, %s3813_s19 [#allocation11] }
 0x5ae   : > { %2892 = vmatprep.mubr.bf16.mxu0 %v4390_v0  ;;  %2933 = vmatprep.mubr.bf16.mxu1 %v4390_v0 }
 0x5b0   : > { %2863 = vmatpush1.bf16.msra.mxu0 %v4970_v33  ;;  %2904 = vmatpush1.bf16.msra.mxu1 %v4973_v34  ;;  %v2353_v33 = vld [vmem:[%s2351_s14 + $0x8] sm:$0xff] }
 0x5b1   : > { %2864 = vmatprep.subr.bf16.mxu0 %v4980_v35  ;;  %2905 = vmatprep.subr.bf16.mxu1 %v4983_v44 }
 0x5b4   : > { %2865 = vmatpush1.bf16.msra.mxu0 %v4986_v53  ;;  %2906 = vmatpush1.bf16.msra.mxu1 %v4989_v62 }
 0x5b5   : > { %2866 = vmatprep.subr.bf16.mxu0 %v4996_v6  ;;  %2907 = vmatprep.subr.bf16.mxu1 %v4999_v7 }
 0x5b8   : > { %2867 = vmatpush1.bf16.msra.mxu0 %v5002_v8  ;;  %2908 = vmatpush1.bf16.msra.mxu1 %v5005_v9  ;;  %v2354_v9 = vld [vmem:[%s2351_s14 + $0x10] sm:$0xff] }
 0x5b9   : > { %2868 = vmatprep.subr.bf16.mxu0 %v5012_v10  ;;  %2909 = vmatprep.subr.bf16.mxu1 %v5015_v11 }
 0x5bc   : > { %2869 = vmatpush1.bf16.msra.mxu0 %v5018_v12  ;;  %2910 = vmatpush1.bf16.msra.mxu1 %v5021_v13  ;;  %v2355_v12 = vld [vmem:[%s2351_s14 + $0x18] sm:$0xff]  ;;  %s3815_s14 = sshll.u32 %s4373_s18, 6  ;;  %s4392_s18 = smov [#allocation11]  }
 0x5bd   : > { %2870 = vmatprep.subr.bf16.mxu0 %v5028_v18  ;;  %2911 = vmatprep.subr.bf16.mxu1 %v5031_v19  ;;  %s5289_s27 = scalar_lea.hbm %s5342_s4, %s3815_s14 }
 0x5c0   : > { %2871 = vmatpush1.bf16.msra.mxu0 %v5034_v20  ;;  %2912 = vmatpush1.bf16.msra.mxu1 %v5037_v21 }
 0x5c1   : > { %2872 = vmatprep.subr.bf16.mxu0 %v5044_v22  ;;  %2913 = vmatprep.subr.bf16.mxu1 %v5047_v23 }
 0x5c4   : > { %2873 = vmatpush1.bf16.msra.mxu0 %v5050_v24  ;;  %2914 = vmatpush1.bf16.msra.mxu1 %v5053_v14 }
 0x5c5   : > { %2874 = vmatprep.subr.bf16.mxu0 %v5060_v36  ;;  %2915 = vmatprep.subr.bf16.mxu1 %v5063_v37 }
 0x5c8   : > { %2875 = vmatpush1.bf16.msra.mxu0 %v5066_v38  ;;  %2916 = vmatpush1.bf16.msra.mxu1 %v5069_v39 }
 0x5c9   : > { %3172 = vmatprep.subr.bf16.mxu0 %v4081_v57  ;;  %3213 = vmatprep.subr.bf16.mxu1 %v4084_v29 }
 0x67e   : > { %v2582_v17 = vpop.f32.mrb[36].mxu0  ;;  %v2623_v31 = vpop.f32.mrb[36].mxu1 }
 0x67f   : > { %v2630_v32 = vadd.f32 %v2582_v17, %v2352_v30  ;;  %v2584_v34 = vpop.f32.mrb[37].mxu0  ;;  %v2625_v35 = vpop.f32.mrb[37].mxu1  ;;  %v2632_v11 = vadd.f32 %v2623_v31, %v2354_v9  ;;  %v4121_v30 = vld [vmem:[%s4663_s21 + $0xe0] ss:$16 sps:$4 sm:$0xff]   ;;  %v4124_v17 = vld [vmem:[%s4663_s21 + $0xe8] ss:$16 sps:$4 sm:$0xff]  }
 0x680   : > { %v2631_v44 = vadd.f32 %v2584_v34, %v2353_v33  ;;  %v2586_v53 = vpop.f32.mrb[38].mxu0  ;;  %v2627_v62 = vpop.f32.mrb[38].mxu1  ;;  %v2633_v13 = vadd.f32 %v2625_v35, %v2355_v12  ;;  %v4126_v31 = vld [vmem:[%s4663_s21 + $0xec] ss:$16 sps:$4 sm:$0xff]   ;;  %v2666_v12 = vld [vmem:[%s2663_s6 + $0x10] sm:$0xff] }
 0x681   : > { %v2634_v6 = vmul.f32 0.5, %v2630_v32  ;;  %v2587_v7 = vpop.f32.mrb[39].mxu0  ;;  %v2628_v8 = vpop.f32.mrb[39].mxu1  ;;  %v2664_v32 = vld [vmem:[%s2663_s6] sm:$0xff] }
 0x682   : > { %v2638_v10 = vmul.f32 0.5, %v2631_v44  ;;  %v2643_v18 = vmul.f32 0.5, %v2633_v13  ;;  %v2665_v44 = vld [vmem:[%s2663_s6 + $0x8] sm:$0xff] }
 0x683   : > { %4177 = vtanh.f32 %v2634_v6 }
 0x684   : > { %4179 = vtanh.f32 %v2638_v10 }
 0x685   : > { %4181 = vtanh.f32 %v2632_v11 }
 0x686   : > { %4183 = vtanh.f32 %v2643_v18 }
 0x68d   : > { %v4178_v19 = vpop.eup %4177 }
 0x68e   : > { %v4180_v20 = vpop.eup %4179  ;;  %v2636_v21 = vmul.f32 0.5, %v4178_v19  ;;  %v2667_v19 = vld [vmem:[%s2663_s6 + $0x18] sm:$0xff] }
 0x68f   : > { %v2640_v22 = vmul.f32 0.5, %v4180_v20  ;;  %v4182_v24 = vpop.eup %4181 }
 0x690   : > { %v2637_v23 = vadd.f32 0.5, %v2636_v21  ;;  %v4184_v39 = vpop.eup %4183 }
 0x691   : > { %v2641_v14 = vadd.f32 0.5, %v2640_v22  ;;  %v2645_v43 = vmul.f32 0.5, %v4184_v39 }
 0x692   : > { %v2648_v36 = vmul.f32 %v4182_v24, %v2637_v23 }
 0x693   : > { %v2647_v37 = vmul.f32 %v2641_v14, %v5178_v46  ;;  %v2646_v52 = vadd.f32 0.5, %v2645_v43  ;;  %v4109_v46 = vld [vmem:[%s4663_s21 + $0xa0] ss:$16 sps:$4 sm:$0xff]  }
 0x695   : > { %v5223_v38 = vadd.f32 %v2648_v36, %v2647_v37 }
 0x697   : > { %4185 = vtanh.f32 %v5223_v38 }
 0x6a1   : > { %v4186_v54 = vpop.eup %4185 }
 0x6a2   : > { %v2651_v55 = vmul.f32 %v4186_v54, %v2646_v52 }
 0x6a4   : > { %v2652_v56 = vpack.c.bf16 %v2651_v55, %v2651_v55 }
 0x6a6   : > { %2655 = vst [vmem:[%s2654_s1] sm:$0xf] %v2652_v56  ;;  %2893 = vmatmul.mubr.bf16.vlgmr.msra.gmra.mrb[40].mxu0 %v2652_v56  ;;  %2934 = vmatmul.mubr.bf16.vlgmr.msra.gmra.mrb[40].mxu1 %v2652_v56 }
 0x6a7   : > { %3204 = vmatprep.mubr.bf16.mxu0 %v4390_v0  ;;  %3245 = vmatprep.mubr.bf16.mxu1 %v4390_v0  ;;  %v4093_v0 = vld [vmem:[%s4663_s21 + $0x44] ss:$16 sps:$4 sm:$0xff]   ;;  %s3777_s21 = sshll.u32 %s2659_s5, 2  ;;  %s3283_s5 = scalar_lea.sflag [#allocation7], %s4622_s9 }
 0x6a8   : > { %3173 = vmatpush1.bf16.msra.mxu0 %v4079_v58  ;;  %3214 = vmatpush1.bf16.msra.mxu1 %v4082_v16  ;;  %s2966_s24 = scalar_lea.vmem %s4897_s25, %s3777_s21 [#allocation11]  ;;  %s4299_s25 = sshll.u32 %s4392_s18, 4  ;;  %s4300_s25 = int_to_ptr.vmem [resolvable:$false] %s4299_s25 }
 0x6a9   : > { %3174 = vmatprep.subr.bf16.mxu0 %v4087_v59  ;;  %3215 = vmatprep.subr.bf16.mxu1 %v4090_v60  ;;  %s4301_s6 = scalar_lea.vmem %s4300_s25, 1024  ;;  %p4302_p1 = scmp.lt.s32.totalorder %s5284_s13, %s4300_s25 }
 0x6aa   : > { %p4303_p4 = scmp.lt.s32.totalorder %s4301_s6, %s4295_s26 }
 0x6ac   : > { %3175 = vmatpush1.bf16.msra.mxu0 %v4085_v61  ;;  %3216 = vmatpush1.bf16.msra.mxu1 %v4088_v63  ;;  %v2977_v63 = vld [vmem:[%s2975_s7 + $0x8] sm:$0xff]  ;;  %p4304_p8 = por %p4303_p4, %p4302_p1 }
 0x6ad   : > { %3176 = vmatprep.subr.bf16.mxu0 %v4093_v0  ;;  %3217 = vmatprep.subr.bf16.mxu1 %v4096_v1 }
 0x6ae   : > { %p4305_p0 = pnand %p4304_p8, %p4298_p13 }
 0x6b0   : > { %3177 = vmatpush1.bf16.msra.mxu0 %v4091_v2  ;;  %3218 = vmatpush1.bf16.msra.mxu1 %v4094_v3 }
 0x6b1   : > { %3178 = vmatprep.subr.bf16.mxu0 %v4099_v5  ;;  %3219 = vmatprep.subr.bf16.mxu1 %v4102_v25 }
 0x6b4   : > { %3179 = vmatpush1.bf16.msra.mxu0 %v4097_v15  ;;  %3220 = vmatpush1.bf16.msra.mxu1 %v4100_v26 }
 0x6b5   : > { %3180 = vmatprep.subr.bf16.mxu0 %v4105_v28  ;;  %3221 = vmatprep.subr.bf16.mxu1 %v4108_v40  ;;  %v2978_v28 = vld [vmem:[%s2975_s7 + $0x10] sm:$0xff] }
 0x6b8   : > { %3181 = vmatpush1.bf16.msra.mxu0 %v4103_v41  ;;  %3222 = vmatpush1.bf16.msra.mxu1 %v4106_v42  ;;  %v2979_v42 = vld [vmem:[%s2975_s7 + $0x18] sm:$0xff] }
 0x6b9   : > { %3182 = vmatprep.subr.bf16.mxu0 %v4111_v45  ;;  %3223 = vmatprep.subr.bf16.mxu1 %v4114_v4 }
 0x6bc   : > { %3183 = vmatpush1.bf16.msra.mxu0 %v4109_v46  ;;  %3224 = vmatpush1.bf16.msra.mxu1 %v4112_v47 }
 0x6bd   : > { %3184 = vmatprep.subr.bf16.mxu0 %v4117_v48  ;;  %3225 = vmatprep.subr.bf16.mxu1 %v4120_v49 }
 0x6c0   : > { %3185 = vmatpush1.bf16.msra.mxu0 %v4115_v27  ;;  %3226 = vmatpush1.bf16.msra.mxu1 %v4118_v50 }
 0x6c1   : > { %3186 = vmatprep.subr.bf16.mxu0 %v4123_v51  ;;  %3227 = vmatprep.subr.bf16.mxu1 %v4126_v31 }
 0x6c4   : > { %3187 = vmatpush1.bf16.msra.mxu0 %v4121_v30  ;;  %3228 = vmatpush1.bf16.msra.mxu1 %v4124_v17 }
 0x779   : > { %v2894_v33 = vpop.f32.mrb[40].mxu0  ;;  %v2935_v34 = vpop.f32.mrb[40].mxu1 }
 0x77a   : > { %v2942_v35 = vadd.f32 %v2894_v33, %v2664_v32  ;;  %v2896_v53 = vpop.f32.mrb[41].mxu0  ;;  %v2937_v62 = vpop.f32.mrb[41].mxu1  ;;  %v2944_v18 = vadd.f32 %v2935_v34, %v2666_v12 }
 0x77b   : > { %v2943_v6 = vadd.f32 %v2896_v53, %v2665_v44  ;;  %v2898_v7 = vpop.f32.mrb[42].mxu0  ;;  %v2939_v8 = vpop.f32.mrb[42].mxu1  ;;  %v2945_v20 = vadd.f32 %v2937_v62, %v2667_v19 }
 0x77c   : > { %v2946_v9 = vmul.f32 0.5, %v2942_v35  ;;  %v2899_v10 = vpop.f32.mrb[43].mxu0  ;;  %v2940_v11 = vpop.f32.mrb[43].mxu1 }
 0x77d   : > { %v2950_v13 = vmul.f32 0.5, %v2943_v6  ;;  %v2955_v21 = vmul.f32 0.5, %v2945_v20 }
 0x77e   : > { %4187 = vtanh.f32 %v2946_v9 }
 0x77f   : > { %4189 = vtanh.f32 %v2950_v13 }
 0x780   : > { %4191 = vtanh.f32 %v2944_v18 }
 0x781   : > { %4193 = vtanh.f32 %v2955_v21 }
 0x788   : > { %v4188_v22 = vpop.eup %4187 }
 0x789   : > { %v4190_v23 = vpop.eup %4189  ;;  %v2948_v24 = vmul.f32 0.5, %v4188_v22 }
 0x78a   : > { %v2952_v14 = vmul.f32 0.5, %v4190_v23  ;;  %v4192_v37 = vpop.eup %4191 }
 0x78b   : > { %v2949_v36 = vadd.f32 0.5, %v2948_v24  ;;  %v4194_v55 = vpop.eup %4193 }
 0x78c   : > { %v2953_v39 = vadd.f32 0.5, %v2952_v14  ;;  %v2957_v56 = vmul.f32 0.5, %v4194_v55 }
 0x78d   : > { %v2960_v43 = vmul.f32 %v4192_v37, %v2949_v36 }
 0x78e   : > { %v2959_v52 = vmul.f32 %v2953_v39, %v5223_v38  ;;  %v2958_v57 = vadd.f32 0.5, %v2957_v56  ;;  %v2976_v38 = vld [vmem:[%s2975_s7] sm:$0xff] }
 0x790   : > { %v2961_v54 = vadd.f32 %v2960_v43, %v2959_v52 }
 0x792   : > { %4195 = vtanh.f32 %v2961_v54 }
 0x79c   : > { %v4196_v29 = vpop.eup %4195 }
 0x79d   : > { %v2963_v58 = vmul.f32 %v4196_v29, %v2958_v57 }
 0x79f   : > { %v2964_v16 = vpack.c.bf16 %v2963_v58, %v2963_v58 }
 0x7a1   : > { %2967 = vst [vmem:[%s2966_s24] sm:$0xf] %v2964_v16  ;;  %3205 = vmatmul.mubr.bf16.vlgmr.msra.gmra.mrb[44].mxu0 %v2964_v16  ;;  %3246 = vmatmul.mubr.bf16.vlgmr.msra.gmra.mrb[44].mxu1 %v2964_v16 }
 0x874   : > { %v3206_v59 = vpop.f32.mrb[44].mxu0  ;;  %v3247_v60 = vpop.f32.mrb[44].mxu1 }
 0x875   : > { %v3254_v61 = vadd.f32 %v3206_v59, %v2976_v38  ;;  %v3208_v0 = vpop.f32.mrb[45].mxu0  ;;  %v3249_v1 = vpop.f32.mrb[45].mxu1  ;;  %v3256_v41 = vadd.f32 %v3247_v60, %v2978_v28 }
 0x876   : > { %v3255_v2 = vadd.f32 %v3208_v0, %v2977_v63  ;;  %v3210_v3 = vpop.f32.mrb[46].mxu0  ;;  %v3251_v5 = vpop.f32.mrb[46].mxu1  ;;  %v3257_v45 = vadd.f32 %v3249_v1, %v2979_v42 }
 0x877   : > { %v3258_v25 = vmul.f32 0.5, %v3254_v61  ;;  %v3211_v15 = vpop.f32.mrb[47].mxu0  ;;  %v3252_v26 = vpop.f32.mrb[47].mxu1 }
 0x878   : > { %v3262_v40 = vmul.f32 0.5, %v3255_v2  ;;  %v3267_v4 = vmul.f32 0.5, %v3257_v45 }
 0x879   : > { %4197 = vtanh.f32 %v3258_v25 }
 0x87a   : > { %4199 = vtanh.f32 %v3262_v40 }
 0x87b   : > { %4201 = vtanh.f32 %v3256_v41 }
 0x87c   : > { %4203 = vtanh.f32 %v3267_v4 }
 0x883   : > { %v4198_v46 = vpop.eup %4197 }
 0x884   : > { %v4200_v47 = vpop.eup %4199  ;;  %v3260_v48 = vmul.f32 0.5, %v4198_v46 }
 0x885   : > { %v3264_v49 = vmul.f32 0.5, %v4200_v47  ;;  %v4202_v50 = vpop.eup %4201 }
 0x886   : > { %v3261_v27 = vadd.f32 0.5, %v3260_v48  ;;  %v4204_v32 = vpop.eup %4203 }
 0x887   : > { %v3265_v51 = vadd.f32 0.5, %v3264_v49  ;;  %v3269_v33 = vmul.f32 0.5, %v4204_v32 }
 0x888   : > { %v3272_v30 = vmul.f32 %v4202_v50, %v3261_v27 }
 0x889   : > { %v3271_v17 = vmul.f32 %v3265_v51, %v2961_v54  ;;  %v3270_v34 = vadd.f32 0.5, %v3269_v33 }
 0x88b   : > { %v3273_v31 = vadd.f32 %v3272_v30, %v3271_v17 }
 0x88d   : > { %4205 = vtanh.f32 %v3273_v31 }
 0x897   : > { %v4206_v35 = vpop.eup %4205 }
 0x898   : > { %v3275_v44 = vmul.f32 %v4206_v35, %v3270_v34 }
 0x89a   : > { %v3276_v53 = vpack.c.bf16 %v3275_v44, %v3275_v44 }
 0x89c   : > { %3279 = vst [vmem:[%s3278_s10] sm:$0xf] %v3276_v53 }
 0x89d   : > { %4308 = shalt.err (!%p4305_p0)
}
 0x89e   : > { %s4309_s21 = scalar_lea.hbm %s5289_s27, 512  ;;  %s4313_s8 = scalar_lea.hbm %s5342_s4, 1024 }
 0x89f   : > { %p4310_p11 = scmp.ne.s32.totalorder %s5289_s27, %s4309_s21  ;;  %p4314_p5 = scmp.lt.u32.totalorder %s5289_s27, %s5342_s4 }
 0x8a0   : > { %p4315_p6 = scmp.lt.u32.totalorder %s4313_s8, %s4309_s21  ;;  %p4317_p9 = scmp.lt.u32.totalorder %s4309_s21, %s5289_s27 }
 0x8a1   : > { %p4311_p3 = pnand %p4310_p11, %p5377_p7 }
 0x8a2   : > { %p4316_p2 = por %p4315_p6, %p4314_p5 }
 0x8a3   : > { %p4312_p10 = pneg %p4311_p3 }
 0x8a4   : > { %p4318_p12 = por %p4317_p9, %p4316_p2 }
 0x8a6   : > { %p4319_p13 = pnand %p4318_p12, %p4312_p10 }
 0x8a8   : > { %4322 = shalt.err (!%p4319_p13)
}
 0x8a9   : > { %s4393_s7 = smov 64   ;;  %s4394_s19 = smov 128  }
 0x8aa   : > { %s4395_s14 = smov 4  }
 0x8ab   : > { %3853 = dma.vmem_to_hbm [thread:$0]  (%p5377_p7), %s5284_s13, 512, %s5289_s27, %s3283_s5, %s4393_s7, %s4394_s19, %s4395_s14  }
 0x8ac PF: > { %s3317_s10 = sand.u32 1, %s4361_s15   ;;  %p5378_p1 = scmp.ne.s32.totalorder %s5361_s30, 0 }
 0x8ad   : > { %p5379_p4 = scmp.ge.s32.totalorder %s4381_s20, 2  ;;  %s3318_s1 = scalar_lea.sflag [#allocation7], %s3317_s10 }
 0x8af   : > { %p3866_p8 = pnand %p5379_p4, %p5378_p1 }
 0x8b1   : > { %4356 = dma.done.wait (!%p3866_p8), %s3318_s1, 512  }
 0x8b2   : > { %4358 = vsyncadd (!%p3866_p8), %s3318_s1, 4294966784  ;;  %s23_s20 = sadd.s32 1, %s4381_s20   ;;  %s5380_s18 = sld [smem:[#allocation15_spill]] }
 0x8b3   : > { %p20_p0 = scmp.ge.s32.totalorder %s23_s20, 4   ;;  %s5381_s19 = sld [smem:[#allocation16_spill]] }
 0x8b4   : > { %s5382_s15 = smov %s4365_s16  ;;  %s5383_s16 = smov %s4369_s17 }
 0x8b5   : > { %s5384_s17 = smov %s4485_s29  ;;  %22 = sbr.rel (!%p20_p0) target bundleno = 10 (0xa), region = 128 }
 0x8bc   :  { %3323 = vsyncpa [#allocation6], 1 }
 0x8bd   :  { %3325 = vsyncpa [#allocation6 + $0x1], 1 }
 0x8be   :  { %3326 = vsyncpa [#allocation9], 1 }
 0x8bf   :  { %3328 = vsyncpa [#allocation9 + $0x1], 1 }
 0x8c0   :  { %3329 = vsyncpa [#allocation7], 1 }
 0x8c1   :  { %3331 = vsyncpa [#allocation7 + $0x1], 1 }

</bundles_post_ra>
